<compile_context>
chip_gen: v7x
topology: tpu7x:2x2x1
jax: 0.10.0
libtpu: 0.0.40
codegen_flags: <defaults>
</compile_context>

<pallas_src>
import functools

import jax
import jax.numpy as jnp
from jax.experimental import pallas as pl
from jax.experimental.pallas import tpu as pltpu


# ----------------------------------------------------------------------------
# parameter-slab layout: every small per-channel vector / FC weight packed into
# a single (Cout, 128) f32 operand (one DMA instead of six tiny ones).
# ----------------------------------------------------------------------------
def slab_layout(cin, cch, hidden):
    col = {}
    c = 0
    for name, width in (("b1", 1), ("a1", 1), ("b2", 1), ("a2", 1), ("b_fc2", 1),
                        ("fc1b", hidden), ("fc1w", hidden), ("fc2w", hidden),
                        ("w1", cin), ("wloc", 9), ("wsur", 9)):
        col[name] = c
        c += width
    width = ((c + 127) // 128) * 128
    return col, width


# ----------------------------------------------------------------------------
# kernel
# ----------------------------------------------------------------------------
def cgb_kernel(x_ref, masks_ref, slab_ref, o_ref, *, N, H, W, Cch, Cin, hidden, col):
    # x_ref    : (Cin,  N*H*W)  channels on sublanes, flattened (n,h,w) on lanes
    # masks_ref: (16,   N*H*W)  f32 {0,1} boundary masks; rows 0..7 = dil-1 taps,
    #                           rows 8..15 = dil-2 taps (ky,kx order, centre skipped)
    # slab_ref : (Cout, 128)    packed parameters (see slab_layout)
    # o_ref    : (Cout, N*H*W)
    Cout = 2 * Cch
    NHW = x_ref.shape[1]
    HW = H * W

    # ---- 1x1 conv on the MXU (BN1 scale pre-folded into weights), bias + PReLU ----
    w1 = slab_ref[0:Cch, col["w1"]:col["w1"] + Cin]                      # (Cch, Cin)
    y = jnp.dot(w1, x_ref[...], preferred_element_type=jnp.float32)     # (Cch, NHW)
    y = y + slab_ref[0:Cch, col["b1"]:col["b1"] + 1]
    a1 = slab_ref[0:Cch, col["a1"]:col["a1"] + 1]
    y = jnp.where(y >= 0.0, y, a1 * y)

    # ---- depthwise 3x3 halves via lane rolls + precomputed masks -------------------
    # loc is fully finished (taps + BN2 + PReLU) before sur starts -> smaller live set.
    def dw_half(dil, wcol, mrow0, r0):
        acc = y * slab_ref[0:Cch, wcol + 4:wcol + 5]          # seed with centre tap
        m = mrow0
        for ky in range(3):
            for kx in range(3):
                if ky == 1 and kx == 1:
                    continue
                off = dil * ((ky - 1) * W + (kx - 1))
                # numpy/jnp.roll convention: roll(y, -off)[p] == y[(p + off) % NHW]
                t = pltpu.roll(y, (-off) % NHW, axis=1)        # XLU lane rotation
                wk = slab_ref[0:Cch, wcol + ky * 3 + kx:wcol + ky * 3 + kx + 1]
                acc = acc + (t * masks_ref[m:m + 1, :]) * wk
                m += 1
        # BN2 (scale pre-folded into tap weights) bias + PReLU
        acc = acc + slab_ref[r0:r0 + Cch, col["b2"]:col["b2"] + 1]
        a2 = slab_ref[r0:r0 + Cch, col["a2"]:col["a2"] + 1]
        return jnp.where(acc >= 0.0, acc, a2 * acc)

    loc = dw_half(1, col["wloc"], 0, 0)
    sur = dw_half(2, col["wsur"], 8, Cch)

    # ---- FGlo (squeeze-excite) + skip, per contiguous 128-lane-aligned image slice --
    fc1w_loc = slab_ref[0:Cch, col["fc1w"]:col["fc1w"] + hidden]         # (Cch, hid)
    fc1w_sur = slab_ref[Cch:Cout, col["fc1w"]:col["fc1w"] + hidden]
    fc2w_loc = slab_ref[0:Cch, col["fc2w"]:col["fc2w"] + hidden]
    fc2w_sur = slab_ref[Cch:Cout, col["fc2w"]:col["fc2w"] + hidden]
    fc1b = slab_ref[0:1, col["fc1b"]:col["fc1b"] + hidden]               # (1, hid)
    fc2b_loc = slab_ref[0:Cch, col["b_fc2"]:col["b_fc2"] + 1]            # (Cch, 1)
    fc2b_sur = slab_ref[Cch:Cout, col["b_fc2"]:col["b_fc2"] + 1]
    inv_hw = 1.0 / HW

    for n in range(N):                                   # N is tiny & static
        s0 = n * HW
        loc_n = loc[:, s0:s0 + HW]
        sur_n = sur[:, s0:s0 + HW]
        g_loc = jnp.sum(loc_n, axis=1, keepdims=True) * inv_hw           # (Cch, 1)
        g_sur = jnp.sum(sur_n, axis=1, keepdims=True) * inv_hw
        h = (jnp.sum(g_loc * fc1w_loc, axis=0, keepdims=True)
             + jnp.sum(g_sur * fc1w_sur, axis=0, keepdims=True) + fc1b)  # (1, hid)
        h = jnp.maximum(h, 0.0)
        s_loc = jax.nn.sigmoid(
            jnp.sum(h * fc2w_loc, axis=1, keepdims=True) + fc2b_loc)     # (Cch, 1)
        s_sur = jax.nn.sigmoid(
            jnp.sum(h * fc2w_sur, axis=1, keepdims=True) + fc2b_sur)
        # x is re-read here (never held live across the tap loop); stores are
        # unmasked, full-width (HW is a multiple of 128 lanes, rows multiple of 8).
        o_ref[0:Cch, s0:s0 + HW] = x_ref[0:Cch, s0:s0 + HW] + loc_n * s_loc
        o_ref[Cch:Cout, s0:s0 + HW] = x_ref[Cch:Cout, s0:s0 + HW] + sur_n * s_sur


# ----------------------------------------------------------------------------
# host-side helpers
# ----------------------------------------------------------------------------
def boundary_masks(N, H, W):
    """(16, N*H*W) f32 {0,1} masks for the 8 dil-1 + 8 dil-2 non-centre taps."""
    NHW = N * H * W
    p = jnp.arange(NHW, dtype=jnp.int32)
    w_i = p % W
    h_i = (p // W) % H
    rows = []
    for dil in (1, 2):
        for ky in range(3):
            for kx in range(3):
                if ky == 1 and kx == 1:
                    continue
                dy, dx = dil * (ky - 1), dil * (kx - 1)
                ok = ((w_i + dx >= 0) & (w_i + dx < W) &
                      (h_i + dy >= 0) & (h_i + dy < H))
                rows.append(ok)
    return jnp.stack(rows, axis=0).astype(jnp.float32)


def context_guided_block(x_nchw, slab, meta):
    N, Cin_x, H, W = x_nchw.shape
    col, Cch, Cin, Cout, hidden = (meta["col"], meta["Cch"], meta["Cin"],
                                   meta["Cout"], meta["hidden"])
    assert Cin_x == Cin and Cin == Cout, "skip connection requires in_ch == out_ch"
    NHW, HW = N * H * W, H * W
    assert NHW % 128 == 0 and HW % 128 == 0 and Cch % 8 == 0

    # Layout plumbing: NCHW -> (C, N*H*W). For chained CG blocks, keep activations
    # in this packed layout across blocks instead of transposing per call.
    x_flat = x_nchw.transpose(1, 0, 2, 3).reshape(Cin, NHW)
    masks = boundary_masks(N, H, W)

    kern = functools.partial(cgb_kernel, N=N, H=H, W=W, Cch=Cch, Cin=Cin,
                             hidden=hidden, col=col)
    vmem = lambda: pl.BlockSpec(memory_space=pltpu.MemorySpace.VMEM)

    out_flat = pl.pallas_call(
        kern,
        out_shape=jax.ShapeDtypeStruct((Cout, NHW), jnp.float32),
        in_specs=[vmem(), vmem(), vmem()],     # whole arrays resident in VMEM, no grid
        out_specs=vmem(),
    )(x_flat, masks, slab)

    return out_flat.reshape(Cout, N, H, W).transpose(1, 0, 2, 3)          # NCHW


# ----------------------------------------------------------------------------
# parameters (PyTorch conventions), packing, and a pure-JAX reference
# ----------------------------------------------------------------------------
def fold_bn(gamma, beta, mean, var, eps=1e-5):
    scale = gamma / jnp.sqrt(var + eps)
    return scale, beta - mean * scale


def init_params(key, in_channels, out_channels, reduction=16):
    channels = out_channels // 2
    hidden = out_channels // reduction
    assert hidden >= 1
    ks = jax.random.split(key, 15)
    rnd = lambda k, shape, s=0.1: s * jax.random.normal(k, shape, jnp.float32)
    return dict(
        w1=rnd(ks[0], (channels, in_channels)),               # Conv2d(.,.,1) squeezed
        bn1_g=1.0 + rnd(ks[1], (channels,)), bn1_b=rnd(ks[2], (channels,)),
        bn1_m=rnd(ks[3], (channels,)), bn1_v=jnp.abs(1.0 + rnd(ks[4], (channels,))),
        a1=jnp.full((channels,), 0.25, jnp.float32),
        wloc=rnd(ks[5], (channels, 3, 3)),                    # depthwise (C,1,3,3)
        wsur=rnd(ks[6], (channels, 3, 3)),
        bn2_g=1.0 + rnd(ks[7], (2 * channels,)), bn2_b=rnd(ks[8], (2 * channels,)),
        bn2_m=rnd(ks[9], (2 * channels,)), bn2_v=jnp.abs(1.0 + rnd(ks[10], (2 * channels,))),
        a2=jnp.full((2 * channels,), 0.25, jnp.float32),
        fc1w=rnd(ks[11], (hidden, out_channels)), fc1b=rnd(ks[12], (hidden,)),
        fc2w=rnd(ks[13], (out_channels, hidden)), fc2b=rnd(ks[14], (out_channels,)),
    )


def pack_params(p, eps=1e-5):
    bn1s, bn1b = fold_bn(p["bn1_g"], p["bn1_b"], p["bn1_m"], p["bn1_v"], eps)
    bn2s, bn2b = fold_bn(p["bn2_g"], p["bn2_b"], p["bn2_m"], p["bn2_v"], eps)
    Cch, Cin = p["w1"].shape
    Cout = 2 * Cch
    hidden = p["fc1b"].shape[0]
    col, width = slab_layout(Cin, Cch, hidden)
    slab = jnp.zeros((Cout, width), jnp.float32)
    slab = slab.at[0:Cch, col["b1"]].set(bn1b)
    slab = slab.at[0:Cch, col["a1"]].set(p["a1"])
    slab = slab.at[0:Cout, col["b2"]].set(bn2b)
    slab = slab.at[0:Cout, col["a2"]].set(p["a2"])
    slab = slab.at[0:Cout, col["b_fc2"]].set(p["fc2b"])
    slab = slab.at[0, col["fc1b"]:col["fc1b"] + hidden].set(p["fc1b"])
    slab = slab.at[0:Cout, col["fc1w"]:col["fc1w"] + hidden].set(p["fc1w"].T)
    slab = slab.at[0:Cout, col["fc2w"]:col["fc2w"] + hidden].set(p["fc2w"])
    # Fold BN1 scale into the 1x1 conv weight and BN2 scale into the depthwise
    # tap weights -> no in-kernel scale multiplies.
    slab = slab.at[0:Cch, col["w1"]:col["w1"] + Cin].set(p["w1"] * bn1s[:, None])
    slab = slab.at[0:Cch, col["wloc"]:col["wloc"] + 9].set(
        p["wloc"].reshape(Cch, 9) * bn2s[0:Cch, None])
    slab = slab.at[0:Cch, col["wsur"]:col["wsur"] + 9].set(
        p["wsur"].reshape(Cch, 9) * bn2s[Cch:Cout, None])
    meta = dict(col=col, Cch=Cch, Cin=Cin, Cout=Cout, hidden=hidden)
    return slab, meta


def reference_forward(x, p, eps=1e-5):
    """Pure-JAX (XLA) reference matching the PyTorch forward (eval-mode BN)."""
    bn1s, bn1b = fold_bn(p["bn1_g"], p["bn1_b"], p["bn1_m"], p["bn1_v"], eps)
    bn2s, bn2b = fold_bn(p["bn2_g"], p["bn2_b"], p["bn2_m"], p["bn2_v"], eps)
    cexp = lambda v: v[None, :, None, None]

    y = jnp.einsum("oc,nchw->nohw", p["w1"], x,
                   precision=jax.lax.Precision.HIGHEST)
    y = y * cexp(bn1s) + cexp(bn1b)
    y = jnp.where(y >= 0, y, cexp(p["a1"]) * y)

    def depthwise(z, w, d):
        _, _, H, W = z.shape
        zp = jnp.pad(z, ((0, 0), (0, 0), (d, d), (d, d)))
        out = jnp.zeros_like(z)
        for ky in range(3):
            for kx in range(3):
                dy, dx = d * (ky - 1), d * (kx - 1)
                out = out + (zp[:, :, d + dy:d + dy + H, d + dx:d + dx + W]
                             * w[:, ky, kx][None, :, None, None])
        return out

    loc = depthwise(y, p["wloc"], 1)
    sur = depthwise(y, p["wsur"], 2)
    joi = jnp.concatenate([loc, sur], axis=1)
    joi = joi * cexp(bn2s) + cexp(bn2b)
    joi = jnp.where(joi >= 0, joi, cexp(p["a2"]) * joi)

    g = jnp.mean(joi, axis=(2, 3))                                  # (N, Cout)
    h = jnp.maximum(g @ p["fc1w"].T + p["fc1b"], 0.0)               # (N, hid)
    s = jax.nn.sigmoid(h @ p["fc2w"].T + p["fc2b"])                 # (N, Cout)
    return x + joi * s[:, :, None, None]


if __name__ == "__main__":
    # batch=2, in=out=32 channels (reduction=16 -> SE hidden=2), 16x16 spatial.
    N, C, H, W = 2, 32, 16, 16
    key = jax.random.PRNGKey(0)
    kx, kp = jax.random.split(key)

    x = jax.random.normal(kx, (N, C, H, W), dtype=jnp.float32)      # NCHW
    raw = init_params(kp, in_channels=C, out_channels=C, reduction=16)
    slab, meta = pack_params(raw)

    out = context_guided_block(x, slab, meta)
    jax.block_until_ready(out)

    assert out.shape == (N, C, H, W)
    assert bool(jnp.all(jnp.isfinite(out)))
    ref = reference_forward(x, raw)
    err = float(jnp.max(jnp.abs(out - ref)))
    # Tolerance bounded by possible MXU f32 pass decomposition vs the HIGHEST-precision
    # XLA reference; tightened from 2e-2.
    assert err < 1e-2, f"kernel/reference mismatch: max abs err = {err}"
    print("KERNEL_OK")
</pallas_src>

<mosaic_0001>
module attributes {stable_mosaic.version = 11 : i64} {
  func.func @cgb_kernel(%arg0: memref<32x512xf32, #tpu.memory_space<vmem>>, %arg1: memref<16x512xf32, #tpu.memory_space<vmem>>, %arg2: memref<32x128xf32, #tpu.memory_space<vmem>>, %arg3: memref<32x512xf32, #tpu.memory_space<vmem>>) attributes {dimension_semantics = [], scalar_prefetch = 0 : i64, scratch_operands = 0 : i64, tpu.core_type = #tpu.core_type<tc>} {
    %c0 = arith.constant 0 : index
    %c11 = arith.constant 11 : index
    %0 = vector.load %arg2[%c0, %c11] : memref<32x128xf32, #tpu.memory_space<vmem>>, vector<16x32xf32>
    %c0_0 = arith.constant 0 : index
    %c0_1 = arith.constant 0 : index
    %1 = vector.load %arg0[%c0_0, %c0_1] : memref<32x512xf32, #tpu.memory_space<vmem>>, vector<32x512xf32>
    %cst = arith.constant dense<0.000000e+00> : vector<16x512xf32>
    %2 = tpu.matmul %0, %1, %cst {dimension_numbers = #tpu.dot_dimension_numbers<[1], [0], [0], [1], [0, 0, 1, 1], [], []>} : vector<16x32xf32>, vector<32x512xf32>, vector<16x512xf32> -> vector<16x512xf32>
    %c0_2 = arith.constant 0 : index
    %c0_3 = arith.constant 0 : index
    %3 = vector.load %arg2[%c0_2, %c0_3] : memref<32x128xf32, #tpu.memory_space<vmem>>, vector<16x1xf32>
    %4 = vector.broadcast %3 : vector<16x1xf32> to vector<16x512xf32>
    %5 = arith.addf %2, %4 : vector<16x512xf32>
    %c0_4 = arith.constant 0 : index
    %c1 = arith.constant 1 : index
    %6 = vector.load %arg2[%c0_4, %c1] : memref<32x128xf32, #tpu.memory_space<vmem>>, vector<16x1xf32>
    %cst_5 = arith.constant 0.000000e+00 : f32
    %7 = vector.broadcast %cst_5 : f32 to vector<16x512xf32>
    %8 = arith.cmpf oge, %5, %7 : vector<16x512xf32>
    %9 = vector.broadcast %6 : vector<16x1xf32> to vector<16x512xf32>
    %10 = arith.mulf %9, %5 : vector<16x512xf32>
    %11 = arith.select %8, %5, %10 : vector<16x512xi1>, vector<16x512xf32>
    %c0_6 = arith.constant 0 : index
    %c47 = arith.constant 47 : index
    %12 = vector.load %arg2[%c0_6, %c47] : memref<32x128xf32, #tpu.memory_space<vmem>>, vector<16x1xf32>
    %13 = vector.broadcast %12 : vector<16x1xf32> to vector<16x512xf32>
    %14 = arith.mulf %11, %13 : vector<16x512xf32>
    %c17_i32 = arith.constant 17 : i32
    %15 = tpu.dynamic_rotate %11 by %c17_i32 dim 1 : vector<16x512xf32>, i32 -> vector<16x512xf32>
    %c0_7 = arith.constant 0 : index
    %c43 = arith.constant 43 : index
    %16 = vector.load %arg2[%c0_7, %c43] : memref<32x128xf32, #tpu.memory_space<vmem>>, vector<16x1xf32>
    %c0_8 = arith.constant 0 : index
    %c0_9 = arith.constant 0 : index
    %17 = vector.load %arg1[%c0_8, %c0_9] : memref<16x512xf32, #tpu.memory_space<vmem>>, vector<1x512xf32>
    %18 = vector.broadcast %17 : vector<1x512xf32> to vector<16x512xf32>
    %19 = arith.mulf %15, %18 : vector<16x512xf32>
    %20 = vector.broadcast %16 : vector<16x1xf32> to vector<16x512xf32>
    %21 = arith.mulf %19, %20 : vector<16x512xf32>
    %22 = arith.addf %14, %21 : vector<16x512xf32>
    %c16_i32 = arith.constant 16 : i32
    %23 = tpu.dynamic_rotate %11 by %c16_i32 dim 1 : vector<16x512xf32>, i32 -> vector<16x512xf32>
    %c0_10 = arith.constant 0 : index
    %c44 = arith.constant 44 : index
    %24 = vector.load %arg2[%c0_10, %c44] : memref<32x128xf32, #tpu.memory_space<vmem>>, vector<16x1xf32>
    %c1_11 = arith.constant 1 : index
    %c0_12 = arith.constant 0 : index
    %25 = vector.load %arg1[%c1_11, %c0_12] : memref<16x512xf32, #tpu.memory_space<vmem>>, vector<1x512xf32>
    %26 = vector.broadcast %25 : vector<1x512xf32> to vector<16x512xf32>
    %27 = arith.mulf %23, %26 : vector<16x512xf32>
    %28 = vector.broadcast %24 : vector<16x1xf32> to vector<16x512xf32>
    %29 = arith.mulf %27, %28 : vector<16x512xf32>
    %30 = arith.addf %22, %29 : vector<16x512xf32>
    %c15_i32 = arith.constant 15 : i32
    %31 = tpu.dynamic_rotate %11 by %c15_i32 dim 1 : vector<16x512xf32>, i32 -> vector<16x512xf32>
    %c0_13 = arith.constant 0 : index
    %c45 = arith.constant 45 : index
    %32 = vector.load %arg2[%c0_13, %c45] : memref<32x128xf32, #tpu.memory_space<vmem>>, vector<16x1xf32>
    %c2 = arith.constant 2 : index
    %c0_14 = arith.constant 0 : index
    %33 = vector.load %arg1[%c2, %c0_14] : memref<16x512xf32, #tpu.memory_space<vmem>>, vector<1x512xf32>
    %34 = vector.broadcast %33 : vector<1x512xf32> to vector<16x512xf32>
    %35 = arith.mulf %31, %34 : vector<16x512xf32>
    %36 = vector.broadcast %32 : vector<16x1xf32> to vector<16x512xf32>
    %37 = arith.mulf %35, %36 : vector<16x512xf32>
    %38 = arith.addf %30, %37 : vector<16x512xf32>
    %c1_i32 = arith.constant 1 : i32
    %39 = tpu.dynamic_rotate %11 by %c1_i32 dim 1 : vector<16x512xf32>, i32 -> vector<16x512xf32>
    %c0_15 = arith.constant 0 : index
    %c46 = arith.constant 46 : index
    %40 = vector.load %arg2[%c0_15, %c46] : memref<32x128xf32, #tpu.memory_space<vmem>>, vector<16x1xf32>
    %c3 = arith.constant 3 : index
    %c0_16 = arith.constant 0 : index
    %41 = vector.load %arg1[%c3, %c0_16] : memref<16x512xf32, #tpu.memory_space<vmem>>, vector<1x512xf32>
    %42 = vector.broadcast %41 : vector<1x512xf32> to vector<16x512xf32>
    %43 = arith.mulf %39, %42 : vector<16x512xf32>
    %44 = vector.broadcast %40 : vector<16x1xf32> to vector<16x512xf32>
    %45 = arith.mulf %43, %44 : vector<16x512xf32>
    %46 = arith.addf %38, %45 : vector<16x512xf32>
    %c511_i32 = arith.constant 511 : i32
    %47 = tpu.dynamic_rotate %11 by %c511_i32 dim 1 : vector<16x512xf32>, i32 -> vector<16x512xf32>
    %c0_17 = arith.constant 0 : index
    %c48 = arith.constant 48 : index
    %48 = vector.load %arg2[%c0_17, %c48] : memref<32x128xf32, #tpu.memory_space<vmem>>, vector<16x1xf32>
    %c4 = arith.constant 4 : index
    %c0_18 = arith.constant 0 : index
    %49 = vector.load %arg1[%c4, %c0_18] : memref<16x512xf32, #tpu.memory_space<vmem>>, vector<1x512xf32>
    %50 = vector.broadcast %49 : vector<1x512xf32> to vector<16x512xf32>
    %51 = arith.mulf %47, %50 : vector<16x512xf32>
    %52 = vector.broadcast %48 : vector<16x1xf32> to vector<16x512xf32>
    %53 = arith.mulf %51, %52 : vector<16x512xf32>
    %54 = arith.addf %46, %53 : vector<16x512xf32>
    %c497_i32 = arith.constant 497 : i32
    %55 = tpu.dynamic_rotate %11 by %c497_i32 dim 1 : vector<16x512xf32>, i32 -> vector<16x512xf32>
    %c0_19 = arith.constant 0 : index
    %c49 = arith.constant 49 : index
    %56 = vector.load %arg2[%c0_19, %c49] : memref<32x128xf32, #tpu.memory_space<vmem>>, vector<16x1xf32>
    %c5 = arith.constant 5 : index
    %c0_20 = arith.constant 0 : index
    %57 = vector.load %arg1[%c5, %c0_20] : memref<16x512xf32, #tpu.memory_space<vmem>>, vector<1x512xf32>
    %58 = vector.broadcast %57 : vector<1x512xf32> to vector<16x512xf32>
    %59 = arith.mulf %55, %58 : vector<16x512xf32>
    %60 = vector.broadcast %56 : vector<16x1xf32> to vector<16x512xf32>
    %61 = arith.mulf %59, %60 : vector<16x512xf32>
    %62 = arith.addf %54, %61 : vector<16x512xf32>
    %c496_i32 = arith.constant 496 : i32
    %63 = tpu.dynamic_rotate %11 by %c496_i32 dim 1 : vector<16x512xf32>, i32 -> vector<16x512xf32>
    %c0_21 = arith.constant 0 : index
    %c50 = arith.constant 50 : index
    %64 = vector.load %arg2[%c0_21, %c50] : memref<32x128xf32, #tpu.memory_space<vmem>>, vector<16x1xf32>
    %c6 = arith.constant 6 : index
    %c0_22 = arith.constant 0 : index
    %65 = vector.load %arg1[%c6, %c0_22] : memref<16x512xf32, #tpu.memory_space<vmem>>, vector<1x512xf32>
    %66 = vector.broadcast %65 : vector<1x512xf32> to vector<16x512xf32>
    %67 = arith.mulf %63, %66 : vector<16x512xf32>
    %68 = vector.broadcast %64 : vector<16x1xf32> to vector<16x512xf32>
    %69 = arith.mulf %67, %68 : vector<16x512xf32>
    %70 = arith.addf %62, %69 : vector<16x512xf32>
    %c495_i32 = arith.constant 495 : i32
    %71 = tpu.dynamic_rotate %11 by %c495_i32 dim 1 : vector<16x512xf32>, i32 -> vector<16x512xf32>
    %c0_23 = arith.constant 0 : index
    %c51 = arith.constant 51 : index
    %72 = vector.load %arg2[%c0_23, %c51] : memref<32x128xf32, #tpu.memory_space<vmem>>, vector<16x1xf32>
    %c7 = arith.constant 7 : index
    %c0_24 = arith.constant 0 : index
    %73 = vector.load %arg1[%c7, %c0_24] : memref<16x512xf32, #tpu.memory_space<vmem>>, vector<1x512xf32>
    %74 = vector.broadcast %73 : vector<1x512xf32> to vector<16x512xf32>
    %75 = arith.mulf %71, %74 : vector<16x512xf32>
    %76 = vector.broadcast %72 : vector<16x1xf32> to vector<16x512xf32>
    %77 = arith.mulf %75, %76 : vector<16x512xf32>
    %78 = arith.addf %70, %77 : vector<16x512xf32>
    %c0_25 = arith.constant 0 : index
    %c2_26 = arith.constant 2 : index
    %79 = vector.load %arg2[%c0_25, %c2_26] : memref<32x128xf32, #tpu.memory_space<vmem>>, vector<16x1xf32>
    %80 = vector.broadcast %79 : vector<16x1xf32> to vector<16x512xf32>
    %81 = arith.addf %78, %80 : vector<16x512xf32>
    %c0_27 = arith.constant 0 : index
    %c3_28 = arith.constant 3 : index
    %82 = vector.load %arg2[%c0_27, %c3_28] : memref<32x128xf32, #tpu.memory_space<vmem>>, vector<16x1xf32>
    %cst_29 = arith.constant 0.000000e+00 : f32
    %83 = vector.broadcast %cst_29 : f32 to vector<16x512xf32>
    %84 = arith.cmpf oge, %81, %83 : vector<16x512xf32>
    %85 = vector.broadcast %82 : vector<16x1xf32> to vector<16x512xf32>
    %86 = arith.mulf %85, %81 : vector<16x512xf32>
    %87 = arith.select %84, %81, %86 : vector<16x512xi1>, vector<16x512xf32>
    %c0_30 = arith.constant 0 : index
    %c56 = arith.constant 56 : index
    %88 = vector.load %arg2[%c0_30, %c56] : memref<32x128xf32, #tpu.memory_space<vmem>>, vector<16x1xf32>
    %89 = vector.broadcast %88 : vector<16x1xf32> to vector<16x512xf32>
    %90 = arith.mulf %11, %89 : vector<16x512xf32>
    %c34_i32 = arith.constant 34 : i32
    %91 = tpu.dynamic_rotate %11 by %c34_i32 dim 1 : vector<16x512xf32>, i32 -> vector<16x512xf32>
    %c0_31 = arith.constant 0 : index
    %c52 = arith.constant 52 : index
    %92 = vector.load %arg2[%c0_31, %c52] : memref<32x128xf32, #tpu.memory_space<vmem>>, vector<16x1xf32>
    %c8 = arith.constant 8 : index
    %c0_32 = arith.constant 0 : index
    %93 = vector.load %arg1[%c8, %c0_32] : memref<16x512xf32, #tpu.memory_space<vmem>>, vector<1x512xf32>
    %94 = vector.broadcast %93 : vector<1x512xf32> to vector<16x512xf32>
    %95 = arith.mulf %91, %94 : vector<16x512xf32>
    %96 = vector.broadcast %92 : vector<16x1xf32> to vector<16x512xf32>
    %97 = arith.mulf %95, %96 : vector<16x512xf32>
    %98 = arith.addf %90, %97 : vector<16x512xf32>
    %c32_i32 = arith.constant 32 : i32
    %99 = tpu.dynamic_rotate %11 by %c32_i32 dim 1 : vector<16x512xf32>, i32 -> vector<16x512xf32>
    %c0_33 = arith.constant 0 : index
    %c53 = arith.constant 53 : index
    %100 = vector.load %arg2[%c0_33, %c53] : memref<32x128xf32, #tpu.memory_space<vmem>>, vector<16x1xf32>
    %c9 = arith.constant 9 : index
    %c0_34 = arith.constant 0 : index
    %101 = vector.load %arg1[%c9, %c0_34] : memref<16x512xf32, #tpu.memory_space<vmem>>, vector<1x512xf32>
    %102 = vector.broadcast %101 : vector<1x512xf32> to vector<16x512xf32>
    %103 = arith.mulf %99, %102 : vector<16x512xf32>
    %104 = vector.broadcast %100 : vector<16x1xf32> to vector<16x512xf32>
    %105 = arith.mulf %103, %104 : vector<16x512xf32>
    %106 = arith.addf %98, %105 : vector<16x512xf32>
    %c30_i32 = arith.constant 30 : i32
    %107 = tpu.dynamic_rotate %11 by %c30_i32 dim 1 : vector<16x512xf32>, i32 -> vector<16x512xf32>
    %c0_35 = arith.constant 0 : index
    %c54 = arith.constant 54 : index
    %108 = vector.load %arg2[%c0_35, %c54] : memref<32x128xf32, #tpu.memory_space<vmem>>, vector<16x1xf32>
    %c10 = arith.constant 10 : index
    %c0_36 = arith.constant 0 : index
    %109 = vector.load %arg1[%c10, %c0_36] : memref<16x512xf32, #tpu.memory_space<vmem>>, vector<1x512xf32>
    %110 = vector.broadcast %109 : vector<1x512xf32> to vector<16x512xf32>
    %111 = arith.mulf %107, %110 : vector<16x512xf32>
    %112 = vector.broadcast %108 : vector<16x1xf32> to vector<16x512xf32>
    %113 = arith.mulf %111, %112 : vector<16x512xf32>
    %114 = arith.addf %106, %113 : vector<16x512xf32>
    %c2_i32 = arith.constant 2 : i32
    %115 = tpu.dynamic_rotate %11 by %c2_i32 dim 1 : vector<16x512xf32>, i32 -> vector<16x512xf32>
    %c0_37 = arith.constant 0 : index
    %c55 = arith.constant 55 : index
    %116 = vector.load %arg2[%c0_37, %c55] : memref<32x128xf32, #tpu.memory_space<vmem>>, vector<16x1xf32>
    %c11_38 = arith.constant 11 : index
    %c0_39 = arith.constant 0 : index
    %117 = vector.load %arg1[%c11_38, %c0_39] : memref<16x512xf32, #tpu.memory_space<vmem>>, vector<1x512xf32>
    %118 = vector.broadcast %117 : vector<1x512xf32> to vector<16x512xf32>
    %119 = arith.mulf %115, %118 : vector<16x512xf32>
    %120 = vector.broadcast %116 : vector<16x1xf32> to vector<16x512xf32>
    %121 = arith.mulf %119, %120 : vector<16x512xf32>
    %122 = arith.addf %114, %121 : vector<16x512xf32>
    %c510_i32 = arith.constant 510 : i32
    %123 = tpu.dynamic_rotate %11 by %c510_i32 dim 1 : vector<16x512xf32>, i32 -> vector<16x512xf32>
    %c0_40 = arith.constant 0 : index
    %c57 = arith.constant 57 : index
    %124 = vector.load %arg2[%c0_40, %c57] : memref<32x128xf32, #tpu.memory_space<vmem>>, vector<16x1xf32>
    %c12 = arith.constant 12 : index
    %c0_41 = arith.constant 0 : index
    %125 = vector.load %arg1[%c12, %c0_41] : memref<16x512xf32, #tpu.memory_space<vmem>>, vector<1x512xf32>
    %126 = vector.broadcast %125 : vector<1x512xf32> to vector<16x512xf32>
    %127 = arith.mulf %123, %126 : vector<16x512xf32>
    %128 = vector.broadcast %124 : vector<16x1xf32> to vector<16x512xf32>
    %129 = arith.mulf %127, %128 : vector<16x512xf32>
    %130 = arith.addf %122, %129 : vector<16x512xf32>
    %c482_i32 = arith.constant 482 : i32
    %131 = tpu.dynamic_rotate %11 by %c482_i32 dim 1 : vector<16x512xf32>, i32 -> vector<16x512xf32>
    %c0_42 = arith.constant 0 : index
    %c58 = arith.constant 58 : index
    %132 = vector.load %arg2[%c0_42, %c58] : memref<32x128xf32, #tpu.memory_space<vmem>>, vector<16x1xf32>
    %c13 = arith.constant 13 : index
    %c0_43 = arith.constant 0 : index
    %133 = vector.load %arg1[%c13, %c0_43] : memref<16x512xf32, #tpu.memory_space<vmem>>, vector<1x512xf32>
    %134 = vector.broadcast %133 : vector<1x512xf32> to vector<16x512xf32>
    %135 = arith.mulf %131, %134 : vector<16x512xf32>
    %136 = vector.broadcast %132 : vector<16x1xf32> to vector<16x512xf32>
    %137 = arith.mulf %135, %136 : vector<16x512xf32>
    %138 = arith.addf %130, %137 : vector<16x512xf32>
    %c480_i32 = arith.constant 480 : i32
    %139 = tpu.dynamic_rotate %11 by %c480_i32 dim 1 : vector<16x512xf32>, i32 -> vector<16x512xf32>
    %c0_44 = arith.constant 0 : index
    %c59 = arith.constant 59 : index
    %140 = vector.load %arg2[%c0_44, %c59] : memref<32x128xf32, #tpu.memory_space<vmem>>, vector<16x1xf32>
    %c14 = arith.constant 14 : index
    %c0_45 = arith.constant 0 : index
    %141 = vector.load %arg1[%c14, %c0_45] : memref<16x512xf32, #tpu.memory_space<vmem>>, vector<1x512xf32>
    %142 = vector.broadcast %141 : vector<1x512xf32> to vector<16x512xf32>
    %143 = arith.mulf %139, %142 : vector<16x512xf32>
    %144 = vector.broadcast %140 : vector<16x1xf32> to vector<16x512xf32>
    %145 = arith.mulf %143, %144 : vector<16x512xf32>
    %146 = arith.addf %138, %145 : vector<16x512xf32>
    %c478_i32 = arith.constant 478 : i32
    %147 = tpu.dynamic_rotate %11 by %c478_i32 dim 1 : vector<16x512xf32>, i32 -> vector<16x512xf32>
    %c0_46 = arith.constant 0 : index
    %c60 = arith.constant 60 : index
    %148 = vector.load %arg2[%c0_46, %c60] : memref<32x128xf32, #tpu.memory_space<vmem>>, vector<16x1xf32>
    %c15 = arith.constant 15 : index
    %c0_47 = arith.constant 0 : index
    %149 = vector.load %arg1[%c15, %c0_47] : memref<16x512xf32, #tpu.memory_space<vmem>>, vector<1x512xf32>
    %150 = vector.broadcast %149 : vector<1x512xf32> to vector<16x512xf32>
    %151 = arith.mulf %147, %150 : vector<16x512xf32>
    %152 = vector.broadcast %148 : vector<16x1xf32> to vector<16x512xf32>
    %153 = arith.mulf %151, %152 : vector<16x512xf32>
    %154 = arith.addf %146, %153 : vector<16x512xf32>
    %c16 = arith.constant 16 : index
    %c2_48 = arith.constant 2 : index
    %155 = vector.load %arg2[%c16, %c2_48] : memref<32x128xf32, #tpu.memory_space<vmem>>, vector<16x1xf32>
    %156 = vector.broadcast %155 : vector<16x1xf32> to vector<16x512xf32>
    %157 = arith.addf %154, %156 : vector<16x512xf32>
    %c16_49 = arith.constant 16 : index
    %c3_50 = arith.constant 3 : index
    %158 = vector.load %arg2[%c16_49, %c3_50] : memref<32x128xf32, #tpu.memory_space<vmem>>, vector<16x1xf32>
    %cst_51 = arith.constant 0.000000e+00 : f32
    %159 = vector.broadcast %cst_51 : f32 to vector<16x512xf32>
    %160 = arith.cmpf oge, %157, %159 : vector<16x512xf32>
    %161 = vector.broadcast %158 : vector<16x1xf32> to vector<16x512xf32>
    %162 = arith.mulf %161, %157 : vector<16x512xf32>
    %163 = arith.select %160, %157, %162 : vector<16x512xi1>, vector<16x512xf32>
    %c0_52 = arith.constant 0 : index
    %c7_53 = arith.constant 7 : index
    %164 = vector.load %arg2[%c0_52, %c7_53] : memref<32x128xf32, #tpu.memory_space<vmem>>, vector<16x2xf32>
    %c16_54 = arith.constant 16 : index
    %c7_55 = arith.constant 7 : index
    %165 = vector.load %arg2[%c16_54, %c7_55] : memref<32x128xf32, #tpu.memory_space<vmem>>, vector<16x2xf32>
    %c0_56 = arith.constant 0 : index
    %c9_57 = arith.constant 9 : index
    %166 = vector.load %arg2[%c0_56, %c9_57] : memref<32x128xf32, #tpu.memory_space<vmem>>, vector<16x2xf32>
    %c16_58 = arith.constant 16 : index
    %c9_59 = arith.constant 9 : index
    %167 = vector.load %arg2[%c16_58, %c9_59] : memref<32x128xf32, #tpu.memory_space<vmem>>, vector<16x2xf32>
    %c0_60 = arith.constant 0 : index
    %c5_61 = arith.constant 5 : index
    %168 = vector.load %arg2[%c0_60, %c5_61] : memref<32x128xf32, #tpu.memory_space<vmem>>, vector<1x2xf32>
    %c0_62 = arith.constant 0 : index
    %c4_63 = arith.constant 4 : index
    %169 = vector.load %arg2[%c0_62, %c4_63] : memref<32x128xf32, #tpu.memory_space<vmem>>, vector<16x1xf32>
    %c16_64 = arith.constant 16 : index
    %c4_65 = arith.constant 4 : index
    %170 = vector.load %arg2[%c16_64, %c4_65] : memref<32x128xf32, #tpu.memory_space<vmem>>, vector<16x1xf32>
    %171 = vector.extract_strided_slice %87 {offsets = [0, 0], sizes = [16, 256], strides = [1, 1]} : vector<16x512xf32> to vector<16x256xf32>
    %172 = vector.extract_strided_slice %163 {offsets = [0, 0], sizes = [16, 256], strides = [1, 1]} : vector<16x512xf32> to vector<16x256xf32>
    %cst_66 = arith.constant dense<0.000000e+00> : vector<16xf32>
    %173 = vector.multi_reduction <add>, %171, %cst_66 [1] : vector<16x256xf32> to vector<16xf32>
    %174 = vector.shape_cast %173 : vector<16xf32> to vector<16x1xf32>
    %cst_67 = arith.constant 3.906250e-03 : f32
    %175 = vector.broadcast %cst_67 : f32 to vector<16x1xf32>
    %176 = arith.mulf %174, %175 : vector<16x1xf32>
    %cst_68 = arith.constant dense<0.000000e+00> : vector<16xf32>
    %177 = vector.multi_reduction <add>, %172, %cst_68 [1] : vector<16x256xf32> to vector<16xf32>
    %178 = vector.shape_cast %177 : vector<16xf32> to vector<16x1xf32>
    %cst_69 = arith.constant 3.906250e-03 : f32
    %179 = vector.broadcast %cst_69 : f32 to vector<16x1xf32>
    %180 = arith.mulf %178, %179 : vector<16x1xf32>
    %181 = vector.broadcast %176 : vector<16x1xf32> to vector<16x2xf32>
    %182 = arith.mulf %181, %164 : vector<16x2xf32>
    %cst_70 = arith.constant dense<0.000000e+00> : vector<2xf32>
    %183 = vector.multi_reduction <add>, %182, %cst_70 [0] : vector<16x2xf32> to vector<2xf32>
    %184 = vector.shape_cast %183 : vector<2xf32> to vector<1x2xf32>
    %185 = vector.broadcast %180 : vector<16x1xf32> to vector<16x2xf32>
    %186 = arith.mulf %185, %165 : vector<16x2xf32>
    %cst_71 = arith.constant dense<0.000000e+00> : vector<2xf32>
    %187 = vector.multi_reduction <add>, %186, %cst_71 [0] : vector<16x2xf32> to vector<2xf32>
    %188 = vector.shape_cast %187 : vector<2xf32> to vector<1x2xf32>
    %189 = arith.addf %184, %188 : vector<1x2xf32>
    %190 = arith.addf %189, %168 : vector<1x2xf32>
    %cst_72 = arith.constant 0.000000e+00 : f32
    %191 = vector.broadcast %cst_72 : f32 to vector<1x2xf32>
    %192 = arith.maximumf %190, %191 : vector<1x2xf32>
    %193 = vector.broadcast %192 : vector<1x2xf32> to vector<16x2xf32>
    %194 = arith.mulf %193, %166 : vector<16x2xf32>
    %cst_73 = arith.constant dense<0.000000e+00> : vector<16xf32>
    %195 = vector.multi_reduction <add>, %194, %cst_73 [1] : vector<16x2xf32> to vector<16xf32>
    %196 = vector.shape_cast %195 : vector<16xf32> to vector<16x1xf32>
    %197 = arith.addf %196, %169 : vector<16x1xf32>
    %198 = arith.negf %197 : vector<16x1xf32>
    %199 = math.exp %198 : vector<16x1xf32>
    %cst_74 = arith.constant 1.000000e+00 : f32
    %200 = vector.broadcast %cst_74 : f32 to vector<16x1xf32>
    %201 = arith.addf %200, %199 : vector<16x1xf32>
    %202 = arith.divf %200, %201 : vector<16x1xf32>
    %203 = vector.broadcast %192 : vector<1x2xf32> to vector<16x2xf32>
    %204 = arith.mulf %203, %167 : vector<16x2xf32>
    %cst_75 = arith.constant dense<0.000000e+00> : vector<16xf32>
    %205 = vector.multi_reduction <add>, %204, %cst_75 [1] : vector<16x2xf32> to vector<16xf32>
    %206 = vector.shape_cast %205 : vector<16xf32> to vector<16x1xf32>
    %207 = arith.addf %206, %170 : vector<16x1xf32>
    %208 = arith.negf %207 : vector<16x1xf32>
    %209 = math.exp %208 : vector<16x1xf32>
    %cst_76 = arith.constant 1.000000e+00 : f32
    %210 = vector.broadcast %cst_76 : f32 to vector<16x1xf32>
    %211 = arith.addf %210, %209 : vector<16x1xf32>
    %212 = arith.divf %210, %211 : vector<16x1xf32>
    %c0_77 = arith.constant 0 : index
    %c0_78 = arith.constant 0 : index
    %213 = vector.load %arg0[%c0_77, %c0_78] : memref<32x512xf32, #tpu.memory_space<vmem>>, vector<16x256xf32>
    %214 = vector.broadcast %202 : vector<16x1xf32> to vector<16x256xf32>
    %215 = arith.mulf %171, %214 : vector<16x256xf32>
    %216 = arith.addf %213, %215 : vector<16x256xf32>
    %c0_79 = arith.constant 0 : index
    %c0_80 = arith.constant 0 : index
    %217 = vector.load %arg3[%c0_79, %c0_80] : memref<32x512xf32, #tpu.memory_space<vmem>>, vector<16x256xf32>
    tpu.vector_store %arg3[%c0_79, %c0_80], %216 {strides = array<i32>} : memref<32x512xf32, #tpu.memory_space<vmem>>, vector<16x256xf32>,
    %c16_81 = arith.constant 16 : index
    %c0_82 = arith.constant 0 : index
    %218 = vector.load %arg0[%c16_81, %c0_82] : memref<32x512xf32, #tpu.memory_space<vmem>>, vector<16x256xf32>
    %219 = vector.broadcast %212 : vector<16x1xf32> to vector<16x256xf32>
    %220 = arith.mulf %172, %219 : vector<16x256xf32>
    %221 = arith.addf %218, %220 : vector<16x256xf32>
    %c16_83 = arith.constant 16 : index
    %c0_84 = arith.constant 0 : index
    %222 = vector.load %arg3[%c16_83, %c0_84] : memref<32x512xf32, #tpu.memory_space<vmem>>, vector<16x256xf32>
    tpu.vector_store %arg3[%c16_83, %c0_84], %221 {strides = array<i32>} : memref<32x512xf32, #tpu.memory_space<vmem>>, vector<16x256xf32>,
    %223 = vector.extract_strided_slice %87 {offsets = [0, 256], sizes = [16, 256], strides = [1, 1]} : vector<16x512xf32> to vector<16x256xf32>
    %224 = vector.extract_strided_slice %163 {offsets = [0, 256], sizes = [16, 256], strides = [1, 1]} : vector<16x512xf32> to vector<16x256xf32>
    %cst_85 = arith.constant dense<0.000000e+00> : vector<16xf32>
    %225 = vector.multi_reduction <add>, %223, %cst_85 [1] : vector<16x256xf32> to vector<16xf32>
    %226 = vector.shape_cast %225 : vector<16xf32> to vector<16x1xf32>
    %cst_86 = arith.constant 3.906250e-03 : f32
    %227 = vector.broadcast %cst_86 : f32 to vector<16x1xf32>
    %228 = arith.mulf %226, %227 : vector<16x1xf32>
    %cst_87 = arith.constant dense<0.000000e+00> : vector<16xf32>
    %229 = vector.multi_reduction <add>, %224, %cst_87 [1] : vector<16x256xf32> to vector<16xf32>
    %230 = vector.shape_cast %229 : vector<16xf32> to vector<16x1xf32>
    %cst_88 = arith.constant 3.906250e-03 : f32
    %231 = vector.broadcast %cst_88 : f32 to vector<16x1xf32>
    %232 = arith.mulf %230, %231 : vector<16x1xf32>
    %233 = vector.broadcast %228 : vector<16x1xf32> to vector<16x2xf32>
    %234 = arith.mulf %233, %164 : vector<16x2xf32>
    %cst_89 = arith.constant dense<0.000000e+00> : vector<2xf32>
    %235 = vector.multi_reduction <add>, %234, %cst_89 [0] : vector<16x2xf32> to vector<2xf32>
    %236 = vector.shape_cast %235 : vector<2xf32> to vector<1x2xf32>
    %237 = vector.broadcast %232 : vector<16x1xf32> to vector<16x2xf32>
    %238 = arith.mulf %237, %165 : vector<16x2xf32>
    %cst_90 = arith.constant dense<0.000000e+00> : vector<2xf32>
    %239 = vector.multi_reduction <add>, %238, %cst_90 [0] : vector<16x2xf32> to vector<2xf32>
    %240 = vector.shape_cast %239 : vector<2xf32> to vector<1x2xf32>
    %241 = arith.addf %236, %240 : vector<1x2xf32>
    %242 = arith.addf %241, %168 : vector<1x2xf32>
    %cst_91 = arith.constant 0.000000e+00 : f32
    %243 = vector.broadcast %cst_91 : f32 to vector<1x2xf32>
    %244 = arith.maximumf %242, %243 : vector<1x2xf32>
    %245 = vector.broadcast %244 : vector<1x2xf32> to vector<16x2xf32>
    %246 = arith.mulf %245, %166 : vector<16x2xf32>
    %cst_92 = arith.constant dense<0.000000e+00> : vector<16xf32>
    %247 = vector.multi_reduction <add>, %246, %cst_92 [1] : vector<16x2xf32> to vector<16xf32>
    %248 = vector.shape_cast %247 : vector<16xf32> to vector<16x1xf32>
    %249 = arith.addf %248, %169 : vector<16x1xf32>
    %250 = arith.negf %249 : vector<16x1xf32>
    %251 = math.exp %250 : vector<16x1xf32>
    %cst_93 = arith.constant 1.000000e+00 : f32
    %252 = vector.broadcast %cst_93 : f32 to vector<16x1xf32>
    %253 = arith.addf %252, %251 : vector<16x1xf32>
    %254 = arith.divf %252, %253 : vector<16x1xf32>
    %255 = vector.broadcast %244 : vector<1x2xf32> to vector<16x2xf32>
    %256 = arith.mulf %255, %167 : vector<16x2xf32>
    %cst_94 = arith.constant dense<0.000000e+00> : vector<16xf32>
    %257 = vector.multi_reduction <add>, %256, %cst_94 [1] : vector<16x2xf32> to vector<16xf32>
    %258 = vector.shape_cast %257 : vector<16xf32> to vector<16x1xf32>
    %259 = arith.addf %258, %170 : vector<16x1xf32>
    %260 = arith.negf %259 : vector<16x1xf32>
    %261 = math.exp %260 : vector<16x1xf32>
    %cst_95 = arith.constant 1.000000e+00 : f32
    %262 = vector.broadcast %cst_95 : f32 to vector<16x1xf32>
    %263 = arith.addf %262, %261 : vector<16x1xf32>
    %264 = arith.divf %262, %263 : vector<16x1xf32>
    %c0_96 = arith.constant 0 : index
    %c256 = arith.constant 256 : index
    %265 = vector.load %arg0[%c0_96, %c256] : memref<32x512xf32, #tpu.memory_space<vmem>>, vector<16x256xf32>
    %266 = vector.broadcast %254 : vector<16x1xf32> to vector<16x256xf32>
    %267 = arith.mulf %223, %266 : vector<16x256xf32>
    %268 = arith.addf %265, %267 : vector<16x256xf32>
    %c0_97 = arith.constant 0 : index
    %c256_98 = arith.constant 256 : index
    %269 = vector.load %arg3[%c0_97, %c256_98] : memref<32x512xf32, #tpu.memory_space<vmem>>, vector<16x256xf32>
    tpu.vector_store %arg3[%c0_97, %c256_98], %268 {strides = array<i32>} : memref<32x512xf32, #tpu.memory_space<vmem>>, vector<16x256xf32>,
    %c16_99 = arith.constant 16 : index
    %c256_100 = arith.constant 256 : index
    %270 = vector.load %arg0[%c16_99, %c256_100] : memref<32x512xf32, #tpu.memory_space<vmem>>, vector<16x256xf32>
    %271 = vector.broadcast %264 : vector<16x1xf32> to vector<16x256xf32>
    %272 = arith.mulf %224, %271 : vector<16x256xf32>
    %273 = arith.addf %270, %272 : vector<16x256xf32>
    %c16_101 = arith.constant 16 : index
    %c256_102 = arith.constant 256 : index
    %274 = vector.load %arg3[%c16_101, %c256_102] : memref<32x512xf32, #tpu.memory_space<vmem>>, vector<16x256xf32>
    tpu.vector_store %arg3[%c16_101, %c256_102], %273 {strides = array<i32>} : memref<32x512xf32, #tpu.memory_space<vmem>>, vector<16x256xf32>,
    return
  }
}

</mosaic_0001>

<bundles_post_ra>
// kernel: tpu_custom_call.1
= control target key start
LH: loop header
LB: loop body
LE: loop exit
PB: predicated region body
PF: predicated region fallthrough
CT: control target
= control target key end

     0   :  { %8 = vsyncpa [#allocation3], 0  ;;  %s4404_s0 = inlined_call_operand.hbm [shape: f32[32,512], index: 0, kind: input, shape index: {}]   ;;  %s4405_s1 = inlined_call_operand.hbm [shape: f32[16,512], index: 1, kind: input, shape index: {}]   ;;  %s4406_s2 = inlined_call_operand.hbm [shape: f32[32,128], index: 2, kind: input, shape index: {}]   ;;  %s4407_s3 = inlined_call_operand.hbm [shape: f32[32,512], index: 3, kind: output, shape index: {}]  }
   0x1   :  { %9 = vsyncpa [#allocation6], 0 }
   0x2   :  { %10 = vsyncpa [#allocation4], 0  ;;  %s2298_s12 = smov [#allocation5]   ;;  %s2299_s14 = smov [#allocation2]  }
   0x3   :  { %s28_s13 = sshll.u32 %s2298_s12, 4  ;;  %s16_s15 = sshll.u32 %s2299_s14, 4  ;;  %s29_s13 = int_to_ptr.vmem [resolvable:$true] %s28_s13  ;;  %s2367_s15 = int_to_ptr.vmem [resolvable:$true] %s16_s15 }
   0x4   :  { %s2204_s18 = scalar_lea.hbm %s4405_s1, 1024 }
   0x5   :  { %p2205_p0 = scmp.ne.s32.totalorder %s4405_s1, %s2204_s18  ;;  %p2208_p1 = scmp.lt.u32.totalorder %s2204_s18, %s4405_s1 }
   0x7   :  { %p2210_p2 = pnand %p2208_p1, %p2205_p0 }
   0x9   :  { %2213 = shalt.err (!%p2210_p2)
}
   0xa   :  { %s2214_s23 = scalar_lea.vmem %s29_s13, 1024  ;;  %p2219_p4 = scmp.lt.s32.totalorder %s29_s13, %s29_s13 }
   0xb   :  { %p2215_p3 = scmp.ne.s32.totalorder %s29_s13, %s2214_s23  ;;  %p2220_p5 = scmp.lt.s32.totalorder %s2214_s23, %s2214_s23 }
   0xd   :  { %p2221_p6 = por %p2220_p5, %p2219_p4 }
   0xf   :  { %p2222_p7 = pnand %p2221_p6, %p2215_p3 }
  0x11   :  { %2225 = shalt.err (!%p2222_p7)
}
  0x12   :  { %s2300_s24 = smov 512   ;;  %s2301_s25 = smov 32  }
  0x13   :  { %34 = dma.hbm_to_vmem [thread:$0]  %s4405_s1, 1024, %s29_s13, [#allocation6], %s2300_s24, %s2300_s24, %s2301_s25  }
  0x14   :  { %s2226_s30 = scalar_lea.hbm %s4404_s0, 2048 }
  0x15   :  { %p2227_p8 = scmp.ne.s32.totalorder %s4404_s0, %s2226_s30  ;;  %p2230_p9 = scmp.lt.u32.totalorder %s2226_s30, %s4404_s0 }
  0x17   :  { %p2232_p10 = pnand %p2230_p9, %p2227_p8 }
  0x19   :  { %2235 = shalt.err (!%p2232_p10)
}
  0x1a   :  { %s2236_s8 = scalar_lea.vmem %s2367_s15, 2048  ;;  %p2241_p12 = scmp.lt.s32.totalorder %s2367_s15, %s2367_s15 }
  0x1b   :  { %p2237_p11 = scmp.ne.s32.totalorder %s2367_s15, %s2236_s8  ;;  %p2242_p13 = scmp.lt.s32.totalorder %s2236_s8, %s2236_s8 }
  0x1d   :  { %p2243_p0 = por %p2242_p13, %p2241_p12 }
  0x1f   :  { %p2244_p1 = pnand %p2243_p0, %p2237_p11 }
  0x21   :  { %2247 = shalt.err (!%p2244_p1)
}
  0x22   :  { %22 = dma.hbm_to_vmem [thread:$0]  %s4404_s0, 2048, %s2367_s15, [#allocation3], %s2300_s24, %s2300_s24, %s2301_s25  }
  0x23   :  { %s2302_s10 = smov [#allocation7]   ;;  %s2248_s14 = scalar_lea.hbm %s4406_s2, 512 }
  0x24   :  { %s40_s11 = sshll.u32 %s2302_s10, 4  ;;  %p2249_p2 = scmp.ne.s32.totalorder %s4406_s2, %s2248_s14  ;;  %s41_s11 = int_to_ptr.vmem [resolvable:$true] %s40_s11 }
  0x25   :  { %p2252_p3 = scmp.lt.u32.totalorder %s2248_s14, %s4406_s2 }
  0x27   :  { %p2254_p4 = pnand %p2252_p3, %p2249_p2 }
  0x29   :  { %2257 = shalt.err (!%p2254_p4)
}
  0x2a   :  { %s2258_s20 = scalar_lea.vmem %s41_s11, 512  ;;  %p2263_p6 = scmp.lt.s32.totalorder %s41_s11, %s41_s11 }
  0x2b   :  { %p2259_p5 = scmp.ne.s32.totalorder %s41_s11, %s2258_s20  ;;  %p2264_p7 = scmp.lt.s32.totalorder %s2258_s20, %s2258_s20 }
  0x2d   :  { %p2265_p8 = por %p2264_p7, %p2263_p6 }
  0x2f   :  { %p2266_p9 = pnand %p2265_p8, %p2259_p5 }
  0x31   :  { %2269 = shalt.err (!%p2266_p9)
}
  0x32   :  { %s2303_s0 = smov 128   ;;  %s2304_s15 = smov 8  }
  0x33   :  { %46 = dma.hbm_to_vmem [thread:$0]  %s4406_s2, 512, %s41_s11, [#allocation6], %s2303_s0, %s2303_s0, %s2304_s15  }
  0x34   :  { %2292 = dma.done.wait [#allocation3], 2048  }
  0x35   :  { %2293 = vsyncadd [#allocation3], 4294965248 }
  0x36   :  { %2294 = dma.done.wait [#allocation6], 1536  }
  0x37   :  { %2295 = vsyncadd [#allocation6], 4294965760  ;;  %v2305_v0 = vmov 0.0   ;;  %v2306_v1 = vmov 0   ;;  %v2418_v2 = vld [vmem:[#allocation7] sm:$0xff]  ;;  %v2420_v3 = vld [vmem:[#allocation7 + $0x8] sm:$0xff] }
  0x38   :  { %157 = vmatprep.mubr.f32.mxu0 %v2305_v0  ;;  %234 = vmatprep.mubr.f32.mxu1 %v2305_v0  ;;  %v59_v4 = vld [vmem:[#allocation2 + $0x8] sm:$0xff]  ;;  %s2307_s23 = smov 117   ;;  %v61_v6 = vld [vmem:[#allocation2 + $0x18] sm:$0xff]  ;;  %v58_v10 = vld [vmem:[#allocation2] sm:$0xff]  ;;  %v2308_v28 = vmov 1   ;;  %v2309_v29 = vmov 47  }
  0x39   :  { %2121 = vset.pattern.permute.xlu1 %v2306_v1  ;;  %2120 = vset.pattern.permute.xlu0 %v2306_v1  ;;  %v63_v5 = vld [vmem:[#allocation2 + $0x28] sm:$0xff]  ;;  %v65_v7 = vld [vmem:[#allocation2 + $0x38] sm:$0xff]  ;;  %v62_v11 = vld [vmem:[#allocation2 + $0x20] sm:$0xff]  ;;  %v2310_v30 = vmov 43   ;;  %v2311_v31 = vmov 44   ;;  %v2312_v32 = vmov 45  }
  0x3a   :  { %84 = vrot.lane.b32.xlu0 %v2418_v2, %s2307_s23  ;;  %86 = vrot.lane.b32.xlu1 %v2420_v3, %s2307_s23  ;;  %v2055_v8 = vpack.c.bf16 %v63_v5, %v59_v4  ;;  %v2063_v9 = vpack.c.bf16 %v65_v7, %v61_v6  ;;  %v60_v12 = vld [vmem:[#allocation2 + $0x10] sm:$0xff]  ;;  %v2057_v13 = vpack.c.bf16 %v62_v11, %v58_v10  ;;  %v67_v15 = vld [vmem:[#allocation2 + $0x48] sm:$0xff]  ;;  %v69_v19 = vld [vmem:[#allocation2 + $0x58] sm:$0xff]  ;;  %v2313_v33 = vmov 46   ;;  %s2328_s2 = smov 16   ;;  %s2329_s26 = smov 17  }
  0x3b   :  { %v64_v14 = vld [vmem:[#allocation2 + $0x30] sm:$0xff]  ;;  %v71_v16 = vld [vmem:[#allocation2 + $0x68] sm:$0xff]  ;;  %v73_v20 = vld [vmem:[#allocation2 + $0x78] sm:$0xff]  ;;  %v2314_v34 = vmov 48   ;;  %v2315_v35 = vmov 49   ;;  %v2316_v36 = vmov 50   ;;  %v4412_v10 = vlaneseq }
  0x3c   :  { %2056 = vmatprep.subr.bf16.mxu0 %v2055_v8  ;;  %2064 = vmatprep.subr.bf16.mxu1 %v2063_v9  ;;  %v2065_v17 = vpack.c.bf16 %v64_v14, %v60_v12  ;;  %v2059_v18 = vpack.c.bf16 %v71_v16, %v67_v15  ;;  %v66_v21 = vld [vmem:[#allocation2 + $0x40] sm:$0xff]  ;;  %v2067_v22 = vpack.c.bf16 %v73_v20, %v69_v19  ;;  %v68_v24 = vld [vmem:[#allocation2 + $0x50] sm:$0xff]  ;;  %v2317_v37 = vmov 51   ;;  %s2330_s27 = smov 15   ;;  %s2331_s28 = smov 1  }
  0x3d   :  { %2058 = vmatpush1.bf16.msra.mxu0 %v2057_v13  ;;  %v70_v23 = vld [vmem:[#allocation2 + $0x60] sm:$0xff]  ;;  %v72_v25 = vld [vmem:[#allocation2 + $0x70] sm:$0xff]  ;;  %v2318_v38 = vmov 56   ;;  %v2319_v39 = vmov 52   ;;  %v4410_v40 = vmov 2   ;;  %v2321_v41 = vmov 53  }
  0x3e   :  { %81 = vperm.xlu1 %2121, %v2420_v3   ;;  %2066 = vmatpush1.bf16.msra.mxu1 %v2065_v17  ;;  %v2061_v26 = vpack.c.bf16 %v70_v23, %v66_v21  ;;  %v2069_v27 = vpack.c.bf16 %v72_v25, %v68_v24  ;;  %v2322_v42 = vmov 54   ;;  %v4408_v43 = vmov 3   ;;  %s2332_s29 = smov 127   ;;  %s2333_s30 = smov 112  }
  0x3f   :  { %2060 = vmatprep.subr.bf16.mxu0 %v2059_v18  ;;  %2068 = vmatprep.subr.bf16.mxu1 %v2067_v22  ;;  %v2324_v44 = vmov 55   ;;  %v2325_v45 = vmov 57   ;;  %v2326_v46 = vmov 58   ;;  %v2327_v47 = vmov 59   ;;  %s2334_s4 = smov 34   ;;  %s2335_s5 = smov 113  }
  0x40   :  { %76 = vperm.xlu0 %2120, %v2418_v2   ;;  %vm88_vm0 = vcmask 261120   ;;  %v2520_v11 = vshrl.u32 %v4412_v10, 7  ;;  %v2522_v12 = vld [vmem:[#allocation5] ss:$8 sm:$0xf]  ;;  %s2336_s6 = smov 30  }
  0x41   :  { %2062 = vmatpush1.bf16.msra.mxu0 %v2061_v26  ;;  %s2337_s7 = smov 126   ;;  %v2559_v24 = vld [vmem:[#allocation5 + $0x2] ss:$8 sm:$0xf]  ;;  %s2338_s8 = smov 111  }
  0x42   :  { %2122 = vset.pattern.permute.xlu1 %v2308_v28  ;;  %2070 = vmatpush1.bf16.msra.mxu1 %v2069_v27  ;;  %v2525_v13 = vsub.s32 2, %v2520_v11  ;;  %v2544_v18 = vsub.s32 3, %v2520_v11  ;;  %4584 = vst [vmem:[#allocation20_spill] sm:$0xff] %v2559_v24  ;;  %s2339_s1 = smov 2   ;;  %s2340_s9 = smov 98  }
  0x43   :  { %256 = vperm.xlu1 %2122, %v2418_v2   ;;  %v2715_v10 = vld [vmem:[#allocation5 + $0x5] ss:$8 sm:$0xf]  ;;  %s2342_s10 = smov 96   ;;  %s2343_s11 = smov 94  }
  0x44   :  { %2123 = vset.pattern.permute.xlu0 %v2308_v28  ;;  %4578 = vst [vmem:[#allocation14_spill] sm:$0xff] %v2525_v13  ;;  %v2537_v16 = vrot.slane %v2522_v12, %v2525_v13  ;;  %4580 = vst [vmem:[#allocation16_spill] sm:$0xff] %v2544_v18  ;;  %v2552_v21 = vrot.slane %v2522_v12, %v2544_v18  ;;  %v2563_v25 = vrot.slane %v2559_v24, %v2525_v13  ;;  %s2344_s12 = smov 121   ;;  %s2346_s13 = smov [#allocation8]  }
  0x45   :  { %260 = vperm.xlu0 %2123, %v2420_v3   ;;  %v2567_v26 = vrot.slane %v2559_v24, %v2544_v18  ;;  %4613 = vst [vmem:[#allocation49_spill] sm:$0xff] %v2715_v10  ;;  %s2030_s14 = sshll.u32 %s2346_s13, 4  ;;  %s2031_s14 = int_to_ptr.vmem [resolvable:$true] %s2030_s14 }
  0x46   :  { %4579 = vst [vmem:[#allocation15_spill] sm:$0xff] %v2537_v16  ;;  %4583 = vst [vmem:[#allocation19_spill] sm:$0xff] %v2552_v21  ;;  %s2270_s16 = scalar_lea.vmem %s2031_s14, 2048  ;;  %p2275_p11 = scmp.lt.s32.totalorder %s2031_s14, %s2031_s14 }
  0x47   :  { %2124 = vset.pattern.permute.xlu1 %v2309_v29  ;;  %4585 = vst [vmem:[#allocation21_spill] sm:$0xff] %v2563_v25  ;;  %4586 = vst [vmem:[#allocation22_spill] sm:$0xff] %v2567_v26  ;;  %p2271_p10 = scmp.ne.s32.totalorder %s2031_s14, %s2270_s16  ;;  %p2276_p12 = scmp.lt.s32.totalorder %s2270_s16, %s2270_s16 }
  0x48   :  { %280 = vperm.xlu1 %2124, %v2418_v2  }
  0x49   :  { %2125 = vset.pattern.permute.xlu0 %v2310_v30  ;;  %p2277_p13 = por %p2276_p12, %p2275_p11 }
  0x4a   :  { %353 = vperm.xlu0 %2125, %v2418_v2  }
  0x4b   :  { %p2278_p0 = pnand %p2277_p13, %p2271_p10 }
  0x4c   :  { %284 = vperm.xlu1 %2124, %v2420_v3  }
  0x4e   :  { %2128 = vset.pattern.permute.xlu0 %v2311_v31 }
  0x4f   :  { %437 = vperm.xlu0 %2128, %v2420_v3  }
  0x50   :  { %2126 = vset.pattern.permute.xlu1 %v2310_v30 }
  0x51   :  { %357 = vperm.xlu1 %2126, %v2420_v3  }
  0x53   :  { %2129 = vset.pattern.permute.xlu0 %v2312_v32 }
  0x54   :  { %513 = vperm.xlu0 %2129, %v2418_v2  }
  0x55   :  { %2127 = vset.pattern.permute.xlu1 %v2311_v31 }
  0x56   :  { %433 = vperm.xlu1 %2127, %v2418_v2  }
  0x58   :  { %2132 = vset.pattern.permute.xlu0 %v2313_v33 }
  0x59   :  { %597 = vperm.xlu0 %2132, %v2420_v3  }
  0x5a   :  { %2130 = vset.pattern.permute.xlu1 %v2312_v32 }
  0x5b   :  { %517 = vperm.xlu1 %2130, %v2420_v3  }
  0x5d   :  { %2133 = vset.pattern.permute.xlu0 %v2314_v34 }
  0x5e   :  { %673 = vperm.xlu0 %2133, %v2418_v2  }
  0x5f   :  { %2131 = vset.pattern.permute.xlu1 %v2313_v33  ;;  %v2588_v33 = vld [vmem:[#allocation5 + $0x4] ss:$8 sm:$0xf] }
  0x60   :  { %593 = vperm.xlu1 %2131, %v2418_v2   ;;  %4590 = vst [vmem:[#allocation26_spill] sm:$0xff] %v2588_v33 }
  0x62   :  { %2136 = vset.pattern.permute.xlu0 %v2315_v35 }
  0x63   :  { %757 = vperm.xlu0 %2136, %v2420_v3  }
  0x64   :  { %2134 = vset.pattern.permute.xlu1 %v2314_v34 }
  0x65   :  { %677 = vperm.xlu1 %2134, %v2420_v3  }
  0x67   :  { %2137 = vset.pattern.permute.xlu0 %v2316_v36 }
  0x68   :  { %833 = vperm.xlu0 %2137, %v2418_v2  }
  0x69   :  { %2135 = vset.pattern.permute.xlu1 %v2315_v35  ;;  %v2594_v35 = vrot.slane %v2588_v33, %v2525_v13 }
  0x6a   :  { %753 = vperm.xlu1 %2135, %v2418_v2  }
  0x6b   :  { %4592 = vst [vmem:[#allocation28_spill] sm:$0xff] %v2594_v35 }
  0x6c   :  { %2140 = vset.pattern.permute.xlu0 %v2317_v37 }
  0x6d   :  { %917 = vperm.xlu0 %2140, %v2420_v3  }
  0x6e   :  { %2138 = vset.pattern.permute.xlu1 %v2316_v36  ;;  %v2598_v36 = vrot.slane %v2588_v33, %v2544_v18 }
  0x6f   :  { %837 = vperm.xlu1 %2138, %v2420_v3  }
  0x70   :  { %4593 = vst [vmem:[#allocation29_spill] sm:$0xff] %v2598_v36 }
  0x71   :  { %2144 = vset.pattern.permute.xlu0 %v2318_v38 }
  0x72   :  { %989 = vperm.xlu0 %2144, %v2420_v3  }
  0x73   :  { %2139 = vset.pattern.permute.xlu1 %v2317_v37 }
  0x74   :  { %913 = vperm.xlu1 %2139, %v2418_v2  }
  0x76   :  { %2145 = vset.pattern.permute.xlu0 %v2319_v39 }
  0x77   :  { %1057 = vperm.xlu0 %2145, %v2418_v2  }
  0x78   :  { %2141 = vset.pattern.permute.xlu1 %v4410_v40 }
  0x79   :  { %937 = vperm.xlu1 %2141, %v2418_v2  }
  0x7b   :  { %2147 = vset.pattern.permute.xlu0 %v2321_v41 }
  0x7c   :  { %1137 = vperm.xlu0 %2147, %v2418_v2  }
  0x7d   :  { %941 = vperm.xlu1 %2141, %v2420_v3  }
  0x80   :  { %2150 = vset.pattern.permute.xlu0 %v2322_v42 }
  0x81   :  { %2142 = vset.pattern.permute.xlu1 %v4408_v43  ;;  %1221 = vperm.xlu0 %2150, %v2420_v3  }
  0x82   :  { %965 = vperm.xlu1 %2142, %v2420_v3  }
  0x85   :  { %2152 = vset.pattern.permute.xlu0 %v2324_v44 }
  0x86   :  { %2143 = vset.pattern.permute.xlu1 %v2318_v38  ;;  %1301 = vperm.xlu0 %2152, %v2420_v3  }
  0x87   :  { %985 = vperm.xlu1 %2143, %v2418_v2  }
  0x8a   :  { %2153 = vset.pattern.permute.xlu0 %v2325_v45 }
  0x8b   :  { %2146 = vset.pattern.permute.xlu1 %v2319_v39  ;;  %1377 = vperm.xlu0 %2153, %v2418_v2   ;;  %v2612_v39 = vld [vmem:[#allocation5 + $0x6] ss:$8 sm:$0xf] }
  0x8c   :  { %1061 = vperm.xlu1 %2146, %v2420_v3   ;;  %4595 = vst [vmem:[#allocation31_spill] sm:$0xff] %v2612_v39 }
  0x8f   :  { %2156 = vset.pattern.permute.xlu0 %v2326_v46 }
  0x90   :  { %2148 = vset.pattern.permute.xlu1 %v2321_v41  ;;  %1461 = vperm.xlu0 %2156, %v2420_v3   ;;  %v2616_v41 = vrot.slane %v2612_v39, %v2525_v13 }
  0x91   :  { %1141 = vperm.xlu1 %2148, %v2420_v3  }
  0x92   :  { %4596 = vst [vmem:[#allocation32_spill] sm:$0xff] %v2616_v41 }
  0x94   :  { %2157 = vset.pattern.permute.xlu0 %v2327_v47 }
  0x95   :  { %2149 = vset.pattern.permute.xlu1 %v2322_v42  ;;  %1537 = vperm.xlu0 %2157, %v2418_v2   ;;  %v2620_v42 = vrot.slane %v2612_v39, %v2544_v18 }
  0x96   :  { %1217 = vperm.xlu1 %2149, %v2418_v2  }
  0x97   :  { %4597 = vst [vmem:[#allocation33_spill] sm:$0xff] %v2620_v42 }
  0x9a   :  { %2151 = vset.pattern.permute.xlu1 %v2324_v44 }
  0x9b   :  { %1297 = vperm.xlu1 %2151, %v2418_v2  }
  0x9f   :  { %2154 = vset.pattern.permute.xlu1 %v2325_v45 }
  0xa0   :  { %1381 = vperm.xlu1 %2154, %v2420_v3  }
  0xa4   :  { %2155 = vset.pattern.permute.xlu1 %v2326_v46 }
  0xa5   :  { %1457 = vperm.xlu1 %2155, %v2418_v2  }
  0xa9   :  { %2158 = vset.pattern.permute.xlu1 %v2327_v47 }
  0xaa   :  { %1541 = vperm.xlu1 %2158, %v2420_v3  }
  0xac   :  { %v85_v48 = vpop.permute.xlu0 %84  ;;  %v87_v49 = vpop.permute.xlu1 %86 }
  0xad   :  { %2043 = vmatmul.mubr.msk.f32.vlgmr.msra.gmra.mrb[0].mxu0 %vm88_vm0, %v85_v48  ;;  %2045 = vmatmul.mubr.msk.f32.vlgmr.msra.gmra.mrb[0].mxu1 %vm88_vm0, %v85_v48 }
  0xae   :  { %163 = vmatprep.mubr.f32.mxu0 %v2305_v0  ;;  %240 = vmatprep.mubr.f32.mxu1 %v2305_v0 }
  0xb1   :  { %2044 = vmatmul.mubr.msk.f32.gmra.mrb[2].mxu0 %vm88_vm0, %v87_v49  ;;  %2046 = vmatmul.mubr.msk.f32.gmra.mrb[2].mxu1 %vm88_vm0, %v87_v49 }
  0xbd   :  { %v2469_v50 = vpop.permute.xlu1 %81 }
  0xbf   :  { %v77_v53 = vpop.permute.xlu0 %76 }
  0xc2   :  { %v2471_v51 = vpop.permute.xlu1 %256 }
  0xc4   :  { %v2513_v9 = vpop.permute.xlu0 %260 }
  0xc7   :  { %v2473_v52 = vpop.permute.xlu1 %280 }
  0xc9   :  { %v2531_v15 = vpop.permute.xlu0 %353 }
  0xcb   :  { %v2475_v60 = vpop.permute.xlu1 %284 }
  0xce   :  { %v2548_v20 = vpop.permute.xlu0 %437 }
  0xcf   :  { %4582 = vst [vmem:[#allocation18_spill] sm:$0xff] %v2548_v20 }
  0xd0   :  { %v2493_v5 = vpop.permute.xlu1 %357 }
  0xd1   :  { %4576 = vst [vmem:[#allocation12_spill] sm:$0xff] %v2493_v5 }
  0xd3   :  { %v2576_v30 = vpop.permute.xlu0 %513 }
  0xd5   :  { %v2501_v7 = vpop.permute.xlu1 %433 }
  0xd8   :  { %v2590_v34 = vpop.permute.xlu0 %597 }
  0xd9   :  { %4591 = vst [vmem:[#allocation27_spill] sm:$0xff] %v2590_v34 }
  0xda   :  { %v2511_v8 = vpop.permute.xlu1 %517 }
  0xdb   :  { %4577 = vst [vmem:[#allocation13_spill] sm:$0xff] %v2511_v8 }
  0xdd   :  { %v2608_v38 = vpop.permute.xlu0 %673 }
  0xdf   :  { %v2527_v14 = vpop.permute.xlu1 %593 }
  0xe2   :  { %v2628_v45 = vpop.permute.xlu0 %757 }
  0xe3   :  { %4599 = vst [vmem:[#allocation35_spill] sm:$0xff] %v2628_v45 }
  0xe4   :  { %v2546_v19 = vpop.permute.xlu1 %677 }
  0xe5   :  { %4581 = vst [vmem:[#allocation17_spill] sm:$0xff] %v2546_v19 }
  0xe7   :  { %v2638_v47 = vpop.permute.xlu0 %833 }
  0xe8   :  { %4601 = vst [vmem:[#allocation37_spill] sm:$0xff] %v2638_v47 }
  0xe9   :  { %v2569_v27 = vpop.permute.xlu1 %753 }
  0xea   :  { %4587 = vst [vmem:[#allocation23_spill] sm:$0xff] %v2569_v27 }
  0xec   :  { %v2648_v49 = vpop.permute.xlu0 %917 }
  0xed   :  { %4603 = vst [vmem:[#allocation39_spill] sm:$0xff] %v2648_v49 }
  0xee   :  { %v2586_v32 = vpop.permute.xlu1 %837 }
  0xef   :  { %4589 = vst [vmem:[#allocation25_spill] sm:$0xff] %v2586_v32 }
  0xf3   :  { %v2604_v37 = vpop.permute.xlu1 %913 }
  0xf4   :  { %4594 = vst [vmem:[#allocation30_spill] sm:$0xff] %v2604_v37 }
  0xf8   :  { %v2626_v44 = vpop.permute.xlu1 %937 }
  0xf9   :  { %4598 = vst [vmem:[#allocation34_spill] sm:$0xff] %v2626_v44 }
  0xfc   :  { %v2634_v46 = vpop.permute.xlu1 %941 }
  0xfd   :  { %4600 = vst [vmem:[#allocation36_spill] sm:$0xff] %v2634_v46  ;;  %v2728_v46 = vrot.slane %v2715_v10, %v2544_v18 }
 0x101   :  { %v2646_v48 = vpop.permute.xlu1 %965 }
 0x102   :  { %4602 = vst [vmem:[#allocation38_spill] sm:$0xff] %v2646_v48 }
 0x180   :  { %v159_v54 = vpop.f32.mrb[0].mxu0  ;;  %v236_v55 = vpop.f32.mrb[0].mxu1 }
 0x181   :  { %v160_v56 = vadd.f32 %v159_v54, %v77_v53  ;;  %v237_v57 = vadd.f32 %v236_v55, %v77_v53  ;;  %v161_v58 = vpop.f32.mrb[1].mxu0  ;;  %v238_v59 = vpop.f32.mrb[1].mxu1 }
 0x182   :  { %v162_v17 = vadd.f32 %v161_v58, %v77_v53  ;;  %v239_v23 = vadd.f32 %v238_v59, %v77_v53  ;;  %v2656_v53 = vpop.permute.xlu1 %985  ;;  %v2664_v55 = vpop.permute.xlu0 %989 }
 0x183   :  { %vm247_vm1 = vcmp.ge.f32.partialorder %v160_v56, 0.0  ;;  %v263_v61 = vmul.f32 %v2471_v51, %v160_v56  ;;  %v265_v1 = vmul.f32 %v2471_v51, %v237_v57  ;;  %vm249_vm2 = vcmp.ge.f32.partialorder %v237_v57, 0.0  ;;  %4605 = vst [vmem:[#allocation41_spill] sm:$0xff] %v2656_v53 }
 0x184   :  { %v2478_v62 = vpop.f32.mrb[2].mxu0  ;;  %v2480_v63 = vpop.f32.mrb[2].mxu1  ;;  %v264_v22 = vmul.f32 %v2471_v51, %v162_v17  ;;  %vm248_vm3 = vcmp.ge.f32.partialorder %v162_v17, 0.0  ;;  %v266_v29 = vmul.f32 %v2471_v51, %v239_v23  ;;  %vm250_vm4 = vcmp.ge.f32.partialorder %v239_v23, 0.0 }
 0x185   :  { %v2482_v0 = vsel %vm247_vm1, %v160_v56, %v263_v61  ;;  %v2485_v2 = vpop.f32.mrb[3].mxu0  ;;  %v2487_v4 = vpop.f32.mrb[3].mxu1  ;;  %v2495_v6 = vsel %vm249_vm2, %v237_v57, %v265_v1  ;;  %v2654_v51 = vld [vmem:[#allocation5 + $0x1] ss:$8 sm:$0xf]  ;;  %v2341_v57 = vmov 60   ;;  %v243_v43 = vadd.f32 %v2480_v63, %v2469_v50 }
 0x186   :  { %376 = vrot.lane.b32.xlu1 %v2482_v0, %s2328_s2  ;;  %295 = vrot.lane.b32.xlu0 %v2482_v0, %s2329_s26  ;;  %v2571_v28 = vsel %vm248_vm3, %v162_v17, %v264_v22  ;;  %v2580_v31 = vsel %vm250_vm4, %v239_v23, %v266_v29  ;;  %4604 = vst [vmem:[#allocation40_spill] sm:$0xff] %v2654_v51  ;;  %v2670_v56 = vpop.permute.xlu1 %1061  ;;  %v2678_v59 = vpop.permute.xlu0 %1057  ;;  %v2682_v61 = vld [vmem:[#allocation5 + $0x3] ss:$8 sm:$0xf] }
 0x187   :  { %4588 = vst [vmem:[#allocation24_spill] sm:$0xff] %v2580_v31  ;;  %v2662_v54 = vrot.slane %v2654_v51, %v2525_v13  ;;  %4606 = vst [vmem:[#allocation42_spill] sm:$0xff] %v2670_v56  ;;  %2160 = vset.pattern.permute.xlu0 %v2341_v57  ;;  %v2674_v58 = vrot.slane %v2654_v51, %v2544_v18  ;;  %2159 = vset.pattern.permute.xlu1 %v2341_v57  ;;  %vm253_vm6 = vcmp.ge.f32.partialorder %v243_v43, 0.0 }
 0x188   :  { %4607 = vst [vmem:[#allocation43_spill] sm:$0xff] %v2678_v59  ;;  %4608 = vst [vmem:[#allocation44_spill] sm:$0xff] %v2682_v61  ;;  %v2688_v1 = vrot.slane %v2682_v61, %v2525_v13  ;;  %v166_v23 = vadd.f32 %v2478_v62, %v2469_v50  ;;  %v2702_v29 = vrot.slane %v2682_v61, %v2544_v18 }
 0x189   :  { %v269_v56 = vmul.f32 %v2513_v9, %v243_v43  ;;  %v2724_v63 = vrot.slane %v2715_v10, %v2525_v13 }
 0x18a   :  { %384 = vrot.lane.b32.xlu1 %v2495_v6, %s2328_s2  ;;  %303 = vrot.lane.b32.xlu0 %v2495_v6, %s2329_s26  ;;  %v2690_v17 = vpop.permute.xlu1 %1141  ;;  %v2692_v22 = vpop.permute.xlu0 %1137  ;;  %v267_v57 = vmul.f32 %v2513_v9, %v166_v23  ;;  %vm251_vm5 = vcmp.ge.f32.partialorder %v166_v23, 0.0 }
 0x18b   :  { %4609 = vst [vmem:[#allocation45_spill] sm:$0xff] %v2690_v17  ;;  %4610 = vst [vmem:[#allocation46_spill] sm:$0xff] %v2692_v22  ;;  %v2742_v17 = vld [vmem:[#allocation5 + $0x7] ss:$8 sm:$0xf] }
 0x18c   :  { %v2717_v48 = vsel %vm251_vm5, %v166_v23, %v267_v57  ;;  %v2736_v57 = vsel %vm253_vm6, %v243_v43, %v269_v56  ;;  %4616 = vst [vmem:[#allocation52_spill] sm:$0xff] %v2742_v17  ;;  %v2750_v49 = vrot.slane %v2742_v17, %v2525_v13  ;;  %v2754_v43 = vrot.slane %v2742_v17, %v2544_v18 }
 0x18e   :  { %456 = vrot.lane.b32.xlu1 %v2482_v0, %s2330_s27  ;;  %464 = vrot.lane.b32.xlu0 %v2495_v6, %s2330_s27  ;;  %v2709_v40 = vpop.permute.xlu1 %1217  ;;  %v2713_v62 = vpop.permute.xlu0 %1221 }
 0x18f   :  { %4611 = vst [vmem:[#allocation47_spill] sm:$0xff] %v2709_v40  ;;  %4612 = vst [vmem:[#allocation48_spill] sm:$0xff] %v2713_v62 }
 0x192   :  { %536 = vrot.lane.b32.xlu1 %v2482_v0, %s2331_s28  ;;  %624 = vrot.lane.b32.xlu0 %v2495_v6, %s2332_s29  ;;  %v2732_v62 = vpop.permute.xlu1 %1297  ;;  %v2734_v23 = vpop.permute.xlu0 %1301 }
 0x193   :  { %4614 = vst [vmem:[#allocation50_spill] sm:$0xff] %v2732_v62  ;;  %4615 = vst [vmem:[#allocation51_spill] sm:$0xff] %v2734_v23 }
 0x196   :  { %544 = vrot.lane.b32.xlu1 %v2495_v6, %s2331_s28  ;;  %784 = vrot.lane.b32.xlu0 %v2495_v6, %s2333_s30  ;;  %v2746_v32 = vpop.permute.xlu1 %1381  ;;  %v2758_v56 = vpop.permute.xlu0 %1377 }
 0x197   :  { %4617 = vst [vmem:[#allocation53_spill] sm:$0xff] %v2746_v32  ;;  %4618 = vst [vmem:[#allocation54_spill] sm:$0xff] %v2758_v56  ;;  %v168_v56 = vadd.f32 %v2485_v2, %v2469_v50 }
 0x199   :  { %v268_v59 = vmul.f32 %v2513_v9, %v168_v56  ;;  %vm252_vm7 = vcmp.ge.f32.partialorder %v168_v56, 0.0 }
 0x19a   :  { %616 = vrot.lane.b32.xlu1 %v2482_v0, %s2332_s29  ;;  %1008 = vrot.lane.b32.xlu0 %v2495_v6, %s2334_s4  ;;  %v2764_v32 = vpop.permute.xlu1 %1457  ;;  %v2766_v23 = vpop.permute.xlu0 %1461 }
 0x19b   :  { %4619 = vst [vmem:[#allocation55_spill] sm:$0xff] %v2764_v32  ;;  %4620 = vst [vmem:[#allocation56_spill] sm:$0xff] %v2766_v23  ;;  %v2841_v17 = vsel %vm252_vm7, %v168_v56, %v268_v59 }
 0x19e   :  { %696 = vrot.lane.b32.xlu1 %v2482_v0, %s2335_s5  ;;  %1168 = vrot.lane.b32.xlu0 %v2495_v6, %s2336_s6  ;;  %v2774_v45 = vpop.permute.xlu1 %1541  ;;  %v2778_v19 = vpop.permute.xlu0 %1537 }
 0x19f   :  { %4621 = vst [vmem:[#allocation57_spill] sm:$0xff] %v2774_v45  ;;  %4622 = vst [vmem:[#allocation58_spill] sm:$0xff] %v2778_v19 }
 0x1a2   :  { %704 = vrot.lane.b32.xlu1 %v2495_v6, %s2335_s5  ;;  %1328 = vrot.lane.b32.xlu0 %v2495_v6, %s2337_s7 }
 0x1a6   :  { %776 = vrot.lane.b32.xlu1 %v2482_v0, %s2333_s30  ;;  %299 = vrot.lane.b32.xlu0 %v2571_v28, %s2329_s26 }
 0x1aa   :  { %856 = vrot.lane.b32.xlu1 %v2482_v0, %s2338_s8  ;;  %307 = vrot.lane.b32.xlu0 %v2580_v31, %s2329_s26 }
 0x1ae   :  { %864 = vrot.lane.b32.xlu1 %v2495_v6, %s2338_s8  ;;  %460 = vrot.lane.b32.xlu0 %v2571_v28, %s2330_s27 }
 0x1b2   :  { %1000 = vrot.lane.b32.xlu1 %v2482_v0, %s2334_s4  ;;  %468 = vrot.lane.b32.xlu0 %v2580_v31, %s2330_s27 }
 0x1b6   :  { %1080 = vrot.lane.b32.xlu1 %v2482_v0, %s2301_s25  ;;  %620 = vrot.lane.b32.xlu0 %v2571_v28, %s2332_s29 }
 0x1ba   :  { %1088 = vrot.lane.b32.xlu1 %v2495_v6, %s2301_s25  ;;  %628 = vrot.lane.b32.xlu0 %v2580_v31, %s2332_s29 }
 0x1be   :  { %1160 = vrot.lane.b32.xlu1 %v2482_v0, %s2336_s6  ;;  %780 = vrot.lane.b32.xlu0 %v2571_v28, %s2333_s30 }
 0x1c2   :  { %1240 = vrot.lane.b32.xlu1 %v2482_v0, %s2339_s1  ;;  %788 = vrot.lane.b32.xlu0 %v2580_v31, %s2333_s30 }
 0x1c6   :  { %1248 = vrot.lane.b32.xlu1 %v2495_v6, %s2339_s1  ;;  %1004 = vrot.lane.b32.xlu0 %v2571_v28, %s2334_s4 }
 0x1ca   :  { %1320 = vrot.lane.b32.xlu1 %v2482_v0, %s2337_s7  ;;  %1012 = vrot.lane.b32.xlu0 %v2580_v31, %s2334_s4 }
 0x1ce   :  { %1400 = vrot.lane.b32.xlu1 %v2482_v0, %s2340_s9  ;;  %1164 = vrot.lane.b32.xlu0 %v2571_v28, %s2336_s6 }
 0x1d2   :  { %1408 = vrot.lane.b32.xlu1 %v2495_v6, %s2340_s9  ;;  %1172 = vrot.lane.b32.xlu0 %v2580_v31, %s2336_s6 }
 0x1d6   :  { %380 = vrot.lane.b32.xlu1 %v2571_v28, %s2328_s2  ;;  %1324 = vrot.lane.b32.xlu0 %v2571_v28, %s2337_s7 }
 0x1da   :  { %388 = vrot.lane.b32.xlu1 %v2580_v31, %s2328_s2  ;;  %1332 = vrot.lane.b32.xlu0 %v2580_v31, %s2337_s7 }
 0x1de   :  { %540 = vrot.lane.b32.xlu1 %v2571_v28, %s2331_s28  ;;  %378 = vrot.lane.b32.xlu0 %v2717_v48, %s2328_s2 }
 0x1e2   :  { %548 = vrot.lane.b32.xlu1 %v2580_v31, %s2331_s28  ;;  %386 = vrot.lane.b32.xlu0 %v2736_v57, %s2328_s2 }
 0x1e6   :  { %700 = vrot.lane.b32.xlu1 %v2571_v28, %s2335_s5  ;;  %538 = vrot.lane.b32.xlu0 %v2717_v48, %s2331_s28 }
 0x1ea   :  { %708 = vrot.lane.b32.xlu1 %v2580_v31, %s2335_s5  ;;  %546 = vrot.lane.b32.xlu0 %v2736_v57, %s2331_s28 }
 0x1ee   :  { %860 = vrot.lane.b32.xlu1 %v2571_v28, %s2338_s8  ;;  %698 = vrot.lane.b32.xlu0 %v2717_v48, %s2335_s5 }
 0x1f2   :  { %868 = vrot.lane.b32.xlu1 %v2580_v31, %s2338_s8  ;;  %706 = vrot.lane.b32.xlu0 %v2736_v57, %s2335_s5 }
 0x1f6   :  { %1084 = vrot.lane.b32.xlu1 %v2571_v28, %s2301_s25  ;;  %858 = vrot.lane.b32.xlu0 %v2717_v48, %s2338_s8 }
 0x1f8   :  { %v2784_v23 = vpop.permute.xlu1 %376  ;;  %v2786_v8 = vpop.permute.xlu0 %295 }
 0x1f9   :  { %4623 = vst [vmem:[#allocation59_spill] sm:$0xff] %v2784_v23  ;;  %4624 = vst [vmem:[#allocation60_spill] sm:$0xff] %v2786_v8 }
 0x1fa   :  { %1092 = vrot.lane.b32.xlu1 %v2580_v31, %s2301_s25  ;;  %866 = vrot.lane.b32.xlu0 %v2736_v57, %s2338_s8 }
 0x1fc   :  { %v2792_v45 = vpop.permute.xlu1 %384  ;;  %v2794_v34 = vpop.permute.xlu0 %303 }
 0x1fe   :  { %1244 = vrot.lane.b32.xlu1 %v2571_v28, %s2339_s1  ;;  %1082 = vrot.lane.b32.xlu0 %v2717_v48, %s2301_s25 }
 0x200   :  { %v2800_v19 = vpop.permute.xlu1 %456  ;;  %v2802_v32 = vpop.permute.xlu0 %464 }
 0x201   :  { %4625 = vst [vmem:[#allocation61_spill] sm:$0xff] %v2800_v19 }
 0x202   :  { %1252 = vrot.lane.b32.xlu1 %v2580_v31, %s2339_s1  ;;  %1242 = vrot.lane.b32.xlu0 %v2717_v48, %s2339_s1 }
 0x204   :  { %v2808_v20 = vpop.permute.xlu1 %536  ;;  %v2810_v5 = vpop.permute.xlu0 %624 }
 0x205   :  { %4626 = vst [vmem:[#allocation62_spill] sm:$0xff] %v2808_v20  ;;  %v245_v20 = vadd.f32 %v2487_v4, %v2469_v50 }
 0x206   :  { %1404 = vrot.lane.b32.xlu1 %v2571_v28, %s2340_s9  ;;  %1250 = vrot.lane.b32.xlu0 %v2736_v57, %s2339_s1 }
 0x207   :  { %vm254_vm8 = vcmp.ge.f32.partialorder %v245_v20, 0.0 }
 0x208   :  { %v2816_v62 = vpop.permute.xlu1 %544  ;;  %v2818_v44 = vpop.permute.xlu0 %784 }
 0x20a   :  { %1412 = vrot.lane.b32.xlu1 %v2580_v31, %s2340_s9  ;;  %1402 = vrot.lane.b32.xlu0 %v2717_v48, %s2340_s9 }
 0x20c   :  { %v2826_v40 = vpop.permute.xlu1 %616  ;;  %v2828_v22 = vpop.permute.xlu0 %1008 }
 0x20d   :  { %4627 = vst [vmem:[#allocation63_spill] sm:$0xff] %v2828_v22  ;;  %v270_v22 = vmul.f32 %v2513_v9, %v245_v20 }
 0x20e   :  { %297 = vrot.lane.b32.xlu1 %v2717_v48, %s2329_s26  ;;  %1410 = vrot.lane.b32.xlu0 %v2736_v57, %s2340_s9 }
 0x20f   :  { %v2852_v10 = vsel %vm254_vm8, %v245_v20, %v270_v22 }
 0x210   :  { %v2837_v2 = vpop.permute.xlu1 %696  ;;  %v2839_v19 = vpop.permute.xlu0 %1168 }
 0x211   :  { %4628 = vst [vmem:[#allocation64_spill] sm:$0xff] %v2839_v19 }
 0x212   :  { %305 = vrot.lane.b32.xlu1 %v2736_v57, %s2329_s26  ;;  %382 = vrot.lane.b32.xlu0 %v2841_v17, %s2328_s2 }
 0x214   :  { %v2848_v50 = vpop.permute.xlu1 %704  ;;  %v2850_v4 = vpop.permute.xlu0 %1328 }
 0x215   :  { %4629 = vst [vmem:[#allocation65_spill] sm:$0xff] %v2850_v4 }
 0x216   :  { %458 = vrot.lane.b32.xlu1 %v2717_v48, %s2330_s27  ;;  %390 = vrot.lane.b32.xlu0 %v2852_v10, %s2328_s2 }
 0x218   :  { %v2858_v9 = vpop.permute.xlu1 %776  ;;  %v2860_v59 = vpop.permute.xlu0 %299 }
 0x219   :  { %4630 = vst [vmem:[#allocation66_spill] sm:$0xff] %v2860_v59 }
 0x21a   :  { %466 = vrot.lane.b32.xlu1 %v2736_v57, %s2330_s27  ;;  %542 = vrot.lane.b32.xlu0 %v2841_v17, %s2331_s28 }
 0x21c   :  { %v2866_v56 = vpop.permute.xlu1 %856  ;;  %v2868_v20 = vpop.permute.xlu0 %307 }
 0x21d   :  { %4631 = vst [vmem:[#allocation67_spill] sm:$0xff] %v2866_v56  ;;  %4632 = vst [vmem:[#allocation68_spill] sm:$0xff] %v2868_v20 }
 0x21e   :  { %618 = vrot.lane.b32.xlu1 %v2717_v48, %s2332_s29  ;;  %550 = vrot.lane.b32.xlu0 %v2852_v10, %s2331_s28 }
 0x220   :  { %v2874_v22 = vpop.permute.xlu1 %864  ;;  %v2876_v4 = vpop.permute.xlu0 %460 }
 0x221   :  { %4633 = vst [vmem:[#allocation69_spill] sm:$0xff] %v2874_v22  ;;  %4634 = vst [vmem:[#allocation70_spill] sm:$0xff] %v2876_v4 }
 0x222   :  { %626 = vrot.lane.b32.xlu1 %v2736_v57, %s2332_s29  ;;  %702 = vrot.lane.b32.xlu0 %v2841_v17, %s2335_s5 }
 0x224   :  { %v2882_v19 = vpop.permute.xlu1 %1000  ;;  %v2884_v61 = vpop.permute.xlu0 %468 }
 0x225   :  { %4635 = vst [vmem:[#allocation71_spill] sm:$0xff] %v2882_v19 }
 0x226   :  { %778 = vrot.lane.b32.xlu1 %v2717_v48, %s2333_s30  ;;  %710 = vrot.lane.b32.xlu0 %v2852_v10, %s2335_s5 }
 0x228   :  { %v2890_v23 = vpop.permute.xlu1 %1080  ;;  %v2892_v51 = vpop.permute.xlu0 %620 }
 0x229   :  { %4636 = vst [vmem:[#allocation72_spill] sm:$0xff] %v2890_v23  ;;  %4637 = vst [vmem:[#allocation73_spill] sm:$0xff] %v2892_v51 }
 0x22a   :  { %786 = vrot.lane.b32.xlu1 %v2736_v57, %s2333_s30  ;;  %862 = vrot.lane.b32.xlu0 %v2841_v17, %s2338_s8 }
 0x22c   :  { %v2898_v8 = vpop.permute.xlu1 %1088  ;;  %v2900_v19 = vpop.permute.xlu0 %628 }
 0x22d   :  { %4638 = vst [vmem:[#allocation74_spill] sm:$0xff] %v2898_v8 }
 0x22e   :  { %1002 = vrot.lane.b32.xlu1 %v2717_v48, %s2334_s4  ;;  %870 = vrot.lane.b32.xlu0 %v2852_v10, %s2338_s8 }
 0x230   :  { %v2906_v18 = vpop.permute.xlu1 %1160  ;;  %v2908_v23 = vpop.permute.xlu0 %780 }
 0x231   :  { %4639 = vst [vmem:[#allocation75_spill] sm:$0xff] %v2906_v18  ;;  %4640 = vst [vmem:[#allocation76_spill] sm:$0xff] %v2908_v23  ;;  %v4644_v23 = vlaneseq }
 0x232   :  { %1010 = vrot.lane.b32.xlu1 %v2736_v57, %s2334_s4  ;;  %1086 = vrot.lane.b32.xlu0 %v2841_v17, %s2301_s25 }
 0x233   :  { %v2927_v39 = vand.u32 127, %v4644_v23 }
 0x234   :  { %v2914_v51 = vpop.permute.xlu1 %1240  ;;  %v2916_v8 = vpop.permute.xlu0 %788 }
 0x235   :  { %4641 = vst [vmem:[#allocation77_spill] sm:$0xff] %v2914_v51  ;;  %vm313_vm9 = vcmp.lt.s32.totalorder %v2927_v39, 17  ;;  %vm472_vm10 = vcmp.lt.s32.totalorder %v2927_v39, 15  ;;  %vm392_vm11 = vcmp.lt.s32.totalorder %v2927_v39, 16  ;;  %vm552_vm12 = vcmp.lt.s32.totalorder %v2927_v39, 1 }
 0x236   :  { %1090 = vrot.lane.b32.xlu1 %v2736_v57, %s2301_s25  ;;  %1094 = vrot.lane.b32.xlu0 %v2852_v10, %s2301_s25  ;;  %vm632_vm13 = vcmp.lt.s32.totalorder %v2927_v39, 127  ;;  %vm792_vm14 = vcmp.lt.s32.totalorder %v2927_v39, 112  ;;  %vm712_vm15 = vcmp.lt.s32.totalorder %v2927_v39, 113  ;;  %vm872_vm0 = vcmp.lt.s32.totalorder %v2927_v39, 111 }
 0x237   :  { %vm1016_vm1 = vcmp.lt.s32.totalorder %v2927_v39, 34  ;;  %vm1096_vm2 = vcmp.lt.s32.totalorder %v2927_v39, 32  ;;  %vm1176_vm3 = vcmp.lt.s32.totalorder %v2927_v39, 30  ;;  %vm1256_vm4 = vcmp.lt.s32.totalorder %v2927_v39, 2 }
 0x238   :  { %v2922_v13 = vpop.permute.xlu1 %1248  ;;  %v2924_v18 = vpop.permute.xlu0 %1004  ;;  %vm1336_vm5 = vcmp.lt.s32.totalorder %v2927_v39, 126  ;;  %vm1416_vm6 = vcmp.lt.s32.totalorder %v2927_v39, 98  ;;  %vm1496_vm7 = vcmp.lt.s32.totalorder %v2927_v39, 96  ;;  %vm1576_vm8 = vcmp.lt.s32.totalorder %v2927_v39, 94 }
 0x239   :  { %4642 = vst [vmem:[#allocation78_spill] sm:$0xff] %v2922_v13  ;;  %4643 = vst [vmem:[#allocation79_spill] sm:$0xff] %v2924_v18  ;;  %v316_v13 = vsel %vm313_vm9, %v2860_v59, %v2794_v34 }
 0x23a   :  { %1162 = vrot.lane.b32.xlu1 %v2717_v48, %s2336_s6  ;;  %1246 = vrot.lane.b32.xlu0 %v2841_v17, %s2339_s1 }
 0x23c   :  { %v2933_v51 = vpop.permute.xlu1 %1320  ;;  %v2935_v33 = vpop.permute.xlu0 %1012 }
 0x23d   :  { %4645 = vst [vmem:[#allocation80_spill] sm:$0xff] %v2933_v51  ;;  %4646 = vst [vmem:[#allocation81_spill] sm:$0xff] %v2935_v33  ;;  %v346_v51 = vmul.f32 %v2537_v16, %v316_v13 }
 0x23e   :  { %1170 = vrot.lane.b32.xlu1 %v2736_v57, %s2336_s6  ;;  %1254 = vrot.lane.b32.xlu0 %v2852_v10, %s2339_s1 }
 0x23f   :  { %v362_v13 = vmul.f32 %v2531_v15, %v346_v51 }
 0x240   :  { %v2942_v23 = vpop.permute.xlu1 %1400  ;;  %v2948_v18 = vpop.permute.xlu0 %1164 }
 0x241   :  { %4647 = vst [vmem:[#allocation82_spill] sm:$0xff] %v2942_v23  ;;  %4648 = vst [vmem:[#allocation83_spill] sm:$0xff] %v2948_v18  ;;  %v314_v23 = vsel %vm313_vm9, %v2794_v34, %v2868_v20  ;;  %v475_v34 = vsel %vm472_vm10, %v2876_v4, %v2802_v32  ;;  %v289_v20 = vmul.f32 %v2473_v52, %v2495_v6 }
 0x242   :  { %1322 = vrot.lane.b32.xlu1 %v2717_v48, %s2337_s7  ;;  %1406 = vrot.lane.b32.xlu0 %v2841_v17, %s2340_s9  ;;  %v347_v16 = vmul.f32 %v2552_v21, %v314_v23  ;;  %v506_v23 = vmul.f32 %v2563_v25, %v475_v34  ;;  %v473_v21 = vsel %vm472_vm10, %v2802_v32, %v2884_v61 }
 0x243   :  { %v370_v4 = vadd.f32 %v362_v13, %v289_v20  ;;  %v507_v32 = vmul.f32 %v2567_v26, %v473_v21  ;;  %v633_v21 = vsel %vm632_vm13, %v2810_v5, %v2900_v19  ;;  %v4654_v13 = vmov 2  }
 0x244   :  { %v2955_v33 = vpop.permute.xlu1 %1408  ;;  %v2962_v59 = vpop.permute.xlu0 %1172 }
 0x245   :  { %4649 = vst [vmem:[#allocation84_spill] sm:$0xff] %v2955_v33  ;;  %4650 = vst [vmem:[#allocation85_spill] sm:$0xff] %v2962_v59 }
 0x246   :  { %1330 = vrot.lane.b32.xlu1 %v2736_v57, %s2337_s7  ;;  %1414 = vrot.lane.b32.xlu0 %v2852_v10, %s2340_s9 }
 0x248   :  { %v2975_v33 = vpop.permute.xlu1 %380  ;;  %v2981_v18 = vpop.permute.xlu0 %1324 }
 0x249   :  { %4651 = vst [vmem:[#allocation86_spill] sm:$0xff] %v2975_v33  ;;  %v395_v59 = vsel %vm392_vm11, %v2975_v33, %v2792_v45  ;;  %4652 = vst [vmem:[#allocation87_spill] sm:$0xff] %v2981_v18  ;;  %v363_v18 = vmul.f32 %v2531_v15, %v347_v16  ;;  %v522_v16 = vmul.f32 %v2576_v30, %v506_v23 }
 0x24a   :  { %v426_v51 = vmul.f32 %v2662_v54, %v395_v59  ;;  %301 = vrot.lane.b32.xlu1 %v2841_v17, %s2329_s26  ;;  %1621 = vperm.xlu0 %2160, %v2420_v3   ;;  %v290_v59 = vmul.f32 %v2473_v52, %v2580_v31 }
 0x24c   :  { %v442_v33 = vmul.f32 %v2501_v7, %v426_v51  ;;  %v2996_v24 = vpop.permute.xlu1 %388  ;;  %v3004_v25 = vpop.permute.xlu0 %1332 }
 0x24d   :  { %v393_v34 = vsel %vm392_vm11, %v2792_v45, %v2996_v24  ;;  %4653 = vst [vmem:[#allocation88_spill] sm:$0xff] %v3004_v25  ;;  %v371_v45 = vadd.f32 %v363_v18, %v290_v59  ;;  %v523_v18 = vmul.f32 %v2576_v30, %v507_v32 }
 0x24e   :  { %v450_v3 = vadd.f32 %v442_v33, %v370_v4  ;;  %v427_v20 = vmul.f32 %v2674_v58, %v393_v34  ;;  %309 = vrot.lane.b32.xlu1 %v2852_v10, %s2329_s26  ;;  %1484 = vrot.lane.b32.xlu0 %v2571_v28, %s2342_s10 }
 0x24f   :  { %2161 = vset.pattern.permute.xlu0 %v4654_v13 }
 0x250   :  { %v443_v33 = vmul.f32 %v2501_v7, %v427_v20  ;;  %v3020_v4 = vpop.permute.xlu1 %540  ;;  %v530_v51 = vadd.f32 %v522_v16, %v450_v3  ;;  %v3027_v34 = vpop.permute.xlu0 %378  ;;  %v639_v20 = vsel %vm632_vm13, %v2900_v19, %v2826_v40  ;;  %v666_v3 = vmul.f32 %v2594_v35, %v633_v21 }
 0x251   :  { %v555_v23 = vsel %vm552_vm12, %v3020_v4, %v2816_v62  ;;  %4655 = vst [vmem:[#allocation89_spill] sm:$0xff] %v3027_v34  ;;  %v667_v19 = vmul.f32 %v2598_v36, %v639_v20 }
 0x252   :  { %v451_v59 = vadd.f32 %v443_v33, %v371_v45  ;;  %462 = vrot.lane.b32.xlu1 %v2841_v17, %s2330_s27  ;;  %v586_v16 = vmul.f32 %v2688_v1, %v555_v23  ;;  %1488 = vrot.lane.b32.xlu0 %v2495_v6, %s2342_s10  ;;  %v682_v23 = vmul.f32 %v2608_v38, %v666_v3 }
 0x253   :  { %v683_v20 = vmul.f32 %v2608_v38, %v667_v19  ;;  %v799_v3 = vsel %vm792_vm14, %v2916_v8, %v2858_v9 }
 0x254   :  { %v3040_v26 = vpop.permute.xlu1 %548  ;;  %v531_v34 = vadd.f32 %v523_v18, %v451_v59  ;;  %v602_v32 = vmul.f32 %v2527_v14, %v586_v16  ;;  %v3047_v33 = vpop.permute.xlu0 %386 }
 0x255   :  { %v553_v45 = vsel %vm552_vm12, %v2816_v62, %v3040_v26 }
 0x256   :  { %v587_v21 = vmul.f32 %v2702_v29, %v553_v45  ;;  %470 = vrot.lane.b32.xlu1 %v2852_v10, %s2330_s27  ;;  %v610_v35 = vadd.f32 %v602_v32, %v530_v51  ;;  %1492 = vrot.lane.b32.xlu0 %v2580_v31, %s2342_s10  ;;  %v793_v51 = vsel %vm792_vm14, %v2818_v44, %v2916_v8 }
 0x257   :  { %v826_v8 = vmul.f32 %v2616_v41, %v793_v51 }
 0x258   :  { %v603_v18 = vmul.f32 %v2527_v14, %v587_v21  ;;  %v3057_v59 = vpop.permute.xlu1 %700  ;;  %v3059_v62 = vpop.permute.xlu0 %538  ;;  %v690_v16 = vadd.f32 %v682_v23, %v610_v35  ;;  %v827_v23 = vmul.f32 %v2620_v42, %v799_v3 }
 0x259   :  { %4656 = vst [vmem:[#allocation90_spill] sm:$0xff] %v3059_v62  ;;  %v842_v51 = vmul.f32 %v2638_v47, %v826_v8 }
 0x25a   :  { %v611_v45 = vadd.f32 %v603_v18, %v531_v34  ;;  %622 = vrot.lane.b32.xlu1 %v2841_v17, %s2332_s29  ;;  %1560 = vrot.lane.b32.xlu0 %v2482_v0, %s2343_s11  ;;  %v843_v3 = vmul.f32 %v2638_v47, %v827_v23 }
 0x25c   :  { %v709_v35 = vpop.permute.xlu1 %708  ;;  %v691_v34 = vadd.f32 %v683_v20, %v611_v45  ;;  %v3082_v21 = vpop.permute.xlu0 %546 }
 0x25d   :  { %v713_v32 = vsel %vm712_vm15, %v2848_v50, %v709_v35  ;;  %v719_v19 = vsel %vm712_vm15, %v709_v35, %v2837_v2 }
 0x25e   :  { %v746_v18 = vmul.f32 %v2724_v63, %v713_v32  ;;  %v747_v36 = vmul.f32 %v2728_v46, %v719_v19  ;;  %630 = vrot.lane.b32.xlu1 %v2852_v10, %s2332_s29  ;;  %1564 = vrot.lane.b32.xlu0 %v2571_v28, %s2343_s11 }
 0x260   :  { %v762_v20 = vmul.f32 %v2569_v27, %v746_v18  ;;  %v763_v45 = vmul.f32 %v2569_v27, %v747_v36  ;;  %v3094_v35 = vpop.permute.xlu1 %860  ;;  %v3096_v62 = vpop.permute.xlu0 %698 }
 0x261   :  { %4657 = vst [vmem:[#allocation91_spill] sm:$0xff] %v3094_v35  ;;  %4658 = vst [vmem:[#allocation92_spill] sm:$0xff] %v3096_v62 }
 0x262   :  { %v770_v32 = vadd.f32 %v762_v20, %v690_v16  ;;  %v771_v19 = vadd.f32 %v763_v45, %v691_v34  ;;  %782 = vrot.lane.b32.xlu1 %v2841_v17, %s2333_s30  ;;  %1568 = vrot.lane.b32.xlu0 %v2495_v6, %s2343_s11 }
 0x264   :  { %v869_v18 = vpop.permute.xlu1 %868  ;;  %v850_v36 = vadd.f32 %v842_v51, %v770_v32  ;;  %v851_v42 = vadd.f32 %v843_v3, %v771_v19  ;;  %v3111_v34 = vpop.permute.xlu0 %706  ;;  %v3123_v3 = vld [vmem:[#allocation7 + $0x10] sm:$0xff] }
 0x265   :  { %v873_v41 = vsel %vm872_vm0, %v2874_v22, %v869_v18  ;;  %v879_v16 = vsel %vm872_vm0, %v869_v18, %v2866_v56  ;;  %4659 = vst [vmem:[#allocation93_spill] sm:$0xff] %v3111_v34  ;;  %4661 = vst [vmem:[#allocation95_spill] sm:$0xff] %v3123_v3  ;;  %v4731_v22 = vld [vmem:[#allocation86_spill] sm:$0xff] }
 0x266   :  { %v906_v8 = vmul.f32 %v2750_v49, %v873_v41  ;;  %v907_v23 = vmul.f32 %v2754_v43, %v879_v16  ;;  %790 = vrot.lane.b32.xlu1 %v2852_v10, %s2333_s30  ;;  %1572 = vrot.lane.b32.xlu0 %v2580_v31, %s2343_s11 }
 0x268   :  { %v922_v20 = vmul.f32 %v2604_v37, %v906_v8  ;;  %v923_v45 = vmul.f32 %v2604_v37, %v907_v23  ;;  %v3121_v51 = vpop.permute.xlu1 %1084  ;;  %v3125_v32 = vpop.permute.xlu0 %858  ;;  %v4665_v8 = vmov 3   ;;  %v2199_v23 = vld [vmem:[#allocation7] sm:$0xff] }
 0x269   :  { %4660 = vst [vmem:[#allocation94_spill] sm:$0xff] %v3121_v51 }
 0x26a   :  { %v3127_v19 = vadd.f32 %v922_v20, %v850_v36  ;;  %v3129_v41 = vadd.f32 %v923_v45, %v851_v42  ;;  %1006 = vrot.lane.b32.xlu1 %v2841_v17, %s2334_s4  ;;  %1644 = vperm.xlu0 %2161, %v3123_v3   ;;  %v3145_v20 = vld [vmem:[#allocation7 + $0x18] sm:$0xff] }
 0x26b   :  { %4667 = vst [vmem:[#allocation100_spill] sm:$0xff] %v3145_v20 }
 0x26c   :  { %4662 = vst [vmem:[#allocation96_spill] sm:$0xff] %v3127_v19  ;;  %4663 = vst [vmem:[#allocation97_spill] sm:$0xff] %v3129_v41  ;;  %v3134_v18 = vpop.permute.xlu1 %1092  ;;  %v3136_v16 = vpop.permute.xlu0 %866 }
 0x26d   :  { %4664 = vst [vmem:[#allocation98_spill] sm:$0xff] %v3134_v18 }
 0x26e   :  { %1014 = vrot.lane.b32.xlu1 %v2852_v10, %s2334_s4  ;;  %2162 = vset.pattern.permute.xlu0 %v4665_v8 }
 0x26f   :  { %961 = vperm.xlu0 %2162, %v2199_v23  }
 0x270   :  { %v3141_v36 = vpop.permute.xlu1 %1244  ;;  %v3143_v42 = vpop.permute.xlu0 %1082 }
 0x271   :  { %4666 = vst [vmem:[#allocation99_spill] sm:$0xff] %v3141_v36 }
 0x272   :  { %1166 = vrot.lane.b32.xlu1 %v2841_v17, %s2336_s6 }
 0x273   :  { %1673 = vperm.xlu0 %2162, %v3145_v20   ;;  %v4732_v20 = vld [vmem:[#allocation52_spill] sm:$0xff] }
 0x274   :  { %v3149_v45 = vpop.permute.xlu1 %1252  ;;  %v3152_v31 = vpop.permute.xlu0 %1242 }
 0x275   :  { %4668 = vst [vmem:[#allocation101_spill] sm:$0xff] %v3149_v45  ;;  %4669 = vst [vmem:[#allocation102_spill] sm:$0xff] %v3152_v31 }
 0x276   :  { %1174 = vrot.lane.b32.xlu1 %v2852_v10, %s2336_s6 }
 0x278   :  { %v3156_v41 = vpop.permute.xlu1 %1404  ;;  %v3158_v19 = vpop.permute.xlu0 %1250 }
 0x279   :  { %4670 = vst [vmem:[#allocation103_spill] sm:$0xff] %v3156_v41  ;;  %4671 = vst [vmem:[#allocation104_spill] sm:$0xff] %v3158_v19 }
 0x27a   :  { %1326 = vrot.lane.b32.xlu1 %v2841_v17, %s2337_s7 }
 0x27c   :  { %v3162_v18 = vpop.permute.xlu1 %1412  ;;  %v3164_v36 = vpop.permute.xlu0 %1402 }
 0x27d   :  { %4672 = vst [vmem:[#allocation105_spill] sm:$0xff] %v3162_v18  ;;  %4673 = vst [vmem:[#allocation106_spill] sm:$0xff] %v3164_v36  ;;  %v1346_v36 = vld [vmem:[#allocation5 + $0x24] ss:$8 sm:$0xf] }
 0x27e   :  { %1334 = vrot.lane.b32.xlu1 %v2852_v10, %s2337_s7 }
 0x280   :  { %v3168_v45 = vpop.permute.xlu1 %297  ;;  %v3170_v37 = vpop.permute.xlu0 %1410 }
 0x281   :  { %4674 = vst [vmem:[#allocation107_spill] sm:$0xff] %v3168_v45  ;;  %4675 = vst [vmem:[#allocation108_spill] sm:$0xff] %v3170_v37  ;;  %v4707_v37 = vld [vmem:[#allocation14_spill] sm:$0xff] }
 0x282   :  { %1617 = vperm.xlu1 %2159, %v2199_v23  }
 0x284   :  { %v3172_v25 = vpop.permute.xlu1 %305  ;;  %v3174_v41 = vpop.permute.xlu0 %382 }
 0x285   :  { %4676 = vst [vmem:[#allocation109_spill] sm:$0xff] %v3172_v25  ;;  %4677 = vst [vmem:[#allocation110_spill] sm:$0xff] %v3174_v41  ;;  %v396_v3 = vsel %vm392_vm11, %v3174_v41, %v3047_v33 }
 0x286   :  { %1480 = vrot.lane.b32.xlu1 %v2482_v0, %s2342_s10  ;;  %v3183_v18 = vmul.f32 %v2662_v54, %v396_v3  ;;  %v3201_v54 = vmul.f32 %v2656_v53, %v2482_v0  ;;  %v3207_v3 = vsub.s32 0, %v2520_v11 }
 0x287   :  { %2163 = vset.pattern.permute.xlu1 %v4654_v13  ;;  %v3204_v13 = vsub.s32 1, %v2520_v11 }
 0x288   :  { %4678 = vst [vmem:[#allocation111_spill] sm:$0xff] %v3183_v18  ;;  %v3186_v45 = vpop.permute.xlu1 %458  ;;  %v3188_v23 = vpop.permute.xlu0 %390  ;;  %4682 = vst [vmem:[#allocation115_spill] sm:$0xff] %v3201_v54  ;;  %v3235_v18 = vmul.f32 %v2473_v52, %v2482_v0  ;;  %v1026_v0 = vld [vmem:[#allocation5 + $0x20] ss:$8 sm:$0xf]  ;;  %v3400_v56 = vrot.slane %v4732_v20, %v3207_v3 }
 0x289   :  { %4679 = vst [vmem:[#allocation112_spill] sm:$0xff] %v3186_v45  ;;  %4680 = vst [vmem:[#allocation113_spill] sm:$0xff] %v3188_v23  ;;  %v394_v25 = vsel %vm392_vm11, %v3047_v33, %v3188_v23  ;;  %v3213_v33 = vmul.f32 %v2656_v53, %v2571_v28 }
 0x28a   :  { %1482 = vrot.lane.b32.xlu1 %v2717_v48, %s2342_s10  ;;  %v3197_v41 = vmul.f32 %v2674_v58, %v394_v25  ;;  %4683 = vst [vmem:[#allocation116_spill] sm:$0xff] %v3204_v13  ;;  %4684 = vst [vmem:[#allocation117_spill] sm:$0xff] %v3207_v3  ;;  %v3217_v25 = vmul.f32 %v2656_v53, %v2495_v6  ;;  %v3221_v58 = vmul.f32 %v2664_v55, %v2717_v48 }
 0x28b   :  { %4686 = vst [vmem:[#allocation119_spill] sm:$0xff] %v3213_v33  ;;  %v3249_v53 = vmul.f32 %v2664_v55, %v2841_v17  ;;  %v3319_v33 = vrot.slane %v1026_v0, %v3207_v3 }
 0x28c   :  { %4681 = vst [vmem:[#allocation114_spill] sm:$0xff] %v3197_v41  ;;  %v3209_v45 = vpop.permute.xlu1 %466  ;;  %4687 = vst [vmem:[#allocation120_spill] sm:$0xff] %v3217_v25  ;;  %v3225_v41 = vmul.f32 %v2473_v52, %v2571_v28  ;;  %v3227_v11 = vpop.permute.xlu0 %542  ;;  %v3245_v28 = vmul.f32 %v2475_v60, %v2736_v57  ;;  %v3253_v52 = vmul.f32 %v2664_v55, %v2852_v10 }
 0x28d   :  { %4685 = vst [vmem:[#allocation118_spill] sm:$0xff] %v3209_v45  ;;  %4688 = vst [vmem:[#allocation121_spill] sm:$0xff] %v3221_v58  ;;  %v3231_v45 = vmul.f32 %v2664_v55, %v2736_v57  ;;  %v556_v6 = vsel %vm552_vm12, %v3227_v11, %v3082_v21  ;;  %v3274_v55 = vmul.f32 %v2475_v60, %v2841_v17 }
 0x28e   :  { %4689 = vst [vmem:[#allocation122_spill] sm:$0xff] %v3227_v11  ;;  %1486 = vrot.lane.b32.xlu1 %v2841_v17, %s2342_s10  ;;  %4691 = vst [vmem:[#allocation124_spill] sm:$0xff] %v3245_v28  ;;  %v3256_v58 = vmul.f32 %v2688_v1, %v556_v6  ;;  %v3264_v11 = vrot.slane %v2522_v12, %v3204_v13  ;;  %v3268_v28 = vrot.slane %v2522_v12, %v3207_v3  ;;  %v4701_v6 = vld [vmem:[#allocation20_spill] sm:$0xff]  ;;  %v4702_v12 = vld [vmem:[#allocation26_spill] sm:$0xff] }
 0x28f   :  { %4690 = vst [vmem:[#allocation123_spill] sm:$0xff] %v3231_v45  ;;  %4692 = vst [vmem:[#allocation125_spill] sm:$0xff] %v3249_v53  ;;  %v3260_v45 = vmul.f32 %v2475_v60, %v2717_v48  ;;  %v3278_v1 = vmul.f32 %v2475_v60, %v2852_v10  ;;  %v4704_v60 = vld [vmem:[#allocation31_spill] sm:$0xff]  ;;  %v3316_v25 = vrot.slane %v1026_v0, %v4707_v37 }
 0x290   :  { %4693 = vst [vmem:[#allocation126_spill] sm:$0xff] %v3253_v52  ;;  %4694 = vst [vmem:[#allocation127_spill] sm:$0xff] %v3256_v58  ;;  %v3270_v53 = vpop.permute.xlu1 %618  ;;  %v3282_v52 = vrot.slane %v4701_v6, %v3204_v13  ;;  %v3290_v58 = vrot.slane %v4702_v12, %v3207_v3  ;;  %v3296_v23 = vpop.permute.xlu0 %550  ;;  %v3304_v54 = vrot.slane %v4704_v60, %v3204_v13 }
 0x291   :  { %4695 = vst [vmem:[#allocation128_spill] sm:$0xff] %v3260_v45  ;;  %4696 = vst [vmem:[#allocation129_spill] sm:$0xff] %v3264_v11  ;;  %v3286_v45 = vrot.slane %v4701_v6, %v3207_v3  ;;  %v3307_v6 = vrot.slane %v1026_v0, %v3204_v13 }
 0x292   :  { %4697 = vst [vmem:[#allocation130_spill] sm:$0xff] %v3268_v28  ;;  %4698 = vst [vmem:[#allocation131_spill] sm:$0xff] %v3270_v53  ;;  %v3294_v53 = vrot.slane %v4702_v12, %v3204_v13  ;;  %v554_v12 = vsel %vm552_vm12, %v3082_v21, %v3296_v23  ;;  %1490 = vrot.lane.b32.xlu1 %v2736_v57, %s2342_s10 }
 0x293   :  { %4699 = vst [vmem:[#allocation132_spill] sm:$0xff] %v3274_v55  ;;  %4700 = vst [vmem:[#allocation133_spill] sm:$0xff] %v3278_v1  ;;  %v1186_v55 = vld [vmem:[#allocation5 + $0x22] ss:$8 sm:$0xf]  ;;  %v3300_v1 = vrot.slane %v4704_v60, %v3207_v3  ;;  %v3325_v31 = vmul.f32 %v2702_v29, %v554_v12 }
 0x294   :  { %4703 = vst [vmem:[#allocation20_spill] sm:$0xff] %v3296_v23  ;;  %4705 = vst [vmem:[#allocation26_spill] sm:$0xff] %v3304_v54  ;;  %v4710_v60 = vld [vmem:[#allocation16_spill] sm:$0xff]  ;;  %v3328_v19 = vrot.slane %v1186_v55, %v3204_v13  ;;  %v3331_v21 = vrot.slane %v1186_v55, %v4707_v37  ;;  %v3334_v23 = vrot.slane %v1186_v55, %v3207_v3  ;;  %v3339_v27 = vpop.permute.xlu1 %626 }
 0x295   :  { %4706 = vst [vmem:[#allocation31_spill] sm:$0xff] %v3307_v6  ;;  %4708 = vst [vmem:[#allocation14_spill] sm:$0xff] %v3316_v25  ;;  %v3322_v8 = vrot.slane %v1026_v0, %v4710_v60  ;;  %v3337_v51 = vrot.slane %v1186_v55, %v4710_v60  ;;  %v4719_v0 = vld [vmem:[#allocation68_spill] sm:$0xff]  ;;  %v4724_v55 = vld [vmem:[#allocation66_spill] sm:$0xff] }
 0x296   :  { %4709 = vst [vmem:[#allocation134_spill] sm:$0xff] %v3319_v33  ;;  %4712 = vst [vmem:[#allocation136_spill] sm:$0xff] %v3325_v31  ;;  %v4718_v33 = vld [vmem:[#allocation60_spill] sm:$0xff]  ;;  %1494 = vrot.lane.b32.xlu1 %v2852_v10, %s2342_s10 }
 0x297   :  { %4711 = vst [vmem:[#allocation135_spill] sm:$0xff] %v3322_v8  ;;  %4713 = vst [vmem:[#allocation137_spill] sm:$0xff] %v3328_v19  ;;  %v320_v29 = vsel %vm313_vm9, %v4719_v0, %v4718_v33  ;;  %v4720_v12 = vld [vmem:[#allocation40_spill] sm:$0xff]  ;;  %v3350_v19 = vrot.slane %v1346_v36, %v3207_v3  ;;  %v3369_v8 = vrot.slane %v1346_v36, %v4710_v60 }
 0x298   :  { %4714 = vst [vmem:[#allocation138_spill] sm:$0xff] %v3331_v21  ;;  %4715 = vst [vmem:[#allocation139_spill] sm:$0xff] %v3334_v23  ;;  %v3347_v31 = vrot.slane %v4720_v12, %v3204_v13  ;;  %v3353_v21 = vrot.slane %v1346_v36, %v3204_v13  ;;  %v3355_v23 = vpop.permute.xlu0 %702  ;;  %v3363_v0 = vrot.slane %v4720_v12, %v3207_v3 }
 0x299   :  { %4716 = vst [vmem:[#allocation140_spill] sm:$0xff] %v3337_v51  ;;  %4717 = vst [vmem:[#allocation141_spill] sm:$0xff] %v3339_v27  ;;  %v318_v51 = vsel %vm313_vm9, %v4718_v33, %v4724_v55  ;;  %v3366_v27 = vrot.slane %v1346_v36, %v4707_v37  ;;  %v4729_v33 = vld [vmem:[#allocation44_spill] sm:$0xff]  ;;  %v4730_v36 = vld [vmem:[#allocation49_spill] sm:$0xff] }
 0x29a   :  { %4721 = vst [vmem:[#allocation60_spill] sm:$0xff] %v3350_v19  ;;  %4722 = vst [vmem:[#allocation68_spill] sm:$0xff] %v3353_v21  ;;  %v1106_v19 = vld [vmem:[#allocation5 + $0x21] ss:$8 sm:$0xf]  ;;  %v3379_v55 = vrot.slane %v4729_v33, %v3204_v13  ;;  %v3383_v12 = vrot.slane %v4729_v33, %v3207_v3  ;;  %v3402_v33 = vpop.permute.xlu1 %778  ;;  %v345_v35 = vmul.f32 %v3264_v11, %v318_v51  ;;  %1562 = vrot.lane.b32.xlu1 %v2717_v48, %s2343_s11 }
 0x29b   :  { %4723 = vst [vmem:[#allocation40_spill] sm:$0xff] %v3355_v23  ;;  %4725 = vst [vmem:[#allocation66_spill] sm:$0xff] %v3363_v0  ;;  %v4728_v23 = vld [vmem:[#allocation59_spill] sm:$0xff]  ;;  %v4738_v11 = vld [vmem:[#allocation61_spill] sm:$0xff] }
 0x29c   :  { %4726 = vst [vmem:[#allocation142_spill] sm:$0xff] %v3366_v27  ;;  %4727 = vst [vmem:[#allocation143_spill] sm:$0xff] %v3369_v8  ;;  %v399_v21 = vsel %vm392_vm11, %v2996_v24, %v4728_v23  ;;  %v3387_v8 = vrot.slane %v4730_v36, %v3207_v3  ;;  %v344_v27 = vmul.f32 %v3268_v28, %v320_v29  ;;  %v711_v28 = vpop.permute.xlu0 %710 }
 0x29d   :  { %v397_v47 = vsel %vm392_vm11, %v4728_v23, %v4731_v22  ;;  %v3396_v24 = vrot.slane %v4730_v36, %v3204_v13  ;;  %4733 = vst [vmem:[#allocation59_spill] sm:$0xff] %v3400_v56  ;;  %4734 = vst [vmem:[#allocation44_spill] sm:$0xff] %v3402_v33  ;;  %v3408_v29 = vrot.slane %v4732_v20, %v3204_v13  ;;  %v1266_v36 = vld [vmem:[#allocation5 + $0x23] ss:$8 sm:$0xf] }
 0x29e   :  { %v3411_v22 = vrot.slane %v1106_v19, %v3204_v13  ;;  %v3414_v23 = vrot.slane %v1106_v19, %v4707_v37  ;;  %v424_v56 = vmul.f32 %v3363_v0, %v399_v21  ;;  %v3418_v33 = vrot.slane %v1106_v19, %v3207_v3  ;;  %1566 = vrot.lane.b32.xlu1 %v2841_v17, %s2343_s11 }
 0x29f   :  { %4735 = vst [vmem:[#allocation49_spill] sm:$0xff] %v3408_v29  ;;  %v714_v51 = vsel %vm712_vm15, %v3111_v34, %v711_v28  ;;  %v720_v20 = vsel %vm712_vm15, %v711_v28, %v3096_v62  ;;  %v425_v21 = vmul.f32 %v3347_v31, %v397_v47  ;;  %v360_v34 = vmul.f32 %v2531_v15, %v344_v27  ;;  %v3449_v29 = vpop.permute.xlu1 %786 }
 0x2a0   :  { %4736 = vst [vmem:[#allocation86_spill] sm:$0xff] %v3411_v22  ;;  %4737 = vst [vmem:[#allocation52_spill] sm:$0xff] %v3418_v33  ;;  %v479_v22 = vsel %vm472_vm10, %v2884_v61, %v4738_v11  ;;  %v3434_v0 = vmul.f32 %v2724_v63, %v714_v51  ;;  %v3437_v33 = vmul.f32 %v2728_v46, %v720_v20  ;;  %v1426_v61 = vld [vmem:[#allocation5 + $0x25] ss:$8 sm:$0xf]  ;;  %v3463_v51 = vpop.permute.xlu0 %862 }
 0x2a1   :  { %v3441_v28 = vrot.slane %v1106_v19, %v4710_v60  ;;  %v3444_v48 = vrot.slane %v1266_v36, %v3204_v13  ;;  %v3447_v62 = vrot.slane %v1266_v36, %v4707_v37  ;;  %4740 = vst [vmem:[#allocation144_spill] sm:$0xff] %v3449_v29  ;;  %v361_v47 = vmul.f32 %v2531_v15, %v345_v35  ;;  %v4741_v63 = vld [vmem:[#allocation62_spill] sm:$0xff] }
 0x2a2   :  { %v559_v46 = vsel %vm552_vm12, %v3040_v26, %v4741_v63  ;;  %v3458_v27 = vrot.slane %v1266_v36, %v3207_v3  ;;  %v3461_v19 = vrot.slane %v1266_v36, %v4710_v60  ;;  %v4744_v20 = vld [vmem:[#allocation70_spill] sm:$0xff]  ;;  %v504_v35 = vmul.f32 %v3286_v45, %v479_v22  ;;  %v4747_v22 = vld [vmem:[#allocation73_spill] sm:$0xff]  ;;  %1570 = vrot.lane.b32.xlu1 %v2736_v57, %s2343_s11 }
 0x2a3   :  { %4739 = vst [vmem:[#allocation61_spill] sm:$0xff] %v3444_v48  ;;  %v477_v15 = vsel %vm472_vm10, %v4738_v11, %v4744_v20  ;;  %v440_v48 = vmul.f32 %v2501_v7, %v424_v56  ;;  %v557_v26 = vsel %vm552_vm12, %v4741_v63, %v3020_v4  ;;  %v441_v36 = vmul.f32 %v2501_v7, %v425_v21  ;;  %v3496_v21 = vpop.permute.xlu1 %1002 }
 0x2a4   :  { %4742 = vst [vmem:[#allocation62_spill] sm:$0xff] %v3458_v27  ;;  %4743 = vst [vmem:[#allocation145_spill] sm:$0xff] %v3461_v19  ;;  %v3479_v27 = vrot.slane %v1426_v61, %v3207_v3  ;;  %v3482_v29 = vrot.slane %v1426_v61, %v3204_v13  ;;  %v3485_v11 = vrot.slane %v1426_v61, %v4707_v37  ;;  %v871_v3 = vpop.permute.xlu0 %870 }
 0x2a5   :  { %v368_v56 = vadd.f32 %v360_v34, %v3235_v18  ;;  %v637_v4 = vsel %vm632_vm13, %v2826_v40, %v4747_v22  ;;  %v584_v17 = vmul.f32 %v3383_v12, %v559_v46  ;;  %v3494_v7 = vrot.slane %v1426_v61, %v4710_v60  ;;  %4749 = vst [vmem:[#allocation147_spill] sm:$0xff] %v3496_v21  ;;  %v4782_v21 = vld [vmem:[#allocation83_spill] sm:$0xff] }
 0x2a6   :  { %4745 = vst [vmem:[#allocation70_spill] sm:$0xff] %v3479_v27  ;;  %4746 = vst [vmem:[#allocation146_spill] sm:$0xff] %v3482_v29  ;;  %v369_v63 = vadd.f32 %v361_v47, %v3225_v41  ;;  %v505_v20 = vmul.f32 %v3282_v52, %v477_v15  ;;  %v635_v34 = vsel %vm632_vm13, %v4747_v22, %v2810_v5  ;;  %v4753_v22 = vld [vmem:[#allocation71_spill] sm:$0xff]  ;;  %1574 = vrot.lane.b32.xlu1 %v2852_v10, %s2343_s11  ;;  %v4772_v27 = vld [vmem:[#allocation94_spill] sm:$0xff] }
 0x2a7   :  { %4748 = vst [vmem:[#allocation73_spill] sm:$0xff] %v3494_v7  ;;  %v585_v18 = vmul.f32 %v3379_v55, %v557_v26  ;;  %v520_v40 = vmul.f32 %v2576_v30, %v504_v35  ;;  %v448_v46 = vadd.f32 %v440_v48, %v368_v56  ;;  %v874_v61 = vsel %vm872_vm0, %v3136_v16, %v871_v3  ;;  %v4751_v26 = vld [vmem:[#allocation76_spill] sm:$0xff] }
 0x2a8   :  { %v880_v41 = vsel %vm872_vm0, %v871_v3, %v3125_v32  ;;  %v664_v47 = vmul.f32 %v3290_v58, %v637_v4  ;;  %v449_v5 = vadd.f32 %v441_v36, %v369_v63  ;;  %v3516_v15 = vmul.f32 %v2750_v49, %v874_v61  ;;  %v4752_v3 = vld [vmem:[#allocation79_spill] sm:$0xff]  ;;  %v3531_v4 = vpop.permute.xlu1 %1010 }
 0x2a9   :  { %v3519_v35 = vmul.f32 %v2754_v43, %v880_v41  ;;  %v665_v48 = vmul.f32 %v3294_v53, %v635_v34  ;;  %v797_v56 = vsel %vm792_vm14, %v2858_v9, %v4751_v26  ;;  %v1021_v57 = vsel %vm1016_vm1, %v4753_v22, %v4752_v3  ;;  %4754 = vst [vmem:[#allocation76_spill] sm:$0xff] %v3531_v4  ;;  %v4783_v4 = vld [vmem:[#allocation75_spill] sm:$0xff] }
 0x2aa   :  { %v600_v36 = vmul.f32 %v2527_v14, %v584_v17  ;;  %v521_v49 = vmul.f32 %v2576_v30, %v505_v20  ;;  %v601_v43 = vmul.f32 %v2527_v14, %v585_v18  ;;  %v715_v9 = vsel %vm712_vm15, %v3057_v59, %v2848_v50  ;;  %v1087_v17 = vpop.permute.xlu0 %1086  ;;  %v4755_v20 = vld [vmem:[#allocation63_spill] sm:$0xff] }
 0x2ab   :  { %4750 = vst [vmem:[#allocation148_spill] sm:$0xff] %v3519_v35  ;;  %v717_v63 = vsel %vm712_vm15, %v2837_v2, %v3057_v59  ;;  %v795_v30 = vsel %vm792_vm14, %v4751_v26, %v2818_v44  ;;  %v1019_v14 = vsel %vm1016_vm1, %v4752_v3, %v4755_v20  ;;  %v528_v34 = vadd.f32 %v520_v40, %v448_v46 }
 0x2ac   :  { %v3556_v50 = vsel %vm1096_vm2, %v3143_v42, %v1087_v17  ;;  %v680_v2 = vmul.f32 %v2608_v38, %v664_v47  ;;  %v824_v59 = vmul.f32 %v3300_v1, %v797_v56  ;;  %v1049_v44 = vmul.f32 %v3307_v6, %v1021_v57  ;;  %v1091_v26 = vpop.permute.xlu1 %1090  ;;  %v4781_v6 = vld [vmem:[#allocation64_spill] sm:$0xff] }
 0x2ad   :  { %4756 = vst [vmem:[#allocation79_spill] sm:$0xff] %v3556_v50  ;;  %v529_v18 = vadd.f32 %v521_v49, %v449_v5  ;;  %v681_v61 = vmul.f32 %v2608_v38, %v665_v48  ;;  %v608_v40 = vadd.f32 %v600_v36, %v528_v34  ;;  %v744_v46 = vmul.f32 %v3387_v8, %v717_v63  ;;  %v4757_v5 = vld [vmem:[#allocation91_spill] sm:$0xff]  ;;  %v4762_v63 = vld [vmem:[#allocation37_spill] sm:$0xff] }
 0x2ae   :  { %v745_v41 = vmul.f32 %v3396_v24, %v715_v9  ;;  %v825_v3 = vmul.f32 %v3304_v54, %v795_v30  ;;  %v1050_v10 = vmul.f32 %v3316_v25, %v1019_v14  ;;  %v1100_v56 = vsel %vm1096_vm2, %v1087_v17, %v1091_v26  ;;  %v1095_v57 = vpop.permute.xlu0 %1094  ;;  %v4758_v49 = vld [vmem:[#allocation67_spill] sm:$0xff]  ;;  %v4764_v34 = vld [vmem:[#allocation69_spill] sm:$0xff]  ;;  %v4788_v54 = vld [vmem:[#allocation30_spill] sm:$0xff] }
 0x2af   :  { %v609_v47 = vadd.f32 %v601_v43, %v529_v18  ;;  %v877_v38 = vsel %vm872_vm0, %v4758_v49, %v4757_v5  ;;  %v3576_v48 = vmul.f32 %v3414_v23, %v1100_v56  ;;  %v1098_v36 = vsel %vm1096_vm2, %v1091_v26, %v1095_v57  ;;  %v4761_v43 = vld [vmem:[#allocation100_spill] sm:$0xff]  ;;  %v4763_v30 = vld [vmem:[#allocation43_spill] sm:$0xff]  ;;  %v4766_v26 = vld [vmem:[#allocation81_spill] sm:$0xff] }
 0x2b0   :  { %v3583_v9 = vsel %vm1096_vm2, %v1095_v57, %v3143_v42  ;;  %1649 = vperm.xlu1 %2163, %v4761_v43   ;;  %v840_v17 = vmul.f32 %v4762_v63, %v824_v59  ;;  %v1065_v14 = vmul.f32 %v4763_v30, %v1049_v44  ;;  %v875_v18 = vsel %vm872_vm0, %v4757_v5, %v4764_v34  ;;  %v4767_v49 = vld [vmem:[#allocation23_spill] sm:$0xff]  ;;  %v3601_v13 = vpop.permute.xlu1 %1162 }
 0x2b1   :  { %4759 = vst [vmem:[#allocation71_spill] sm:$0xff] %v3576_v48  ;;  %4760 = vst [vmem:[#allocation63_spill] sm:$0xff] %v3583_v9  ;;  %v3593_v56 = vmul.f32 %v3441_v28, %v1098_v36  ;;  %v1023_v42 = vsel %vm1016_vm1, %v4766_v26, %v4753_v22  ;;  %v688_v57 = vadd.f32 %v680_v2, %v608_v40  ;;  %v4769_v34 = vld [vmem:[#allocation59_spill] sm:$0xff]  ;;  %v4770_v2 = vld [vmem:[#allocation49_spill] sm:$0xff] }
 0x2b2   :  { %v760_v43 = vmul.f32 %v4767_v49, %v744_v46  ;;  %v761_v59 = vmul.f32 %v4767_v49, %v745_v41  ;;  %4768 = vst [vmem:[#allocation67_spill] sm:$0xff] %v3601_v13  ;;  %v1066_v44 = vmul.f32 %v4763_v30, %v1050_v10  ;;  %v1017_v5 = vsel %vm1016_vm1, %v4755_v20, %v4766_v26  ;;  %v1247_v22 = vpop.permute.xlu0 %1246  ;;  %v4771_v46 = vld [vmem:[#allocation74_spill] sm:$0xff]  ;;  %v4773_v49 = vld [vmem:[#allocation104_spill] sm:$0xff]  ;;  %v4780_v25 = vld [vmem:[#allocation95_spill] sm:$0xff] }
 0x2b3   :  { %4765 = vst [vmem:[#allocation91_spill] sm:$0xff] %v3593_v56  ;;  %v689_v36 = vadd.f32 %v681_v61, %v609_v47  ;;  %v904_v29 = vmul.f32 %v4769_v34, %v877_v38  ;;  %v905_v40 = vmul.f32 %v4770_v2, %v875_v18  ;;  %v1099_v41 = vsel %vm1096_vm2, %v4772_v27, %v4771_v46  ;;  %v4774_v13 = vld [vmem:[#allocation102_spill] sm:$0xff]  ;;  %v4777_v38 = vld [vmem:[#allocation119_spill] sm:$0xff] }
 0x2b4   :  { %v1260_v10 = vsel %vm1256_vm4, %v1247_v22, %v4773_v49  ;;  %v3621_v20 = vsel %vm1256_vm4, %v4774_v13, %v1247_v22  ;;  %v4776_v61 = vmov 3   ;;  %v841_v47 = vmul.f32 %v4762_v63, %v825_v3  ;;  %v4778_v26 = vld [vmem:[#allocation134_spill] sm:$0xff] }
 0x2b5   :  { %4775 = vst [vmem:[#allocation100_spill] sm:$0xff] %v3621_v20  ;;  %2164 = vset.pattern.permute.xlu1 %v4776_v61  ;;  %v3626_v18 = vadd.f32 %v1065_v14, %v4777_v38  ;;  %v1048_v56 = vmul.f32 %v4778_v26, %v1023_v42  ;;  %v3630_v48 = vmul.f32 %v3447_v62, %v1260_v10  ;;  %v3641_v61 = vpop.permute.xlu1 %1170  ;;  %v4784_v42 = vld [vmem:[#allocation120_spill] sm:$0xff]  ;;  %v4785_v10 = vld [vmem:[#allocation135_spill] sm:$0xff] }
 0x2b6   :  { %1669 = vperm.xlu1 %2164, %v4780_v25   ;;  %v1179_v22 = vsel %vm1176_vm3, %v4782_v21, %v4781_v6  ;;  %v1181_v3 = vsel %vm1176_vm3, %v4783_v4, %v4782_v21  ;;  %v768_v63 = vadd.f32 %v760_v43, %v688_v57  ;;  %v769_v14 = vadd.f32 %v761_v59, %v689_v36  ;;  %v4786_v26 = vld [vmem:[#allocation88_spill] sm:$0xff]  ;;  %v4787_v25 = vld [vmem:[#allocation65_spill] sm:$0xff]  ;;  %v1255_v35 = vpop.permute.xlu0 %1254  ;;  %v4790_v36 = vld [vmem:[#allocation138_spill] sm:$0xff] }
 0x2b7   :  { %4779 = vst [vmem:[#allocation37_spill] sm:$0xff] %v3630_v48  ;;  %v1074_v38 = vadd.f32 %v1066_v44, %v4784_v42  ;;  %v1051_v48 = vmul.f32 %v4785_v10, %v1017_v5  ;;  %v1337_v20 = vsel %vm1336_vm5, %v4787_v25, %v4786_v26  ;;  %v1130_v9 = vmul.f32 %v3414_v23, %v1099_v41  ;;  %v4789_v44 = vld [vmem:[#allocation137_spill] sm:$0xff]  ;;  %v4793_v42 = vld [vmem:[#allocation78_spill] sm:$0xff]  ;;  %v4794_v26 = vld [vmem:[#allocation99_spill] sm:$0xff] }
 0x2b8   :  { %v920_v50 = vmul.f32 %v4788_v54, %v904_v29  ;;  %v921_v21 = vmul.f32 %v4788_v54, %v905_v40  ;;  %v1258_v57 = vsel %vm1256_vm4, %v4773_v49, %v1255_v35  ;;  %v3658_v43 = vsel %vm1256_vm4, %v1255_v35, %v4774_v13  ;;  %v4792_v40 = vld [vmem:[#allocation72_spill] sm:$0xff] }
 0x2b9   :  { %v1064_v59 = vmul.f32 %v4763_v30, %v1048_v56  ;;  %v1209_v5 = vmul.f32 %v4789_v44, %v1181_v3  ;;  %v1210_v23 = vmul.f32 %v4790_v36, %v1179_v22  ;;  %v3664_v41 = vmul.f32 %v3461_v19, %v1258_v57  ;;  %v3674_v35 = vpop.permute.xlu1 %1322  ;;  %v4796_v56 = vld [vmem:[#allocation85_spill] sm:$0xff]  ;;  %v4798_v3 = vld [vmem:[#allocation142_spill] sm:$0xff] }
 0x2ba   :  { %v848_v29 = vadd.f32 %v840_v17, %v768_v63  ;;  %v849_v54 = vadd.f32 %v841_v47, %v769_v14  ;;  %v1101_v49 = vsel %vm1096_vm2, %v4792_v40, %v4772_v27  ;;  %v1259_v13 = vsel %vm1256_vm4, %v4794_v26, %v4793_v42  ;;  %4795 = vst [vmem:[#allocation69_spill] sm:$0xff] %v3674_v35  ;;  %v4797_v17 = vld [vmem:[#allocation87_spill] sm:$0xff]  ;;  %v4799_v27 = vld [vmem:[#allocation46_spill] sm:$0xff]  ;;  %v1407_v57 = vpop.permute.xlu0 %1406  ;;  %v4800_v42 = vld [vmem:[#allocation108_spill] sm:$0xff] }
 0x2bb   :  { %4791 = vst [vmem:[#allocation43_spill] sm:$0xff] %v3664_v41  ;;  %v1183_v22 = vsel %vm1176_vm3, %v4796_v56, %v4783_v4  ;;  %v1339_v47 = vsel %vm1336_vm5, %v4797_v17, %v4787_v25  ;;  %v1370_v63 = vmul.f32 %v4798_v3, %v1337_v20  ;;  %v1146_v14 = vmul.f32 %v4799_v27, %v1130_v9  ;;  %v4801_v36 = vld [vmem:[#allocation106_spill] sm:$0xff]  ;;  %v4803_v25 = vld [vmem:[#allocation115_spill] sm:$0xff]  ;;  %v4834_v3 = vld [vmem:[#allocation52_spill] sm:$0xff] }
 0x2bc   :  { %v928_v19 = vadd.f32 %v920_v50, %v848_v29  ;;  %v929_v41 = vadd.f32 %v921_v21, %v849_v54  ;;  %v3689_v35 = vsel %vm1416_vm6, %v1407_v57, %v4800_v42  ;;  %v3694_v4 = vsel %vm1416_vm6, %v4801_v36, %v1407_v57  ;;  %v4805_v9 = vld [vmem:[#allocation86_spill] sm:$0xff]  ;;  %v4806_v21 = vld [vmem:[#allocation47_spill] sm:$0xff] }
 0x2bd   :  { %v3697_v44 = vmul.f32 %v4763_v30, %v1051_v48  ;;  %v3700_v20 = vadd.f32 %v1064_v59, %v4803_v25  ;;  %v1129_v17 = vmul.f32 %v4805_v9, %v1101_v49  ;;  %v1290_v50 = vmul.f32 %v3447_v62, %v1259_v13  ;;  %v4809_v48 = vld [vmem:[#allocation139_spill] sm:$0xff]  ;;  %v3717_v59 = vpop.permute.xlu1 %1330  ;;  %v4813_v49 = vld [vmem:[#allocation68_spill] sm:$0xff] }
 0x2be   :  { %v3705_v29 = vmul.f32 %v4806_v21, %v1209_v5  ;;  %v1226_v54 = vmul.f32 %v4806_v21, %v1210_v23  ;;  %v3712_v57 = vsel %vm1176_vm3, %v4781_v6, %v4796_v56  ;;  %v3715_v30 = vmul.f32 %v4809_v48, %v1183_v22  ;;  %4811 = vst [vmem:[#allocation94_spill] sm:$0xff] %v3717_v59  ;;  %v3719_v25 = vld [vmem:[#allocation5 + $0x26] ss:$8 sm:$0xf]  ;;  %v1415_v23 = vpop.permute.xlu0 %1414 }
 0x2bf   :  { %4802 = vst [vmem:[#allocation81_spill] sm:$0xff] %v3697_v44  ;;  %4804 = vst [vmem:[#allocation23_spill] sm:$0xff] %v3700_v20  ;;  %v3722_v62 = vmul.f32 %v4813_v49, %v1339_v47  ;;  %v4815_v5 = vld [vmem:[#allocation54_spill] sm:$0xff]  ;;  %v1154_v44 = vadd.f32 %v1146_v14, %v1074_v38  ;;  %v3727_v21 = vrot.slane %v3719_v25, %v4707_v37  ;;  %v4859_v59 = vld [vmem:[#allocation128_spill] sm:$0xff] }
 0x2c0   :  { %4807 = vst [vmem:[#allocation59_spill] sm:$0xff] %v3705_v29  ;;  %4808 = vst [vmem:[#allocation49_spill] sm:$0xff] %v3712_v57  ;;  %v1386_v13 = vmul.f32 %v4815_v5, %v1370_v63  ;;  %v1418_v6 = vsel %vm1416_vm6, %v4800_v42, %v1415_v23  ;;  %v1424_v56 = vsel %vm1416_vm6, %v1415_v23, %v4801_v36  ;;  %v4816_v22 = vld [vmem:[#allocation34_spill] sm:$0xff]  ;;  %v4822_v36 = vld [vmem:[#allocation105_spill] sm:$0xff] }
 0x2c1   :  { %4810 = vst [vmem:[#allocation74_spill] sm:$0xff] %v3715_v30  ;;  %4812 = vst [vmem:[#allocation104_spill] sm:$0xff] %v3719_v25  ;;  %v3736_v30 = vadd.f32 %v4816_v22, %v928_v19  ;;  %v3739_v47 = vadd.f32 %v4816_v22, %v929_v41  ;;  %v1145_v38 = vmul.f32 %v4799_v27, %v1129_v17  ;;  %v4817_v63 = vld [vmem:[#allocation50_spill] sm:$0xff]  ;;  %v4823_v41 = vld [vmem:[#allocation84_spill] sm:$0xff]  ;;  %v302_v23 = vpop.permute.xlu1 %301 }
 0x2c2   :  { %4814 = vst [vmem:[#allocation102_spill] sm:$0xff] %v3722_v62  ;;  %v1306_v14 = vmul.f32 %v4817_v63, %v1290_v50  ;;  %v3744_v5 = vmul.f32 %v3485_v11, %v1418_v6  ;;  %v3747_v62 = vmul.f32 %v3494_v7, %v1424_v56  ;;  %v3749_v42 = vld [vmem:[#allocation5 + $0x27] ss:$8 sm:$0xf]  ;;  %v1417_v17 = vsel %vm1416_vm6, %v4823_v41, %v4822_v36 }
 0x2c3   :  { %4820 = vst [vmem:[#allocation64_spill] sm:$0xff] %v3749_v42  ;;  %v4821_v57 = vld [vmem:[#allocation98_spill] sm:$0xff]  ;;  %v3761_v50 = vrot.slane %v3749_v42, %v4707_v37  ;;  %v3765_v6 = vrot.slane %v3749_v42, %v4710_v60  ;;  %v4824_v7 = vld [vmem:[#allocation109_spill] sm:$0xff]  ;;  %v4825_v36 = vld [vmem:[#allocation107_spill] sm:$0xff] }
 0x2c4   :  { %4818 = vst [vmem:[#allocation119_spill] sm:$0xff] %v3744_v5  ;;  %4819 = vst [vmem:[#allocation95_spill] sm:$0xff] %v3747_v62  ;;  %v1097_v19 = vsel %vm1096_vm2, %v4771_v46, %v4821_v57  ;;  %v1103_v56 = vsel %vm1096_vm2, %v4821_v57, %v4792_v40  ;;  %v1234_v46 = vadd.f32 %v1226_v54, %v1154_v44  ;;  %v4826_v37 = vld [vmem:[#allocation110_spill] sm:$0xff]  ;;  %v4827_v62 = vld [vmem:[#allocation89_spill] sm:$0xff] }
 0x2c5   :  { %v317_v20 = vsel %vm313_vm9, %v302_v23, %v4824_v7  ;;  %v319_v29 = vsel %vm313_vm9, %v4825_v36, %v302_v23  ;;  %v398_v60 = vsel %vm392_vm11, %v4827_v62, %v4826_v37  ;;  %v4828_v42 = vld [vmem:[#allocation15_spill] sm:$0xff]  ;;  %v4829_v25 = vld [vmem:[#allocation96_spill] sm:$0xff]  ;;  %v4830_v44 = vld [vmem:[#allocation97_spill] sm:$0xff]  ;;  %v3791_v54 = vadd.f32 %v1145_v38, %v3626_v18  ;;  %v310_v18 = vpop.permute.xlu1 %309 }
 0x2c6   :  { %v350_v5 = vmul.f32 %v4828_v42, %v317_v20  ;;  %v3784_v63 = vadd.f32 %v4816_v22, %v4829_v25  ;;  %v3788_v40 = vadd.f32 %v4816_v22, %v4830_v44  ;;  %v1314_v57 = vadd.f32 %v1306_v14, %v1234_v46  ;;  %v4833_v27 = vld [vmem:[#allocation129_spill] sm:$0xff]  ;;  %v4838_v42 = vld [vmem:[#allocation12_spill] sm:$0xff]  ;;  %v4839_v14 = vld [vmem:[#allocation111_spill] sm:$0xff] }
 0x2c7   :  { %4832 = vst [vmem:[#allocation75_spill] sm:$0xff] %v3791_v54  ;;  %v1450_v23 = vmul.f32 %v3485_v11, %v1417_v17  ;;  %v349_v41 = vmul.f32 %v4833_v27, %v319_v29  ;;  %v3796_v37 = vmul.f32 %v4834_v3, %v1103_v56  ;;  %v3799_v20 = vmul.f32 %v3441_v28, %v1097_v19  ;;  %v4837_v25 = vld [vmem:[#allocation113_spill] sm:$0xff]  ;;  %v4840_v11 = vld [vmem:[#allocation18_spill] sm:$0xff]  ;;  %v4842_v19 = vld [vmem:[#allocation20_spill] sm:$0xff] }
 0x2c8   :  { %4831 = vst [vmem:[#allocation83_spill] sm:$0xff] %v3788_v40  ;;  %v400_v22 = vsel %vm392_vm11, %v4837_v25, %v4827_v62  ;;  %v366_v44 = vmul.f32 %v4838_v42, %v350_v5  ;;  %v429_v38 = vmul.f32 %v3347_v31, %v398_v60  ;;  %v446_v17 = vmul.f32 %v4840_v11, %v4839_v14  ;;  %v4841_v29 = vld [vmem:[#allocation90_spill] sm:$0xff]  ;;  %v4843_v5 = vld [vmem:[#allocation124_spill] sm:$0xff]  ;;  %v4845_v60 = vld [vmem:[#allocation19_spill] sm:$0xff] }
 0x2c9   :  { %4835 = vst [vmem:[#allocation120_spill] sm:$0xff] %v3796_v37  ;;  %4836 = vst [vmem:[#allocation135_spill] sm:$0xff] %v3799_v20  ;;  %v315_v27 = vsel %vm313_vm9, %v4824_v7, %v310_v18  ;;  %v321_v28 = vsel %vm313_vm9, %v310_v18, %v4825_v36  ;;  %v560_v62 = vsel %vm552_vm12, %v4842_v19, %v4841_v29  ;;  %v4844_v46 = vld [vmem:[#allocation130_spill] sm:$0xff]  ;;  %v4846_v20 = vld [vmem:[#allocation55_spill] sm:$0xff]  ;;  %v463_v19 = vpop.permute.xlu1 %462  ;;  %vm952_vm11 = vcmp.ge.f32.partialorder %v3736_v30, 0.0 }
 0x2ca   :  { %v374_v56 = vadd.f32 %v366_v44, %v4843_v5  ;;  %v348_v31 = vmul.f32 %v4844_v46, %v321_v28  ;;  %v351_v25 = vmul.f32 %v4845_v60, %v315_v27  ;;  %v1394_v14 = vadd.f32 %v1386_v13, %v1314_v57  ;;  %v4847_v37 = vld [vmem:[#allocation66_spill] sm:$0xff]  ;;  %v4855_v46 = vld [vmem:[#allocation27_spill] sm:$0xff]  ;;  %v4856_v60 = vld [vmem:[#allocation132_spill] sm:$0xff] }
 0x2cb   :  { %v1466_v54 = vmul.f32 %v4846_v20, %v1450_v23  ;;  %v428_v7 = vmul.f32 %v4847_v37, %v400_v22  ;;  %v365_v49 = vmul.f32 %v4838_v42, %v349_v41  ;;  %v4848_v40 = vld [vmem:[#allocation122_spill] sm:$0xff]  ;;  %v445_v27 = vmul.f32 %v4840_v11, %v429_v38  ;;  %v4850_v41 = vld [vmem:[#allocation112_spill] sm:$0xff] }
 0x2cc   :  { %v558_v36 = vsel %vm552_vm12, %v4841_v29, %v4848_v40  ;;  %v364_v18 = vmul.f32 %v4838_v42, %v348_v31  ;;  %v367_v44 = vmul.f32 %v4838_v42, %v351_v25  ;;  %v454_v28 = vadd.f32 %v446_v17, %v374_v56  ;;  %v4849_v57 = vld [vmem:[#allocation118_spill] sm:$0xff]  ;;  %v4852_v29 = vld [vmem:[#allocation133_spill] sm:$0xff]  ;;  %v4857_v20 = vld [vmem:[#allocation40_spill] sm:$0xff] }
 0x2cd   :  { %v588_v13 = vmul.f32 %v3383_v12, %v560_v62  ;;  %v476_v23 = vsel %vm472_vm10, %v463_v19, %v4849_v57  ;;  %v478_v37 = vsel %vm472_vm10, %v4850_v41, %v463_v19  ;;  %v4851_v22 = vld [vmem:[#allocation114_spill] sm:$0xff]  ;;  %v4853_v17 = vld [vmem:[#allocation21_spill] sm:$0xff]  ;;  %v444_v38 = vmul.f32 %v4840_v11, %v428_v7  ;;  %v4854_v62 = vld [vmem:[#allocation127_spill] sm:$0xff] }
 0x2ce   :  { %v447_v40 = vmul.f32 %v4840_v11, %v4851_v22  ;;  %v375_v5 = vadd.f32 %v367_v44, %v4852_v29  ;;  %v509_v42 = vmul.f32 %v3282_v52, %v478_v37  ;;  %v510_v56 = vmul.f32 %v4853_v17, %v476_v23  ;;  %v4858_v19 = vld [vmem:[#allocation92_spill] sm:$0xff]  ;;  %v4860_v29 = vld [vmem:[#allocation13_spill] sm:$0xff]  ;;  %v471_v37 = vpop.permute.xlu1 %470 }
 0x2cf   :  { %v589_v12 = vmul.f32 %v3379_v55, %v558_v36  ;;  %v606_v31 = vmul.f32 %v4855_v46, %v4854_v62  ;;  %v373_v25 = vadd.f32 %v365_v49, %v4856_v60  ;;  %v718_v22 = vsel %vm712_vm15, %v4858_v19, %v4857_v20  ;;  %v4861_v36 = vld [vmem:[#allocation136_spill] sm:$0xff] }
 0x2d0   :  { %v372_v44 = vadd.f32 %v364_v18, %v4859_v59  ;;  %v526_v52 = vmul.f32 %v4860_v29, %v510_v56  ;;  %v455_v23 = vadd.f32 %v447_v40, %v375_v5  ;;  %v604_v55 = vmul.f32 %v4855_v46, %v588_v13  ;;  %v4862_v5 = vld [vmem:[#allocation22_spill] sm:$0xff]  ;;  %v3868_v56 = vpop.permute.xlu0 %1621  ;;  %v4863_v13 = vld [vmem:[#allocation93_spill] sm:$0xff] }
 0x2d1   :  { %v525_v11 = vmul.f32 %v4860_v29, %v509_v42  ;;  %v474_v49 = vsel %vm472_vm10, %v4849_v57, %v471_v37  ;;  %v480_v7 = vsel %vm472_vm10, %v471_v37, %v4850_v41  ;;  %v607_v59 = vmul.f32 %v4855_v46, %v4861_v36 }
 0x2d2   :  { %v534_v18 = vadd.f32 %v526_v52, %v454_v28  ;;  %v508_v40 = vmul.f32 %v3286_v45, %v480_v7  ;;  %v511_v17 = vmul.f32 %v4862_v5, %v474_v49  ;;  %v716_v42 = vsel %vm712_vm15, %v4857_v20, %v4863_v13  ;;  %v623_v19 = vpop.permute.xlu1 %622  ;;  %v4865_v49 = vld [vmem:[#allocation131_spill] sm:$0xff]  ;;  %v4870_v13 = vld [vmem:[#allocation29_spill] sm:$0xff] }
 0x2d3   :  { %v748_v57 = vmul.f32 %v3387_v8, %v718_v22  ;;  %v876_v41 = vsel %vm872_vm0, %v3463_v51, %v3136_v16  ;;  %v453_v62 = vadd.f32 %v445_v27, %v373_v25  ;;  %v452_v28 = vadd.f32 %v444_v38, %v372_v44  ;;  %v4864_v8 = vld [vmem:[#allocation141_spill] sm:$0xff] }
 0x2d4   :  { %v524_v45 = vmul.f32 %v4860_v29, %v508_v40  ;;  %v527_v60 = vmul.f32 %v4860_v29, %v511_v17  ;;  %v614_v52 = vadd.f32 %v606_v31, %v534_v18  ;;  %v878_v20 = vsel %vm872_vm0, %v3125_v32, %v3463_v51  ;;  %v3893_v44 = vpop.permute.xlu0 %1484  ;;  %v4866_v29 = vld [vmem:[#allocation77_spill] sm:$0xff] }
 0x2d5   :  { %v533_v37 = vadd.f32 %v525_v11, %v453_v62  ;;  %v636_v22 = vsel %vm632_vm13, %v623_v19, %v4864_v8  ;;  %v638_v16 = vsel %vm632_vm13, %v4865_v49, %v623_v19  ;;  %v3899_v32 = vsel %vm1256_vm4, %v4866_v29, %v4794_v26  ;;  %v4867_v18 = vld [vmem:[#allocation17_spill] sm:$0xff] }
 0x2d6   :  { %v532_v27 = vadd.f32 %v524_v45, %v452_v28  ;;  %v535_v38 = vadd.f32 %v527_v60, %v455_v23  ;;  %v668_v25 = vmul.f32 %v3290_v58, %v638_v16  ;;  %v669_v31 = vmul.f32 %v3294_v53, %v636_v22  ;;  %v631_v40 = vpop.permute.xlu1 %630 }
 0x2d7   :  { %v1474_v51 = vadd.f32 %v1466_v54, %v1394_v14  ;;  %v605_v11 = vmul.f32 %v4855_v46, %v589_v12  ;;  %v749_v7 = vmul.f32 %v3396_v24, %v716_v42  ;;  %v908_v5 = vmul.f32 %v4769_v34, %v878_v20  ;;  %v4868_v24 = vld [vmem:[#allocation35_spill] sm:$0xff]  ;;  %v4869_v46 = vld [vmem:[#allocation28_spill] sm:$0xff] }
 0x2d8   :  { %v612_v36 = vadd.f32 %v604_v55, %v532_v27  ;;  %v684_v23 = vmul.f32 %v4867_v18, %v668_v25  ;;  %v685_v58 = vmul.f32 %v4867_v18, %v669_v31  ;;  %v615_v53 = vadd.f32 %v607_v59, %v535_v38  ;;  %v1489_v59 = vpop.permute.xlu0 %1488  ;;  %v4871_v20 = vld [vmem:[#allocation39_spill] sm:$0xff] }
 0x2d9   :  { %v909_v17 = vmul.f32 %v4770_v2, %v876_v41  ;;  %v634_v26 = vsel %vm632_vm13, %v4864_v8, %v631_v40  ;;  %v640_v54 = vsel %vm632_vm13, %v631_v40, %v4865_v49  ;;  %v764_v14 = vmul.f32 %v4868_v24, %v748_v57  ;;  %v4872_v8 = vld [vmem:[#allocation144_spill] sm:$0xff] }
 0x2da   :  { %v613_v12 = vadd.f32 %v605_v11, %v533_v37  ;;  %v670_v55 = vmul.f32 %v4869_v46, %v634_v26  ;;  %v671_v42 = vmul.f32 %v4870_v13, %v640_v54  ;;  %v765_v34 = vmul.f32 %v4868_v24, %v749_v7  ;;  %v783_v19 = vpop.permute.xlu1 %782  ;;  %v4873_v49 = vld [vmem:[#allocation44_spill] sm:$0xff]  ;;  %v4874_v11 = vld [vmem:[#allocation79_spill] sm:$0xff]  ;;  %v4879_v13 = vld [vmem:[#allocation33_spill] sm:$0xff] }
 0x2db   :  { %v766_v2 = vmul.f32 %v4868_v24, %v3434_v0  ;;  %v692_v41 = vadd.f32 %v684_v23, %v612_v36  ;;  %v3922_v62 = vsel %vm1496_vm7, %v3893_v44, %v1489_v59  ;;  %v767_v57 = vmul.f32 %v4868_v24, %v3437_v33  ;;  %v4878_v46 = vld [vmem:[#allocation32_spill] sm:$0xff] }
 0x2dc   :  { %v693_v28 = vadd.f32 %v685_v58, %v613_v12  ;;  %v686_v45 = vmul.f32 %v4867_v18, %v670_v55  ;;  %v687_v60 = vmul.f32 %v4867_v18, %v671_v42  ;;  %v924_v37 = vmul.f32 %v4871_v20, %v908_v5  ;;  %v3940_v31 = vpop.permute.xlu0 %1492  ;;  %v4875_v18 = vld [vmem:[#allocation26_spill] sm:$0xff]  ;;  %v4876_v5 = vld [vmem:[#allocation25_spill] sm:$0xff] }
 0x2dd   :  { %v925_v0 = vmul.f32 %v4871_v20, %v909_v17  ;;  %v796_v22 = vsel %vm792_vm14, %v783_v19, %v4872_v8  ;;  %v798_v33 = vsel %vm792_vm14, %v4873_v49, %v783_v19  ;;  %v926_v16 = vmul.f32 %v4871_v20, %v3516_v15 }
 0x2de   :  { %v694_v27 = vadd.f32 %v686_v45, %v614_v52  ;;  %v695_v38 = vadd.f32 %v687_v60, %v615_v53  ;;  %v828_v25 = vmul.f32 %v3300_v1, %v798_v33  ;;  %v1133_v7 = vmul.f32 %v4805_v9, %v4874_v11  ;;  %v791_v52 = vpop.permute.xlu1 %790 }
 0x2df   :  { %v772_v36 = vadd.f32 %v764_v14, %v692_v41  ;;  %v829_v23 = vmul.f32 %v4875_v18, %v796_v22  ;;  %v1497_v58 = vsel %vm1496_vm7, %v1489_v59, %v3940_v31  ;;  %v773_v40 = vadd.f32 %v765_v34, %v693_v28  ;;  %v4877_v14 = vld [vmem:[#allocation58_spill] sm:$0xff]  ;;  %v4880_v34 = vld [vmem:[#allocation148_spill] sm:$0xff]  ;;  %v4881_v41 = vld [vmem:[#allocation45_spill] sm:$0xff] }
 0x2e0   :  { %v844_v17 = vmul.f32 %v4876_v5, %v828_v25  ;;  %v1530_v15 = vmul.f32 %v3727_v21, %v1497_v58  ;;  %v774_v53 = vadd.f32 %v766_v2, %v694_v27  ;;  %v775_v26 = vadd.f32 %v767_v57, %v695_v38  ;;  %v1561_v59 = vpop.permute.xlu0 %1560  ;;  %v4882_v28 = vld [vmem:[#allocation63_spill] sm:$0xff]  ;;  %v4883_v27 = vld [vmem:[#allocation100_spill] sm:$0xff]  ;;  %v4884_v38 = vld [vmem:[#allocation61_spill] sm:$0xff] }
 0x2e1   :  { %v845_v1 = vmul.f32 %v4876_v5, %v829_v23  ;;  %v794_v9 = vsel %vm792_vm14, %v4872_v8, %v791_v52  ;;  %v800_v54 = vsel %vm792_vm14, %v791_v52, %v4873_v49  ;;  %v927_v2 = vmul.f32 %v4871_v20, %v4880_v34  ;;  %v4885_v20 = vld [vmem:[#allocation76_spill] sm:$0xff]  ;;  %v4887_v18 = vld [vmem:[#allocation31_spill] sm:$0xff]  ;;  %v4888_v58 = vld [vmem:[#allocation14_spill] sm:$0xff] }
 0x2e2   :  { %v852_v24 = vadd.f32 %v844_v17, %v772_v36  ;;  %v1546_v12 = vmul.f32 %v4877_v14, %v1530_v15  ;;  %v830_v55 = vmul.f32 %v4878_v46, %v794_v9  ;;  %v831_v42 = vmul.f32 %v4879_v13, %v800_v54  ;;  %v1007_v33 = vpop.permute.xlu1 %1006  ;;  %v4886_v36 = vld [vmem:[#allocation147_spill] sm:$0xff]  ;;  %v4890_v52 = vld [vmem:[#allocation36_spill] sm:$0xff] }
 0x2e3   :  { %v1149_v57 = vmul.f32 %v4881_v41, %v1133_v7  ;;  %v3965_v45 = vmul.f32 %v4834_v3, %v4882_v28  ;;  %v853_v60 = vadd.f32 %v845_v1, %v773_v40  ;;  %v1293_v25 = vmul.f32 %v4884_v38, %v4883_v27  ;;  %v4889_v17 = vld [vmem:[#allocation71_spill] sm:$0xff]  ;;  %v4896_v27 = vld [vmem:[#allocation125_spill] sm:$0xff] }
 0x2e4   :  { %v932_v19 = vadd.f32 %v924_v37, %v852_v24  ;;  %v3967_v8 = vadd.f32 %v1546_v12, %v1474_v51  ;;  %v846_v22 = vmul.f32 %v4876_v5, %v830_v55  ;;  %v847_v49 = vmul.f32 %v4876_v5, %v831_v42  ;;  %v1565_v5 = vpop.permute.xlu0 %1564  ;;  %v4892_v55 = vld [vmem:[#allocation91_spill] sm:$0xff] }
 0x2e5   :  { %v933_v11 = vadd.f32 %v925_v0, %v853_v60  ;;  %v1020_v7 = vsel %vm1016_vm1, %v1007_v33, %v4885_v20  ;;  %v1022_v3 = vsel %vm1016_vm1, %v4886_v36, %v1007_v33  ;;  %v1150_v15 = vmul.f32 %v4881_v41, %v4889_v17  ;;  %v4893_v42 = vld [vmem:[#allocation51_spill] sm:$0xff] }
 0x2e6   :  { %v854_v37 = vadd.f32 %v846_v22, %v774_v53  ;;  %v855_v51 = vadd.f32 %v847_v49, %v775_v26  ;;  %v1053_v23 = vmul.f32 %v4887_v18, %v1022_v3  ;;  %v1054_v40 = vmul.f32 %v4888_v58, %v1020_v7  ;;  %v4891_v26 = vld [vmem:[#allocation42_spill] sm:$0xff]  ;;  %v1015_v46 = vpop.permute.xlu1 %1014 }
 0x2e7   :  { %v3985_v0 = vsel %vm1576_vm8, %v1561_v59, %v1565_v5  ;;  %v948_v1 = vadd.f32 %v4890_v52, %v932_v19  ;;  %v949_v9 = vadd.f32 %v4890_v52, %v933_v11  ;;  %v1151_v13 = vmul.f32 %v4881_v41, %v4892_v55  ;;  %v4895_v19 = vld [vmem:[#allocation134_spill] sm:$0xff] }
 0x2e8   :  { %v3989_v54 = vadd.f32 %v926_v16, %v854_v37  ;;  %v3991_v53 = vadd.f32 %v927_v2, %v855_v51  ;;  %v1069_v24 = vmul.f32 %v4891_v26, %v1053_v23  ;;  %v1070_v12 = vmul.f32 %v4891_v26, %v1054_v40  ;;  %v4894_v2 = vld [vmem:[#allocation123_spill] sm:$0xff]  ;;  %v1569_v33 = vpop.permute.xlu0 %1568  ;;  %v4897_v7 = vld [vmem:[#allocation38_spill] sm:$0xff]  ;;  %v4898_v37 = vld [vmem:[#allocation37_spill] sm:$0xff] }
 0x2e9   :  { %v1309_v34 = vmul.f32 %v4893_v42, %v1293_v25  ;;  %v1018_v28 = vsel %vm1016_vm1, %v4885_v20, %v1015_v46  ;;  %v1024_v16 = vsel %vm1016_vm1, %v1015_v46, %v4886_v36  ;;  %vm956_vm9 = vcmp.ge.f32.partialorder %v948_v1, 0.0  ;;  %v4899_v40 = vld [vmem:[#allocation67_spill] sm:$0xff]  ;;  %v4901_v46 = vld [vmem:[#allocation126_spill] sm:$0xff] }
 0x2ea   :  { %v1078_v60 = vadd.f32 %v1070_v12, %v4894_v2  ;;  %v1052_v22 = vmul.f32 %v4895_v19, %v1024_v16  ;;  %v1055_v49 = vmul.f32 %v4785_v10, %v1018_v28  ;;  %v1077_v11 = vadd.f32 %v1069_v24, %v4896_v27  ;;  %v1167_v10 = vpop.permute.xlu1 %1166  ;;  %v4900_v24 = vld [vmem:[#allocation62_spill] sm:$0xff]  ;;  %v4902_v28 = vld [vmem:[#allocation137_spill] sm:$0xff] }
 0x2eb   :  { %v4010_v25 = vsel %vm1576_vm8, %v1565_v5, %v1569_v33  ;;  %v972_v20 = vmul.f32 %v4897_v7, %v948_v1  ;;  %v973_v3 = vmul.f32 %v4897_v7, %v949_v9  ;;  %v1310_v36 = vmul.f32 %v4893_v42, %v4898_v37  ;;  %v4903_v16 = vld [vmem:[#allocation138_spill] sm:$0xff] }
 0x2ec   :  { %v1068_v51 = vmul.f32 %v4891_v26, %v1052_v22  ;;  %v1071_v18 = vmul.f32 %v4891_v26, %v1055_v49  ;;  %vm957_vm10 = vcmp.ge.f32.partialorder %v949_v9, 0.0  ;;  %v1158_v23 = vadd.f32 %v1150_v15, %v1078_v60  ;;  %v1573_v15 = vpop.permute.xlu0 %1572  ;;  %v4905_v49 = vld [vmem:[#allocation48_spill] sm:$0xff] }
 0x2ed   :  { %v1180_v58 = vsel %vm1176_vm3, %v1167_v10, %v3641_v61  ;;  %v1182_v5 = vsel %vm1176_vm3, %v4899_v40, %v1167_v10  ;;  %v4024_v17 = vsel %vm956_vm9, %v948_v1, %v972_v20  ;;  %v1292_v12 = vmul.f32 %v4900_v24, %v3658_v43 }
 0x2ee   :  { %v1079_v55 = vadd.f32 %v1071_v18, %v4901_v46  ;;  %v1213_v26 = vmul.f32 %v4902_v28, %v1182_v5  ;;  %v1214_v2 = vmul.f32 %v4903_v16, %v1180_v58  ;;  %v1157_v60 = vadd.f32 %v1149_v57, %v1077_v11  ;;  %v1175_v18 = vpop.permute.xlu1 %1174  ;;  %v4906_v57 = vld [vmem:[#allocation121_spill] sm:$0xff]  ;;  %v4907_v5 = vld [vmem:[#allocation140_spill] sm:$0xff]  ;;  %v4909_v28 = vld [vmem:[#allocation146_spill] sm:$0xff] }
 0x2ef   :  { %v4031_v19 = vsel %vm957_vm10, %v949_v9, %v973_v3  ;;  %v1577_v22 = vsel %vm1576_vm8, %v1569_v33, %v1573_v15  ;;  %v1583_v1 = vsel %vm1576_vm8, %v1573_v15, %v1561_v59  ;;  %v1076_v9 = vadd.f32 %v1068_v51, %v4906_v57 }
 0x2f0   :  { %4904 = vst [vmem:[#allocation65_spill] sm:$0xff] %v4031_v19  ;;  %v1229_v27 = vmul.f32 %v4905_v49, %v1213_v26  ;;  %v1230_v43 = vmul.f32 %v4905_v49, %v1214_v2  ;;  %v1696_v20 = vadd.f32 %v4031_v19, %v4024_v17  ;;  %v4042_v37 = vmul.f32 %v3761_v50, %v1577_v22  ;;  %v4056_v51 = vpop.permute.xlu0 %1644  ;;  %v4935_v19 = vld [vmem:[#allocation135_spill] sm:$0xff] }
 0x2f1   :  { %v4046_v11 = vmul.f32 %v3765_v6, %v1583_v1  ;;  %v1159_v33 = vadd.f32 %v1151_v13, %v1079_v55  ;;  %v1178_v59 = vsel %vm1176_vm3, %v3641_v61, %v1175_v18  ;;  %v1184_v58 = vsel %vm1176_vm3, %v1175_v18, %v4899_v40  ;;  %v4908_v61 = vld [vmem:[#allocation70_spill] sm:$0xff]  ;;  %v4912_v1 = vld [vmem:[#allocation83_spill] sm:$0xff]  ;;  %v4916_v18 = vld [vmem:[#allocation56_spill] sm:$0xff] }
 0x2f2   :  { %v1237_v3 = vadd.f32 %v1229_v27, %v1157_v60  ;;  %v1238_v10 = vadd.f32 %v1230_v43, %v1158_v23  ;;  %1697 = vadd.xlane.f32.xlu0 %v1696_v20  ;;  %v1215_v46 = vmul.f32 %v4907_v5, %v1178_v59  ;;  %vm953_vm12 = vcmp.ge.f32.partialorder %v3739_v47, 0.0  ;;  %v1327_v2 = vpop.permute.xlu1 %1326  ;;  %v4913_v27 = vld [vmem:[#allocation60_spill] sm:$0xff]  ;;  %v4915_v20 = vld [vmem:[#allocation43_spill] sm:$0xff] }
 0x2f3   :  { %v1148_v13 = vmul.f32 %v4881_v41, %v3965_v45  ;;  %v1452_v55 = vmul.f32 %v4908_v61, %v3694_v4  ;;  %v1453_v23 = vmul.f32 %v4909_v28, %v3689_v35  ;;  %v1212_v26 = vmul.f32 %v4809_v48, %v1184_v58  ;;  %v4910_v45 = vld [vmem:[#allocation94_spill] sm:$0xff]  ;;  %v4911_v35 = vld [vmem:[#allocation69_spill] sm:$0xff] }
 0x2f4   :  { %vm954_vm13 = vcmp.ge.f32.partialorder %v3784_v63, 0.0  ;;  %v1289_v40 = vmul.f32 %v4884_v38, %v3899_v32  ;;  %v1231_v16 = vmul.f32 %v4905_v49, %v1215_v46  ;;  %v1317_v15 = vadd.f32 %v1309_v34, %v1237_v3  ;;  %v4914_v34 = vld [vmem:[#allocation68_spill] sm:$0xff]  ;;  %v962_v3 = vpop.permute.xlu0 %961 }
 0x2f5   :  { %v1318_v60 = vadd.f32 %v1310_v36, %v1238_v10  ;;  %v1156_v22 = vadd.f32 %v1148_v13, %v1076_v9  ;;  %v1228_v41 = vmul.f32 %v4905_v49, %v1212_v26  ;;  %v1340_v4 = vsel %vm1336_vm5, %v1327_v2, %v4910_v45  ;;  %v4917_v10 = vld [vmem:[#allocation53_spill] sm:$0xff] }
 0x2f6   :  { %v1342_v48 = vsel %vm1336_vm5, %v4911_v35, %v1327_v2  ;;  %vm955_vm14 = vcmp.ge.f32.partialorder %v4912_v1, 0.0  ;;  %v1308_v32 = vmul.f32 %v4893_v42, %v1292_v12  ;;  %v1239_v38 = vadd.f32 %v1231_v16, %v1159_v33  ;;  %v1335_v13 = vpop.permute.xlu1 %1334 }
 0x2f7   :  { %v1372_v43 = vmul.f32 %v4913_v27, %v1342_v48  ;;  %v1373_v36 = vmul.f32 %v4914_v34, %v1340_v4  ;;  %v1311_v49 = vmul.f32 %v4893_v42, %v4915_v20  ;;  %v1468_v57 = vmul.f32 %v4916_v18, %v1452_v55  ;;  %v4918_v48 = vld [vmem:[#allocation142_spill] sm:$0xff]  ;;  %v4921_v20 = vld [vmem:[#allocation84_spill] sm:$0xff] }
 0x2f8   :  { %v1469_v9 = vmul.f32 %v4916_v18, %v1453_v23  ;;  %v1236_v59 = vadd.f32 %v1228_v41, %v1156_v22  ;;  %v968_v12 = vmul.f32 %v962_v3, %v3736_v30  ;;  %v969_v33 = vmul.f32 %v962_v3, %v3739_v47 }
 0x2f9   :  { %v1388_v58 = vmul.f32 %v4917_v10, %v1372_v43  ;;  %v1389_v46 = vmul.f32 %v4917_v10, %v1373_v36  ;;  %v970_v16 = vmul.f32 %v962_v3, %v3784_v63  ;;  %v971_v42 = vmul.f32 %v962_v3, %v4912_v1  ;;  %v4919_v43 = vld [vmem:[#allocation143_spill] sm:$0xff] }
 0x2fa   :  { %v1316_v26 = vadd.f32 %v1308_v32, %v1236_v59  ;;  %v1319_v2 = vadd.f32 %v1311_v49, %v1239_v38  ;;  %v1338_v23 = vsel %vm1336_vm5, %v4910_v45, %v1335_v13  ;;  %v1344_v22 = vsel %vm1336_vm5, %v1335_v13, %v4911_v35  ;;  %v4920_v45 = vld [vmem:[#allocation101_spill] sm:$0xff]  ;;  %v4922_v49 = vld [vmem:[#allocation103_spill] sm:$0xff]  ;;  %v4926_v13 = vld [vmem:[#allocation116_spill] sm:$0xff] }
 0x2fb   :  { %v1397_v55 = vadd.f32 %v1389_v46, %v1317_v15  ;;  %v4100_v41 = vsel %vm952_vm11, %v3736_v30, %v968_v12  ;;  %v1374_v32 = vmul.f32 %v4918_v48, %v1338_v23  ;;  %v1375_v34 = vmul.f32 %v4919_v43, %v1344_v22  ;;  %v4924_v46 = vld [vmem:[#allocation46_spill] sm:$0xff]  ;;  %v4930_v48 = vld [vmem:[#allocation75_spill] sm:$0xff] }
 0x2fc   :  { %v1396_v4 = vadd.f32 %v1388_v58, %v1316_v26  ;;  %v4107_v15 = vsel %vm953_vm12, %v3739_v47, %v969_v33  ;;  %v1263_v35 = vsel %vm1256_vm4, %v4920_v45, %v4866_v29  ;;  %v4120_v36 = vsel %vm954_vm13, %v3784_v63, %v970_v16  ;;  %v4923_v58 = vld [vmem:[#allocation120_spill] sm:$0xff]  ;;  %v4925_v12 = vld [vmem:[#allocation50_spill] sm:$0xff] }
 0x2fd   :  { %v1693_v38 = vadd.f32 %v4107_v15, %v4100_v41  ;;  %v4115_v30 = vadd.f32 %v1469_v9, %v1397_v55  ;;  %v1419_v47 = vsel %vm1416_vm6, %v4922_v49, %v4921_v20  ;;  %v1390_v59 = vmul.f32 %v4917_v10, %v1374_v32  ;;  %v4927_v26 = vld [vmem:[#allocation104_spill] sm:$0xff]  ;;  %v4928_v55 = vld [vmem:[#allocation119_spill] sm:$0xff] }
 0x2fe   :  { %v1391_v3 = vmul.f32 %v4917_v10, %v1375_v34  ;;  %v4128_v29 = vadd.f32 %v1468_v57, %v1396_v4  ;;  %v1144_v9 = vmul.f32 %v4924_v46, %v4923_v58  ;;  %v1305_v33 = vmul.f32 %v4925_v12, %v1289_v40  ;;  %v4929_v57 = vld [vmem:[#allocation95_spill] sm:$0xff]  ;;  %v4932_v34 = vld [vmem:[#allocation78_spill] sm:$0xff]  ;;  %v4934_v58 = vld [vmem:[#allocation41_spill] sm:$0xff] }
 0x2ff   :  { %v4135_v63 = vrot.slane %v4927_v26, %v4926_v13  ;;  %1694 = vadd.xlane.f32.xlu1 %v1693_v38  ;;  %v4140_v16 = vsel %vm955_vm14, %v4912_v1, %v971_v42  ;;  %v1470_v10 = vmul.f32 %v4916_v18, %v4928_v55  ;;  %v1471_v23 = vmul.f32 %v4916_v18, %v4929_v57  ;;  %v4931_v40 = vld [vmem:[#allocation59_spill] sm:$0xff]  ;;  %v4933_v42 = vld [vmem:[#allocation24_spill] sm:$0xff] }
 0x300   :  { %v1398_v22 = vadd.f32 %v1390_v59, %v1318_v60  ;;  %v1399_v4 = vadd.f32 %v1391_v3, %v1319_v2  ;;  %v1233_v32 = vadd.f32 %v4931_v40, %v4930_v48  ;;  %v1257_v38 = vsel %vm1256_vm4, %v4932_v34, %v4920_v45  ;;  %v4936_v59 = vld [vmem:[#allocation87_spill] sm:$0xff]  ;;  %v4937_v3 = vld [vmem:[#allocation80_spill] sm:$0xff]  ;;  %v4940_v40 = vld [vmem:[#allocation49_spill] sm:$0xff] }
 0x301   :  { %v1288_v20 = vmul.f32 %v4900_v24, %v1263_v35  ;;  %v1449_v1 = vmul.f32 %v4909_v28, %v1419_v47  ;;  %v995_v55 = vmul.f32 %v4934_v58, %v4933_v42  ;;  %v1147_v18 = vmul.f32 %v4924_v46, %v4935_v19  ;;  %v4938_v45 = vld [vmem:[#allocation23_spill] sm:$0xff]  ;;  %v4939_v35 = vld [vmem:[#allocation81_spill] sm:$0xff]  ;;  %v4941_v46 = vld [vmem:[#allocation74_spill] sm:$0xff] }
 0x302   :  { %v4158_v60 = vadd.f32 %v1470_v10, %v1398_v22  ;;  %v4160_v2 = vadd.f32 %v1471_v23, %v1399_v4  ;;  %v1341_v57 = vsel %vm1336_vm5, %v4937_v3, %v4936_v59  ;;  %v1152_v48 = vadd.f32 %v1144_v9, %v4938_v45  ;;  %v4942_v10 = vld [vmem:[#allocation47_spill] sm:$0xff]  ;;  %v4943_v22 = vld [vmem:[#allocation145_spill] sm:$0xff]  ;;  %v4944_v34 = vld [vmem:[#allocation102_spill] sm:$0xff] }
 0x303   :  { %v1313_v24 = vadd.f32 %v1305_v33, %v1233_v32  ;;  %v1529_v28 = vmul.f32 %v4135_v63, %v3922_v62  ;;  %v1075_v47 = vadd.f32 %v4939_v35, %v995_v55  ;;  %v1211_v19 = vmul.f32 %v4907_v5, %v4940_v40  ;;  %v4945_v42 = vld [vmem:[#allocation54_spill] sm:$0xff]  ;;  %v4946_v9 = vld [vmem:[#allocation55_spill] sm:$0xff]  ;;  %v4947_v32 = vld [vmem:[#allocation64_spill] sm:$0xff] }
 0x304   :  { %v1224_v23 = vmul.f32 %v4942_v10, %v4941_v46  ;;  %v1291_v4 = vmul.f32 %v4943_v22, %v1257_v38  ;;  %v1385_v58 = vmul.f32 %v4945_v42, %v4944_v34  ;;  %v1304_v59 = vmul.f32 %v4925_v12, %v1288_v20  ;;  %v4948_v5 = vld [vmem:[#allocation88_spill] sm:$0xff]  ;;  %v4949_v38 = vld [vmem:[#allocation82_spill] sm:$0xff] }
 0x305   :  { %v1465_v33 = vmul.f32 %v4946_v9, %v1449_v1  ;;  %v4181_v62 = vrot.slane %v4947_v32, %v4926_v13  ;;  %v1368_v55 = vmul.f32 %v4913_v27, %v1341_v57  ;;  %v1343_v45 = vsel %vm1336_vm5, %v4948_v5, %v4937_v3  ;;  %v4950_v1 = vld [vmem:[#allocation105_spill] sm:$0xff] }
 0x306   :  { %v1155_v35 = vadd.f32 %v1147_v18, %v1075_v47  ;;  %v1421_v40 = vsel %vm1416_vm6, %v4949_v38, %v4922_v49  ;;  %v1232_v20 = vadd.f32 %v1224_v23, %v1152_v48  ;;  %v1393_v46 = vadd.f32 %v1385_v58, %v1313_v24  ;;  %v4951_v23 = vld [vmem:[#allocation73_spill] sm:$0xff]  ;;  %v1618_v58 = vpop.permute.xlu1 %1617 }
 0x307   :  { %v1423_v13 = vsel %vm1416_vm6, %v4950_v1, %v4949_v38  ;;  %v1545_v27 = vmul.f32 %v4877_v14, %v1529_v28  ;;  %v1227_v57 = vmul.f32 %v4942_v10, %v1211_v19  ;;  %v1307_v22 = vmul.f32 %v4925_v12, %v1291_v4  ;;  %v4952_v10 = vld [vmem:[#allocation117_spill] sm:$0xff]  ;;  %v4953_v4 = vld [vmem:[#allocation16_spill] sm:$0xff] }
 0x308   :  { %v1312_v3 = vadd.f32 %v1304_v59, %v1232_v20  ;;  %v1448_v18 = vmul.f32 %v4908_v61, %v1421_v40  ;;  %v1473_v47 = vadd.f32 %v1465_v33, %v1393_v46  ;;  %v1609_v49 = vmul.f32 %v4181_v62, %v4010_v25 }
 0x309   :  { %v1371_v48 = vmul.f32 %v4919_v43, %v1343_v45  ;;  %v1235_v24 = vadd.f32 %v1227_v57, %v1155_v35  ;;  %v1451_v34 = vmul.f32 %v4951_v23, %v1423_v13  ;;  %v1384_v5 = vmul.f32 %v4945_v42, %v1368_v55 }
 0x30a   :  { %v1553_v28 = vadd.f32 %v1545_v27, %v1473_v47  ;;  %v1625_v38 = vmul.f32 %v1618_v58, %v1609_v49  ;;  %v1626_v19 = vmul.f32 %v1618_v58, %v4042_v37  ;;  %v1511_v61 = vrot.slane %v4927_v26, %v4952_v10  ;;  %v1481_v40 = vpop.permute.xlu1 %1480 }
 0x30b   :  { %v1315_v12 = vadd.f32 %v1307_v22, %v1235_v24  ;;  %v1523_v59 = vrot.slane %v4927_v26, %v4953_v4  ;;  %v1392_v25 = vadd.f32 %v1384_v5, %v1312_v3  ;;  %v1464_v43 = vmul.f32 %v4946_v9, %v1448_v18 }
 0x30c   :  { %v1633_v33 = vadd.f32 %v1625_v38, %v1553_v28  ;;  %v1634_v45 = vadd.f32 %v1626_v19, %v3967_v8  ;;  %v1387_v35 = vmul.f32 %v4945_v42, %v1371_v48  ;;  %v1467_v55 = vmul.f32 %v4946_v9, %v1451_v34  ;;  %v4954_v38 = vld [vmem:[#allocation57_spill] sm:$0xff] }
 0x30d   :  { %v1591_v37 = vrot.slane %v4947_v32, %v4952_v10  ;;  %v1501_v26 = vsel %vm1496_vm7, %v1481_v40, %v3893_v44  ;;  %v1503_v8 = vsel %vm1496_vm7, %v3940_v31, %v1481_v40  ;;  %v1472_v13 = vadd.f32 %v1464_v43, %v1392_v25 }
 0x30e   :  { %v4217_v20 = vadd.f32 %v4056_v51, %v1633_v33  ;;  %v4220_v46 = vadd.f32 %v4056_v51, %v1634_v45  ;;  %v1395_v42 = vadd.f32 %v1387_v35, %v1315_v12  ;;  %v1528_v9 = vmul.f32 %v1511_v61, %v1501_v26  ;;  %v1483_v3 = vpop.permute.xlu1 %1482 }
 0x30f   :  { %v1531_v1 = vmul.f32 %v1523_v59, %v1503_v8  ;;  %v1608_v27 = vmul.f32 %v1591_v37, %v3985_v0  ;;  %v1627_v47 = vmul.f32 %v1618_v58, %v4046_v11  ;;  %vm1711_vm9 = vcmask 72760  }
 0x310   :  { %v1475_v32 = vadd.f32 %v1467_v55, %v1395_v42  ;;  %v1544_v57 = vmul.f32 %v4877_v14, %v1528_v9  ;;  %vm1661_vm4 = vcmp.ge.f32.partialorder %v4217_v20, 0.0  ;;  %vm1759_vm10 = vcmask 15360  }
 0x311   :  { %v1547_v22 = vmul.f32 %v4877_v14, %v1531_v1  ;;  %v1624_v18 = vmul.f32 %v1618_v58, %v1608_v27 }
 0x312   :  { %v1552_v44 = vadd.f32 %v1544_v57, %v1472_v13  ;;  %v1487_v31 = vpop.permute.xlu1 %1486 }
 0x313   :  { %v1555_v49 = vadd.f32 %v1547_v22, %v1475_v32  ;;  %v1502_v25 = vsel %vm1496_vm7, %v1483_v3, %v1487_v31  ;;  %v950_v32 = vadd.f32 %v4890_v52, %v3989_v54 }
 0x314   :  { %v1632_v48 = vadd.f32 %v1624_v18, %v1552_v44 }
 0x315   :  { %v1635_v24 = vadd.f32 %v1627_v47, %v1555_v49  ;;  %v1674_v47 = vpop.permute.xlu0 %1673  ;;  %vm958_vm15 = vcmp.ge.f32.partialorder %v950_v32, 0.0 }
 0x316   :  { %v4233_v23 = vadd.f32 %v4056_v51, %v1632_v48  ;;  %v1491_v0 = vpop.permute.xlu1 %1490  ;;  %v974_v48 = vmul.f32 %v4897_v7, %v950_v32 }
 0x317   :  { %v4236_v34 = vadd.f32 %v4056_v51, %v1635_v24  ;;  %v1500_v51 = vsel %vm1496_vm7, %v1487_v31, %v1491_v0 }
 0x318   :  { %v1533_v45 = vmul.f32 %v4135_v63, %v1500_v51  ;;  %vm1660_vm3 = vcmp.ge.f32.partialorder %v4233_v23, 0.0 }
 0x31a   :  { %v1495_v5 = vpop.permute.xlu1 %1494  ;;  %v1549_v40 = vmul.f32 %v4954_v38, %v1533_v45 }
 0x31b   :  { %v1498_v14 = vsel %vm1496_vm7, %v1491_v0, %v1495_v5  ;;  %v1504_v28 = vsel %vm1496_vm7, %v1495_v5, %v1483_v3  ;;  %vm1662_vm7 = vcmp.ge.f32.partialorder %v4220_v46, 0.0 }
 0x31c   :  { %v1534_v11 = vmul.f32 %v3727_v21, %v1498_v14  ;;  %v1535_v58 = vmul.f32 %v1523_v59, %v1504_v28  ;;  %v1532_v21 = vmul.f32 %v1511_v61, %v1502_v25  ;;  %v1557_v63 = vadd.f32 %v1549_v40, %v4115_v30  ;;  %v4323_v40 = vld [vmem:[#allocation7] sm:$0xff] }
 0x31d   :  { %v951_v30 = vadd.f32 %v4890_v52, %v3991_v53  ;;  %v4284_v28 = vsel %vm958_vm15, %v950_v32, %v974_v48 }
 0x31e   :  { %v1550_v19 = vmul.f32 %v4954_v38, %v1534_v11  ;;  %v1551_v12 = vmul.f32 %v4954_v38, %v1535_v58  ;;  %v1563_v4 = vpop.permute.xlu1 %1562  ;;  %v1548_v8 = vmul.f32 %v4954_v38, %v1532_v21 }
 0x31f   :  { %vm959_vm2 = vcmp.ge.f32.partialorder %v951_v30, 0.0 }
 0x320   :  { %v1558_v43 = vadd.f32 %v1550_v19, %v4158_v60  ;;  %v1559_v33 = vadd.f32 %v1551_v12, %v4160_v2  ;;  %v1556_v1 = vadd.f32 %v1548_v8, %v4128_v29 }
 0x322   :  { %v1567_v35 = vpop.permute.xlu1 %1566 }
 0x323   :  { %v1582_v59 = vsel %vm1576_vm8, %v1563_v4, %v1567_v35 }
 0x324   :  { %v1612_v55 = vmul.f32 %v1591_v37, %v1582_v59 }
 0x326   :  { %v1571_v26 = vpop.permute.xlu1 %1570  ;;  %v1628_v2 = vmul.f32 %v3868_v56, %v1612_v55  ;;  %v1692_v55 = vld [vmem:[#allocation7] sm:$0x1] }
 0x327   :  { %v1580_v42 = vsel %vm1576_vm8, %v1567_v35, %v1571_v26 }
 0x328   :  { %v1613_v60 = vmul.f32 %v4181_v62, %v1580_v42  ;;  %v1636_v22 = vadd.f32 %v1628_v2, %v1556_v1 }
 0x32a   :  { %v1629_v61 = vmul.f32 %v3868_v56, %v1613_v60  ;;  %v1575_v9 = vpop.permute.xlu1 %1574 }
 0x32b   :  { %v1578_v37 = vsel %vm1576_vm8, %v1571_v26, %v1575_v9  ;;  %v1584_v13 = vsel %vm1576_vm8, %v1575_v9, %v1563_v4  ;;  %vm1663_vm8 = vcmp.ge.f32.partialorder %v4236_v34, 0.0  ;;  %v4335_v26 = vld [vmem:[#allocation7 + $0x10] sm:$0xff] }
 0x32c   :  { %v1637_v27 = vadd.f32 %v1629_v61, %v1557_v63  ;;  %v1614_v62 = vmul.f32 %v3761_v50, %v1578_v37  ;;  %v1615_v57 = vmul.f32 %v3765_v6, %v1584_v13  ;;  %v975_v50 = vmul.f32 %v4897_v7, %v951_v30 }
 0x32e   :  { %v1630_v29 = vmul.f32 %v3868_v56, %v1614_v62  ;;  %v1631_v3 = vmul.f32 %v3868_v56, %v1615_v57  ;;  %v4290_v11 = vsel %vm959_vm2, %v951_v30, %v975_v50 }
 0x32f   :  { %v1650_v18 = vpop.permute.xlu1 %1649 }
 0x330   :  { %v1656_v39 = vadd.f32 %v1650_v18, %v1636_v22  ;;  %v1657_v44 = vadd.f32 %v1650_v18, %v1637_v27  ;;  %v1638_v49 = vadd.f32 %v1630_v29, %v1558_v43  ;;  %v1639_v54 = vadd.f32 %v1631_v3, %v1559_v33 }
 0x331   :  { %v1871_v43 = vadd.f32 %v4290_v11, %v4284_v28 }
 0x332   :  { %v1680_v6 = vmul.f32 %v1674_v47, %v1656_v39  ;;  %v1681_v24 = vmul.f32 %v1674_v47, %v1657_v44  ;;  %vm1664_vm0 = vcmp.ge.f32.partialorder %v1656_v39, 0.0  ;;  %vm1665_vm1 = vcmp.ge.f32.partialorder %v1657_v44, 0.0 }
 0x333   :  { %v1658_v52 = vadd.f32 %v1650_v18, %v1638_v49  ;;  %v1659_v53 = vadd.f32 %v1650_v18, %v1639_v54 }
 0x334   :  { %v4277_v56 = vsel %vm1664_vm0, %v1656_v39, %v1680_v6  ;;  %v4279_v0 = vsel %vm1665_vm1, %v1657_v44, %v1681_v24 }
 0x335   :  { %v1670_v31 = vpop.permute.xlu1 %1669  ;;  %v1704_v7 = vadd.f32 %v4279_v0, %v4277_v56  ;;  %v1682_v58 = vmul.f32 %v1674_v47, %v1658_v52  ;;  %v1683_v38 = vmul.f32 %v1674_v47, %v1659_v53  ;;  %vm1666_vm5 = vcmp.ge.f32.partialorder %v1658_v52, 0.0 }
 0x336   :  { %v1676_v5 = vmul.f32 %v1670_v31, %v4233_v23  ;;  %v1677_v14 = vmul.f32 %v1670_v31, %v4217_v20  ;;  %vm1667_vm6 = vcmp.ge.f32.partialorder %v1659_v53, 0.0  ;;  %v1678_v51 = vmul.f32 %v1670_v31, %v4220_v46 }
 0x337   :  { %1705 = vadd.xlane.f32.xlu0 %v1704_v7  ;;  %v1679_v25 = vmul.f32 %v1670_v31, %v4236_v34  ;;  %v4304_v33 = vsel %vm1666_vm5, %v1658_v52, %v1682_v58 }
 0x338   :  { %v4293_v19 = vsel %vm1660_vm3, %v4233_v23, %v1676_v5  ;;  %v4296_v12 = vsel %vm1661_vm4, %v4217_v20, %v1677_v14  ;;  %v4306_v23 = vsel %vm1667_vm6, %v1659_v53, %v1683_v38  ;;  %v1868_v20 = vadd.f32 %v4140_v16, %v4120_v36 }
 0x339   :  { %v1701_v4 = vadd.f32 %v4296_v12, %v4293_v19  ;;  %v4313_v45 = vsel %vm1662_vm7, %v4220_v46, %v1678_v51  ;;  %v4316_v35 = vsel %vm1663_vm8, %v4236_v34, %v1679_v25  ;;  %v1879_v21 = vadd.f32 %v4306_v23, %v4304_v33  ;;  %v4327_v46 = vld [vmem:[#allocation7 + $0x8] sm:$0xff]  ;;  %v4331_v34 = vld [vmem:[#allocation7 + $0x18] sm:$0xff] }
 0x33a   :  { %v1876_v59 = vadd.f32 %v4316_v35, %v4313_v45 }
 0x33b   :  { %1702 = vadd.xlane.f32.xlu1 %v1701_v4  ;;  %1872 = vadd.xlane.f32.xlu0 %v1871_v43 }
 0x33f   :  { %1869 = vadd.xlane.f32.xlu1 %v1868_v20  ;;  %1880 = vadd.xlane.f32.xlu0 %v1879_v21 }
 0x343   :  { %1877 = vadd.xlane.f32.xlu1 %v1876_v59 }
 0x354   :  { %1734 = vrot.lane.b32.xlu1 %v1692_v55, %s2339_s1 }
 0x355   :  { %1743 = vrot.lane.b32.xlu0 %v4323_v40, %s2337_s7 }
 0x358   :  { %1745 = vrot.lane.b32.xlu1 %v4327_v46, %s2337_s7 }
 0x359   :  { %1782 = vrot.lane.b32.xlu0 %v4331_v34, %s2337_s7 }
 0x35c   :  { %1780 = vrot.lane.b32.xlu1 %v4335_v26, %s2337_s7 }
 0x37f   :  { %v1698_v42 = vpop.xlane.xlu0 %1697 }
 0x380   :  { %v1700_v2 = vmul.f32 0.00390625, %v1698_v42 }
 0x382   :  { %v1710_v61 = vmul.f32 %v4327_v46, %v1700_v2 }
 0x384   :  { %v1713_v1 = vsel %vm1711_vm9, %v1710_v61, 0.0 }
 0x38c   :  { %v1695_v8 = vpop.xlane.xlu1 %1694 }
 0x38d   :  { %v1699_v60 = vmul.f32 0.00390625, %v1695_v8 }
 0x38f   :  { %v1709_v63 = vmul.f32 %v4323_v40, %v1699_v60 }
 0x391   :  { %v1712_v9 = vsel %vm1711_vm9, %v1709_v63, 0.0 }
 0x392   :  { %v1714_v37 = vadd.f32 %v1713_v1, %v1712_v9 }
 0x394   :  { %v1715_v13 = vrot.slane %v1714_v37, 4 }
 0x396   :  { %v1716_v22 = vadd.f32 %v1715_v13, %v1714_v37 }
 0x398   :  { %v1717_v48 = vrot.slane %v1716_v22, 2 }
 0x39a   :  { %v1718_v51 = vadd.f32 %v1717_v48, %v1716_v22 }
 0x39c   :  { %v1719_v42 = vrot.slane %v1718_v51, 1 }
 0x39e   :  { %v1720_v37 = vadd.f32 %v1719_v42, %v1718_v51 }
 0x3c4   :  { %v1706_v32 = vpop.xlane.xlu0 %1705 }
 0x3c5   :  { %v1708_v27 = vmul.f32 0.00390625, %v1706_v32 }
 0x3c7   :  { %v1722_v57 = vmul.f32 %v4331_v34, %v1708_v27 }
 0x3c8   :  { %v1703_v62 = vpop.xlane.xlu1 %1702  ;;  %v1873_v29 = vpop.xlane.xlu0 %1872 }
 0x3c9   :  { %v1707_v30 = vmul.f32 0.00390625, %v1703_v62  ;;  %v1875_v18 = vmul.f32 0.00390625, %v1873_v29  ;;  %v1724_v39 = vsel %vm1711_vm9, %v1722_v57, 0.0 }
 0x3cb   :  { %v1721_v3 = vmul.f32 %v4335_v26, %v1707_v30  ;;  %v1885_v49 = vmul.f32 %v4327_v46, %v1875_v18 }
 0x3cc   :  { %v1870_v47 = vpop.xlane.xlu1 %1869  ;;  %v1881_v6 = vpop.xlane.xlu0 %1880 }
 0x3cd   :  { %v1723_v44 = vsel %vm1711_vm9, %v1721_v3, 0.0  ;;  %v1874_v54 = vmul.f32 0.00390625, %v1870_v47  ;;  %v1883_v52 = vmul.f32 0.00390625, %v1881_v6  ;;  %v1887_v5 = vsel %vm1711_vm9, %v1885_v49, 0.0 }
 0x3ce   :  { %v1725_v50 = vadd.f32 %v1724_v39, %v1723_v44 }
 0x3cf   :  { %v1884_v24 = vmul.f32 %v4323_v40, %v1874_v54  ;;  %v1896_v7 = vmul.f32 %v4331_v34, %v1883_v52 }
 0x3d0   :  { %v1726_v53 = vrot.slane %v1725_v50, 4  ;;  %v1878_v31 = vpop.xlane.xlu1 %1877  ;;  %v1744_v3 = vpop.permute.xlu0 %1743 }
 0x3d1   :  { %v1886_v14 = vsel %vm1711_vm9, %v1884_v24, 0.0  ;;  %v1882_v58 = vmul.f32 0.00390625, %v1878_v31  ;;  %v1898_v21 = vsel %vm1711_vm9, %v1896_v7, 0.0 }
 0x3d2   :  { %v1727_v38 = vadd.f32 %v1726_v53, %v1725_v50  ;;  %v1888_v4 = vadd.f32 %v1887_v5, %v1886_v14 }
 0x3d3   :  { %v1895_v25 = vmul.f32 %v4335_v26, %v1882_v58 }
 0x3d4   :  { %v1728_v43 = vrot.slane %v1727_v38, 2  ;;  %v1889_v20 = vrot.slane %v1888_v4, 4  ;;  %v1735_v9 = vpop.permute.xlu1 %1734  ;;  %v1783_v24 = vpop.permute.xlu0 %1782 }
 0x3d5   :  { %v1897_v59 = vsel %vm1711_vm9, %v1895_v25, 0.0 }
 0x3d6   :  { %v1890_v55 = vadd.f32 %v1889_v20, %v1888_v4  ;;  %v1899_v8 = vadd.f32 %v1898_v21, %v1897_v59  ;;  %v1729_v60 = vadd.f32 %v1728_v43, %v1727_v38 }
 0x3d8   :  { %v1891_v2 = vrot.slane %v1890_v55, 2  ;;  %v1900_v63 = vrot.slane %v1899_v8, 4  ;;  %v1730_v61 = vrot.slane %v1729_v60, 1  ;;  %v1746_v29 = vpop.permute.xlu1 %1745 }
 0x3da   :  { %v1901_v1 = vadd.f32 %v1900_v63, %v1899_v8  ;;  %v1731_v13 = vadd.f32 %v1730_v61, %v1729_v60  ;;  %v1892_v32 = vadd.f32 %v1891_v2, %v1890_v55 }
 0x3dc   :  { %v1902_v27 = vrot.slane %v1901_v1, 2  ;;  %v1732_v62 = vadd.f32 %v1731_v13, %v1720_v37  ;;  %v1893_v30 = vrot.slane %v1892_v32, 1  ;;  %v1781_v6 = vpop.permute.xlu1 %1780  ;;  %v2345_v37 = vmov 4  }
 0x3dd   :  { %2166 = vset.pattern.permute.xlu1 %v2345_v37  ;;  %2165 = vset.pattern.permute.xlu0 %v2345_v37  ;;  %v1816_v37 = vld [vmem:[#allocation2] sm:$0xff] }
 0x3de   :  { %v1737_v57 = vadd.f32 %v1735_v9, %v1732_v62  ;;  %v1903_v22 = vadd.f32 %v1902_v27, %v1901_v1  ;;  %v1894_v44 = vadd.f32 %v1893_v30, %v1892_v32 }
 0x3e0   :  { %v1738_v18 = vmax.f32 %v1737_v57, 0.0  ;;  %v1904_v47 = vrot.slane %v1903_v22, 1 }
 0x3e2   :  { %v1742_v39 = vrot.slane %v1738_v18, %v4952_v10  ;;  %v1905_v49 = vadd.f32 %v1904_v47, %v1903_v22 }
 0x3e4   :  { %v1906_v54 = vadd.f32 %v1905_v49, %v1894_v44  ;;  %v1750_v48 = vmul.f32 %v1746_v29, %v1742_v39  ;;  %v1749_v50 = vmul.f32 %v1744_v3, %v1742_v39  ;;  %v1786_v31 = vmul.f32 %v1781_v6, %v1742_v39 }
 0x3e5   :  { %v1787_v5 = vmul.f32 %v1783_v24, %v1742_v39 }
 0x3e6   :  { %v1907_v52 = vadd.f32 %v1906_v54, %v1735_v9  ;;  %1755 = vrot.lane.b32.xlu0 %v1750_v48, %s2344_s12  ;;  %1753 = vrot.lane.b32.xlu1 %v1749_v50, %s2344_s12 }
 0x3e8   :  { %v1908_v53 = vmax.f32 %v1907_v52, 0.0 }
 0x3ea   :  { %v1912_v14 = vrot.slane %v1908_v53, %v4952_v10  ;;  %1790 = vrot.lane.b32.xlu1 %v1786_v31, %s2344_s12  ;;  %1792 = vrot.lane.b32.xlu0 %v1787_v5, %s2344_s12 }
 0x3ec   :  { %v1914_v7 = vmul.f32 %v1912_v14, %v1746_v29  ;;  %v1913_v58 = vmul.f32 %v1912_v14, %v1744_v3  ;;  %v1943_v38 = vmul.f32 %v1912_v14, %v1781_v6  ;;  %v1944_v4 = vmul.f32 %v1912_v14, %v1783_v24 }
 0x3ee   :  { %1917 = vrot.lane.b32.xlu1 %v1913_v58, %s2344_s12  ;;  %1919 = vrot.lane.b32.xlu0 %v1914_v7, %s2344_s12 }
 0x3f2   :  { %1947 = vrot.lane.b32.xlu1 %v1943_v38, %s2344_s12  ;;  %1949 = vrot.lane.b32.xlu0 %v1944_v4, %s2344_s12 }
 0x458   :  { %v1754_v51 = vpop.permute.xlu1 %1753  ;;  %v1756_v25 = vpop.permute.xlu0 %1755 }
 0x459   :  { %v1760_v43 = vsel %vm1759_vm10, %v1754_v51, 0.0  ;;  %v1763_v20 = vsel %vm1759_vm10, %v1756_v25, 0.0 }
 0x45a   :  { %1761 = vadd.xlane.f32.xlu1 %v1760_v43  ;;  %1764 = vadd.xlane.f32.xlu0 %v1763_v20 }
 0x45c   :  { %v1791_v10 = vpop.permute.xlu1 %1790  ;;  %v1793_v21 = vpop.permute.xlu0 %1792 }
 0x45d   :  { %v1796_v59 = vsel %vm1759_vm10, %v1791_v10, 0.0  ;;  %v1799_v55 = vsel %vm1759_vm10, %v1793_v21, 0.0 }
 0x45e   :  { %1797 = vadd.xlane.f32.xlu0 %v1796_v59  ;;  %1800 = vadd.xlane.f32.xlu1 %v1799_v55 }
 0x460   :  { %v1918_v8 = vpop.permute.xlu1 %1917  ;;  %v1920_v42 = vpop.permute.xlu0 %1919 }
 0x461   :  { %v1923_v60 = vsel %vm1759_vm10, %v1918_v8, 0.0  ;;  %v1926_v2 = vsel %vm1759_vm10, %v1920_v42, 0.0 }
 0x462   :  { %1924 = vadd.xlane.f32.xlu0 %v1923_v60  ;;  %1927 = vadd.xlane.f32.xlu1 %v1926_v2 }
 0x464   :  { %v1948_v63 = vpop.permute.xlu1 %1947  ;;  %v1950_v61 = vpop.permute.xlu0 %1949 }
 0x465   :  { %v1953_v9 = vsel %vm1759_vm10, %v1948_v63, 0.0  ;;  %v1956_v1 = vsel %vm1759_vm10, %v1950_v61, 0.0 }
 0x466   :  { %1954 = vadd.xlane.f32.xlu0 %v1953_v9  ;;  %1957 = vadd.xlane.f32.xlu1 %v1956_v1 }
 0x4e7   :  { %v1762_v13 = vpop.xlane.xlu1 %1761  ;;  %v1765_v32 = vpop.xlane.xlu0 %1764 }
 0x4e8   :  { %v1766_v27 = vadd.f32 %v4323_v40, %v1762_v13  ;;  %v1767_v62 = vadd.f32 %v4327_v46, %v1765_v32  ;;  %v1817_v13 = vld [vmem:[#allocation2 + $0x8] sm:$0xff] }
 0x4ea   :  { %v2047_v57 = vmul.f32 -1.442695, %v1766_v27  ;;  %v2048_v30 = vmul.f32 -1.442695, %v1767_v62  ;;  %v1818_v27 = vld [vmem:[#allocation2 + $0x20] sm:$0xff]  ;;  %v1819_v62 = vld [vmem:[#allocation2 + $0x28] sm:$0xff] }
 0x4eb   :  { %v1801_v22 = vpop.xlane.xlu1 %1800  ;;  %v1798_v29 = vpop.xlane.xlu0 %1797 }
 0x4ec   :  { %2167 = vpow2.f32 %v2047_v57  ;;  %v1803_v3 = vadd.f32 %v4331_v34, %v1801_v22  ;;  %v1802_v18 = vadd.f32 %v4335_v26, %v1798_v29 }
 0x4ed   :  { %2169 = vpow2.f32 %v2048_v30 }
 0x4ee   :  { %v2050_v47 = vmul.f32 -1.442695, %v1803_v3  ;;  %v2049_v39 = vmul.f32 -1.442695, %v1802_v18  ;;  %v4955_v3 = vld [vmem:[#allocation65_spill] sm:$0xff] }
 0x4ef   :  { %v1928_v44 = vpop.xlane.xlu1 %1927  ;;  %v1925_v49 = vpop.xlane.xlu0 %1924 }
 0x4f0   :  { %2171 = vpow2.f32 %v2050_v47  ;;  %v1930_v54 = vadd.f32 %v4327_v46, %v1928_v44  ;;  %v1929_v48 = vadd.f32 %v4323_v40, %v1925_v49 }
 0x4f1   :  { %2173 = vpow2.f32 %v2049_v39 }
 0x4f2   :  { %v2051_v50 = vmul.f32 -1.442695, %v1929_v48  ;;  %v2052_v24 = vmul.f32 -1.442695, %v1930_v54  ;;  %v1842_v54 = vld [vmem:[#allocation2 + $0x40] sm:$0xff]  ;;  %v1843_v48 = vld [vmem:[#allocation2 + $0x48] sm:$0xff] }
 0x4f3   :  { %v1955_v6 = vpop.xlane.xlu0 %1954  ;;  %v1958_v31 = vpop.xlane.xlu1 %1957 }
 0x4f4   :  { %2175 = vpow2.f32 %v2051_v50  ;;  %v1959_v52 = vadd.f32 %v4335_v26, %v1955_v6  ;;  %v1960_v58 = vadd.f32 %v4331_v34, %v1958_v31 }
 0x4f5   :  { %2177 = vpow2.f32 %v2052_v24 }
 0x4f6   :  { %v2168_v53 = vpop.eup %2167  ;;  %v2053_v38 = vmul.f32 -1.442695, %v1959_v52  ;;  %v2054_v51 = vmul.f32 -1.442695, %v1960_v58  ;;  %v1845_v52 = vld [vmem:[#allocation2 + $0x68] sm:$0xff]  ;;  %v1973_v58 = vld [vmem:[#allocation2 + $0x10] sm:$0xff] }
 0x4f7   :  { %v2170_v5 = vpop.eup %2169  ;;  %v1774_v14 = vadd.f32 1.0, %v2168_v53 }
 0x4f8   :  { %v1775_v7 = vadd.f32 1.0, %v2170_v5 }
 0x4f9   :  { %2179 = vrcp.f32 %v1774_v14 }
 0x4fa   :  { %v2172_v46 = vpop.eup %2171  ;;  %2181 = vrcp.f32 %v1775_v7 }
 0x4fb   :  { %v2174_v40 = vpop.eup %2173  ;;  %2183 = vpow2.f32 %v2053_v38  ;;  %v1811_v25 = vadd.f32 1.0, %v2172_v46  ;;  %v1974_v38 = vld [vmem:[#allocation2 + $0x18] sm:$0xff] }
 0x4fc   :  { %v1810_v4 = vadd.f32 1.0, %v2174_v40 }
 0x4fe   :  { %2185 = vrcp.f32 %v1810_v4  ;;  %v2176_v43 = vpop.eup %2175 }
 0x4ff   :  { %2187 = vpow2.f32 %v2054_v51  ;;  %v2178_v26 = vpop.eup %2177  ;;  %v1937_v20 = vadd.f32 1.0, %v2176_v43  ;;  %v1975_v51 = vld [vmem:[#allocation2 + $0x30] sm:$0xff] }
 0x500   :  { %2189 = vrcp.f32 %v1811_v25  ;;  %v1938_v59 = vadd.f32 1.0, %v2178_v26  ;;  %v1976_v25 = vld [vmem:[#allocation2 + $0x38] sm:$0xff] }
 0x501   :  { %2191 = vrcp.f32 %v1937_v20 }
 0x502   :  { %2193 = vrcp.f32 %v1938_v59 }
 0x503   :  { %v2180_v10 = vpop.eup %2179 }
 0x504   :  { %v2182_v21 = vpop.eup %2181  ;;  %1822 = vperm.xlu0 %2165, %v2180_v10   ;;  %v1999_v10 = vld [vmem:[#allocation2 + $0x50] sm:$0xff] }
 0x505   :  { %1827 = vperm.xlu1 %2166, %v2182_v21   ;;  %v2184_v34 = vpop.eup %2183  ;;  %v2000_v21 = vld [vmem:[#allocation2 + $0x58] sm:$0xff] }
 0x506   :  { %v1967_v8 = vadd.f32 1.0, %v2184_v34 }
 0x508   :  { %v2186_v55 = vpop.eup %2185  ;;  %2195 = vrcp.f32 %v1967_v8  ;;  %v2001_v8 = vld [vmem:[#allocation2 + $0x70] sm:$0xff] }
 0x509   :  { %1848 = vperm.xlu1 %2166, %v2186_v55   ;;  %v2188_v42 = vpop.eup %2187 }
 0x50a   :  { %v2190_v60 = vpop.eup %2189  ;;  %v1968_v2 = vadd.f32 1.0, %v2188_v42  ;;  %v2002_v42 = vld [vmem:[#allocation2 + $0x78] sm:$0xff] }
 0x50b   :  { %v2192_v63 = vpop.eup %2191 }
 0x50c   :  { %2197 = vrcp.f32 %v1968_v2  ;;  %v2194_v61 = vpop.eup %2193 }
 0x50d   :  { %1853 = vperm.xlu1 %2166, %v2190_v60  }
 0x511   :  { %1979 = vperm.xlu1 %2166, %v2192_v63  }
 0x512   :  { %v2196_v9 = vpop.eup %2195 }
 0x515   :  { %1984 = vperm.xlu1 %2166, %v2194_v61  }
 0x516   :  { %v2198_v1 = vpop.eup %2197 }
 0x519   :  { %2005 = vperm.xlu1 %2166, %v2196_v9  }
 0x51d   :  { %2010 = vperm.xlu1 %2166, %v2198_v1  }
 0x583   :  { %v1823_v32 = vpop.permute.xlu0 %1822 }
 0x584   :  { %v1828_v57 = vpop.permute.xlu1 %1827  ;;  %v1830_v30 = vmul.f32 %v1823_v32, %v4100_v41  ;;  %v1831_v22 = vmul.f32 %v1823_v32, %v4107_v15 }
 0x585   :  { %v1832_v29 = vmul.f32 %v1828_v57, %v4024_v17  ;;  %v1833_v18 = vmul.f32 %v1828_v57, %v4955_v3  ;;  %v1844_v17 = vld [vmem:[#allocation2 + $0x60] sm:$0xff] }
 0x586   :  { %v1834_v47 = vadd.f32 %v1830_v30, %v1816_v37  ;;  %v1835_v39 = vadd.f32 %v1831_v22, %v1817_v13 }
 0x587   :  { %v1836_v44 = vadd.f32 %v1832_v29, %v1818_v27  ;;  %v1837_v49 = vadd.f32 %v1833_v18, %v1819_v62 }
 0x588   :  { %1838 = vst [vmem:[#allocation8] sm:$0xff] %v1834_v47  ;;  %1839 = vst [vmem:[#allocation8 + $0x8] sm:$0xff] %v1835_v39  ;;  %v1849_v50 = vpop.permute.xlu1 %1848 }
 0x589   :  { %1840 = vst [vmem:[#allocation8 + $0x20] sm:$0xff] %v1836_v44  ;;  %1841 = vst [vmem:[#allocation8 + $0x28] sm:$0xff] %v1837_v49  ;;  %v1856_v6 = vmul.f32 %v1849_v50, %v4293_v19  ;;  %v1857_v41 = vmul.f32 %v1849_v50, %v4296_v12 }
 0x58b   :  { %v1860_v15 = vadd.f32 %v1856_v6, %v1842_v54  ;;  %v1861_v24 = vadd.f32 %v1857_v41, %v1843_v48 }
 0x58c   :  { %v1854_v53 = vpop.permute.xlu1 %1853 }
 0x58d   :  { %1864 = vst [vmem:[#allocation8 + $0x40] sm:$0xff] %v1860_v15  ;;  %1865 = vst [vmem:[#allocation8 + $0x48] sm:$0xff] %v1861_v24  ;;  %v1858_v31 = vmul.f32 %v1854_v53, %v4277_v56  ;;  %v1859_v5 = vmul.f32 %v1854_v53, %v4279_v0 }
 0x58f   :  { %v1862_v14 = vadd.f32 %v1858_v31, %v1844_v17  ;;  %v1863_v7 = vadd.f32 %v1859_v5, %v1845_v52 }
 0x590   :  { %v1980_v46 = vpop.permute.xlu1 %1979 }
 0x591   :  { %1866 = vst [vmem:[#allocation8 + $0x60] sm:$0xff] %v1862_v14  ;;  %1867 = vst [vmem:[#allocation8 + $0x68] sm:$0xff] %v1863_v7  ;;  %v1987_v19 = vmul.f32 %v1980_v46, %v4120_v36  ;;  %v1988_v12 = vmul.f32 %v1980_v46, %v4140_v16 }
 0x593   :  { %v1991_v40 = vadd.f32 %v1987_v19, %v1973_v58  ;;  %v1992_v4 = vadd.f32 %v1988_v12, %v1974_v38 }
 0x594   :  { %v1985_v43 = vpop.permute.xlu1 %1984 }
 0x595   :  { %1995 = vst [vmem:[#allocation8 + $0x10] sm:$0xff] %v1991_v40  ;;  %1996 = vst [vmem:[#allocation8 + $0x18] sm:$0xff] %v1992_v4  ;;  %v1989_v56 = vmul.f32 %v1985_v43, %v4284_v28  ;;  %v1990_v0 = vmul.f32 %v1985_v43, %v4290_v11 }
 0x597   :  { %v1993_v26 = vadd.f32 %v1989_v56, %v1975_v51  ;;  %v1994_v20 = vadd.f32 %v1990_v0, %v1976_v25 }
 0x598   :  { %v2006_v59 = vpop.permute.xlu1 %2005 }
 0x599   :  { %1997 = vst [vmem:[#allocation8 + $0x30] sm:$0xff] %v1993_v26  ;;  %1998 = vst [vmem:[#allocation8 + $0x38] sm:$0xff] %v1994_v20  ;;  %v2013_v36 = vmul.f32 %v2006_v59, %v4313_v45  ;;  %v2014_v16 = vmul.f32 %v2006_v59, %v4316_v35 }
 0x59b   :  { %v2017_v34 = vadd.f32 %v2013_v36, %v1999_v10  ;;  %v2018_v55 = vadd.f32 %v2014_v16, %v2000_v21 }
 0x59c   :  { %v2011_v60 = vpop.permute.xlu1 %2010 }
 0x59d   :  { %2021 = vst [vmem:[#allocation8 + $0x50] sm:$0xff] %v2017_v34  ;;  %2022 = vst [vmem:[#allocation8 + $0x58] sm:$0xff] %v2018_v55  ;;  %v2015_v28 = vmul.f32 %v2011_v60, %v4304_v33  ;;  %v2016_v11 = vmul.f32 %v2011_v60, %v4306_v23 }
 0x59f   :  { %v2019_v2 = vadd.f32 %v2015_v28, %v2001_v8  ;;  %v2020_v63 = vadd.f32 %v2016_v11, %v2002_v42 }
 0x5a1   :  { %2023 = vst [vmem:[#allocation8 + $0x70] sm:$0xff] %v2019_v2  ;;  %2024 = vst [vmem:[#allocation8 + $0x78] sm:$0xff] %v2020_v63 }
 0x5a2   :  { %2281 = shalt.err (!%p2278_p0)
}
 0x5a3   :  { %s2282_s19 = scalar_lea.hbm %s4407_s3, 2048 }
 0x5a4   :  { %p2283_p1 = scmp.ne.s32.totalorder %s4407_s3, %s2282_s19  ;;  %p2286_p2 = scmp.lt.u32.totalorder %s2282_s19, %s4407_s3 }
 0x5a6   :  { %p2288_p3 = pnand %p2286_p2, %p2283_p1 }
 0x5a8   :  { %2291 = shalt.err (!%p2288_p3)
}
 0x5a9   :  { %2036 = dma.vmem_to_hbm [thread:$0]  %s2031_s14, 2048, %s4407_s3, [#allocation4], %s2300_s24, %s2300_s24, %s2301_s25  }
 0x5aa   :  { %2296 = dma.done.wait [#allocation4], 2048  }
 0x5ab   :  { %2297 = vsyncadd [#allocation4], 4294965248 }
 0x5ac   :  { %2040 = vsyncpa [#allocation3], 1 }
 0x5ad   :  { %2041 = vsyncpa [#allocation6], 1 }
 0x5ae   :  { %2042 = vsyncpa [#allocation4], 1 }

</bundles_post_ra>
